<compile_context>
chip_gen: v7x
topology: tpu7x:2x2x1
jax: 0.10.0
libtpu: 0.0.40
codegen_flags: <defaults>
</compile_context>

<pallas_src>
import math

import jax
import jax.numpy as jnp
from jax.experimental import pallas as pl
from jax.experimental.pallas import tpu as pltpu


# ----------------------------- Pallas kernel -----------------------------

def _pos_encode_kernel(x_ref, pe_ref, o_ref):
    # x_ref : (TS, B, E) activation tile
    # pe_ref: (TS, 1, E) positional-encoding tile, broadcast over the batch (sublane) axis
    # Fused slice + broadcast + add; dropout is identity (eval mode).
    o_ref[...] = x_ref[...] + pe_ref[...]


# ----------------------------- wrapper -----------------------------

def make_pe_buffer(d_model, max_len=5000):
    """The (max_len, 1, d_model) buffer computed in PositionalEncoding.__init__."""
    position = jnp.arange(max_len, dtype=jnp.float32)[:, None]
    div_term = jnp.exp(jnp.arange(0, d_model, 2, dtype=jnp.float32)
                       * (-math.log(10000.0) / d_model))
    pe = jnp.zeros((max_len, 1, d_model), jnp.float32)
    pe = pe.at[:, 0, 0::2].set(jnp.sin(position * div_term))
    pe = pe.at[:, 0, 1::2].set(jnp.cos(position * div_term))
    return pe


def _pick_seq_tile(S, bytes_per_seq_row, target_bytes=4 << 20):
    """Fixed ~4 MiB x-tile along the sequence axis (cdiv grid handles the ragged tail).

    4 MiB keeps the double-buffered in/out/pe footprint (~17 MiB at B=8, E=512 f32)
    well inside the 32 MiB default scoped VMEM on v5e/v6e/v7x while keeping per-step
    overhead (~0.35 us) negligible at >=85% of HBM roofline.
    """
    ts = max(1, min(S, target_bytes // max(bytes_per_seq_row, 1)))
    # Keep >= 2 grid steps so ("parallel",) can shard across both v7x TensorCores.
    if S > 1 and pl.cdiv(S, ts) < 2:
        ts = pl.cdiv(S, 2)
    return int(ts)


def positional_encoding(x, pe):
    """x: (S, B, d_model) float32, seq-first exactly as the PyTorch module expects.

    pe: the full (max_len, 1, d_model) buffer; only the first ceil(S/ts) blocks are
    ever DMA'd (no wrapper-side slice / extra HBM copy).
    """
    S, B, E = x.shape
    max_len = pe.shape[0]
    assert S <= max_len, f"sequence length {S} exceeds max_len {max_len}"
    assert pe.shape == (max_len, 1, E)

    ts = _pick_seq_tile(S, B * E * x.dtype.itemsize)
    grid = (pl.cdiv(S, ts),)

    return pl.pallas_call(
        _pos_encode_kernel,
        grid=grid,
        in_specs=[
            pl.BlockSpec((ts, B, E), lambda i: (i, 0, 0)),
            pl.BlockSpec((ts, 1, E), lambda i: (i, 0, 0)),
        ],
        out_specs=pl.BlockSpec((ts, B, E), lambda i: (i, 0, 0)),
        out_shape=jax.ShapeDtypeStruct((S, B, E), x.dtype),
        input_output_aliases={0: 0},     # in-place add: reuse x's HBM buffer for the output
        compiler_params=pltpu.CompilerParams(
            dimension_semantics=("parallel",),   # v7x: shard seq tiles across both TCs
        ),
    )(x, pe)


# ----------------------------- reference & main -----------------------------

def positional_encoding_ref(x, pe):
    return x + pe[: x.shape[0]]


if __name__ == "__main__":
    d_model = 512            # module-level constant in the original file
    max_len = 5000
    S, B = 256, 8            # small demo; B=8 fills sublanes, d_model=512 fills lanes

    key = jax.random.PRNGKey(0)
    x = jax.random.normal(key, (S, B, d_model), dtype=jnp.float32)
    pe = make_pe_buffer(d_model, max_len)

    # Reference must be computed (and materialized) BEFORE the kernel call, since x is
    # donated to the kernel (its buffer is reused for the output).
    ref = jax.block_until_ready(positional_encoding_ref(x, pe))

    pe_fn = jax.jit(positional_encoding, donate_argnums=(0,))
    out = jax.block_until_ready(pe_fn(x, pe))

    assert out.shape == (S, B, d_model), out.shape
    assert bool(jnp.all(jnp.isfinite(out)))
    max_err = float(jnp.max(jnp.abs(out - ref)))
    assert max_err < 1e-5, max_err
    print("KERNEL_OK")
</pallas_src>

<mosaic_0001>
module attributes {stable_mosaic.version = 11 : i64} {
  func.func @_pos_encode_kernel(%arg0: i32, %arg1: memref<128x8x512xf32, #tpu.memory_space<vmem>>, %arg2: memref<128x1x512xf32, #tpu.memory_space<vmem>>, %arg3: memref<128x8x512xf32, #tpu.memory_space<vmem>>) attributes {dimension_semantics = [#tpu.dimension_semantics<parallel>], iteration_bounds = array<i64: 2>, scalar_prefetch = 0 : i64, scratch_operands = 0 : i64, tpu.core_type = #tpu.core_type<tc>, window_params = [{transform_indices = @transform_0, window_bounds = array<i64: 128, 8, 512>}, {transform_indices = @transform_1, window_bounds = array<i64: 128, 1, 512>}, {transform_indices = @transform_2, window_bounds = array<i64: 128, 8, 512>}]} {
    %c0 = arith.constant 0 : index
    %c0_0 = arith.constant 0 : index
    %c0_1 = arith.constant 0 : index
    %0 = vector.load %arg1[%c0, %c0_0, %c0_1] : memref<128x8x512xf32, #tpu.memory_space<vmem>>, vector<128x8x512xf32>
    %c0_2 = arith.constant 0 : index
    %c0_3 = arith.constant 0 : index
    %c0_4 = arith.constant 0 : index
    %1 = vector.load %arg2[%c0_2, %c0_3, %c0_4] : memref<128x1x512xf32, #tpu.memory_space<vmem>>, vector<128x1x512xf32>
    %2 = vector.broadcast %1 : vector<128x1x512xf32> to vector<128x8x512xf32>
    %3 = arith.addf %0, %2 : vector<128x8x512xf32>
    %c0_5 = arith.constant 0 : index
    %c0_6 = arith.constant 0 : index
    %c0_7 = arith.constant 0 : index
    %4 = vector.load %arg3[%c0_5, %c0_6, %c0_7] : memref<128x8x512xf32, #tpu.memory_space<vmem>>, vector<128x8x512xf32>
    tpu.vector_store %arg3[%c0_5, %c0_6, %c0_7], %3 {strides = array<i32>} : memref<128x8x512xf32, #tpu.memory_space<vmem>>, vector<128x8x512xf32>,
    return
  }
  func.func @transform_0(%arg0: i32) -> (i32, i32, i32) {
    %c0_i32 = arith.constant 0 : i32
    %c0_i32_0 = arith.constant 0 : i32
    %c0_i32_1 = arith.constant 0 : i32
    return %arg0, %c0_i32, %c0_i32_0 : i32, i32, i32
  }
  func.func @transform_1(%arg0: i32) -> (i32, i32, i32) {
    %c0_i32 = arith.constant 0 : i32
    %c0_i32_0 = arith.constant 0 : i32
    %c0_i32_1 = arith.constant 0 : i32
    return %arg0, %c0_i32, %c0_i32_0 : i32, i32, i32
  }
  func.func @transform_2(%arg0: i32) -> (i32, i32, i32) {
    %c0_i32 = arith.constant 0 : i32
    %c0_i32_0 = arith.constant 0 : i32
    %c0_i32_1 = arith.constant 0 : i32
    return %arg0, %c0_i32, %c0_i32_0 : i32, i32, i32
  }
}

</mosaic_0001>

<bundles_post_ra>
// kernel: positional_encoding.1
= control target key start
LH: loop header
LB: loop body
LE: loop exit
PB: predicated region body
PF: predicated region fallthrough
CT: control target
= control target key end

     0   :  { %7 = vsyncpa [#allocation3], 0  ;;  %s6805_s0 = inlined_call_operand.hbm [shape: f32[256,8,512], index: 0, kind: input, shape index: {}, may-alias: {0,2}]   ;;  %s6806_s1 = inlined_call_operand.hbm [shape: f32[5000,1,512], index: 1, kind: input, shape index: {}]   ;;  %s6807_s2 = inlined_call_operand.hbm [shape: f32[256,8,512], index: 2, kind: output, shape index: {}, may-alias: {0,2}]  }
   0x1   :  { %9 = vsyncpa [#allocation3 + $0x1], 0 }
   0x2   :  { %10 = vsyncpa [#allocation6], 0 }
   0x3   :  { %12 = vsyncpa [#allocation6 + $0x1], 0 }
   0x4   :  { %13 = vsyncpa [#allocation4], 0 }
   0x5   :  { %15 = vsyncpa [#allocation4 + $0x1], 0  ;;  %s4915_s9 = smov 0   ;;  %s4917_s10 = smov 0  }
   0x6   :  { %s4919_s11 = smov 0   ;;  %s4921_s12 = smov 0  }
   0x7 LB: > { %s4936_s13 = sadd.s32 4294967295, %s4889_s12   ;;  %s4682_s14 = sadd.s32 4294967294, %s4889_s12   ;;  %s4889_s12 = sphi %s4921_s12, %s6820_s12   ;;  %s4885_s11 = sphi %s4919_s11, %s6819_s11   ;;  %s4881_s10 = sphi %s4917_s10, %s6818_s10   ;;  %s4877_s9 = sphi %s4915_s9, %s6817_s9  }
   0x8   : > { %s4940_s15 = sadd.s32 1, %s4889_s12   ;;  %s28_s16 = sadd.s32 1, %s4885_s11 }
   0x9   : > { %s25_s17 = ssub.s32 %s4889_s12, %s4940_s15  ;;  %p35_p0 = scmp.ne.s32.totalorder %s4885_s11, %s4881_s10 }
   0xa   : > { %p26_p1 = scmp.eq.s32.totalorder %s25_s17, 0  ;;  %p36_p2 = scmp.eq.s32.totalorder %s4889_s12, 0 }
   0xb   : > { %p41_p3 = scmp.ne.s32.totalorder %s4881_s10, %s4877_s9  ;;  %p42_p4 = scmp.eq.s32.totalorder %s4936_s13, 0 }
   0xc   : > { %s4952_s18 = scalar_select %p26_p1, %s4885_s11, %s28_s16  }
   0xd   : > { %p4954_p5 = por %p36_p2, %p35_p0  ;;  %p4958_p6 = por %p42_p4, %p41_p3 }
   0xe   : > { %p91_p7 = scmp.eq.s32.totalorder %s4936_s13, 1  ;;  %p97_p8 = scmp.eq.s32.totalorder %s4682_s14, 1 }
   0xf   : > { %p6808_p11 = scmp.ge.s32.totalorder %s4889_s12, 2 }
  0x10   : > { %p4963_p9 = por %p91_p7, %p35_p0  ;;  %p4967_p10 = por %p97_p8, %p41_p3 }
  0x11   : > { %113 = sbr.rel (%p6808_p11) target bundleno = 81 (0x51), region = 16  ;;  %s4975_s23 = sand.u32 (!%p6808_p11), 1, %s4885_s11  }
  0x12   : > { %s6812_s21 = scalar_select %p4963_p9, 1, 0 }
  0x13   : > { %s6813_s22 = scalar_select %p4967_p10, 1, 0 }
  0x14   : > { %s4709_s24 = sshll.u32 (!%p6808_p11), %s4889_s12, 16  ;;  %s4685_s25 = sshll.u32 (!%p6808_p11), %s4975_s23, 12 }
  0x15   : > { %s4982_s28 = scalar_lea.hbm (!%p6808_p11), %s6805_s0, %s4709_s24  ;;  %s121_s29 = scalar_lea.vmem (!%p6808_p11), [#allocation2], %s4685_s25 }
  0x16   : > { %s129_s30 = sshll.u32 (!%p6808_p11), %s121_s29, 4  ;;  %s118_s3 = scalar_lea.sflag (!%p6808_p11), [#allocation3], %s4975_s23  ;;  %s4984_s30 = int_to_ptr.vmem [resolvable:$true] %s129_s30 }
  0x17   : > { %s4763_s4 = scalar_lea.hbm (!%p6808_p11), %s4982_s28, 65536  ;;  %s4767_s7 = scalar_lea.hbm (!%p6808_p11), %s6805_s0, 131072 }
  0x18   : > { %p4764_p12 = scmp.ne.s32.totalorder %s4982_s28, %s4763_s4  ;;  %p4768_p1 = scmp.lt.u32.totalorder %s4982_s28, %s6805_s0 }
  0x19   : > { %p4769_p2 = scmp.lt.u32.totalorder %s4767_s7, %s4763_s4  ;;  %p4771_p4 = scmp.lt.u32.totalorder %s4763_s4, %s4982_s28 }
  0x1a   : > { %p4765_p13 = pnand %p4764_p12, %p4954_p5 }
  0x1b   : > { %p4770_p3 = por %p4769_p2, %p4768_p1 }
  0x1c   : > { %p4766_p0 = pneg %p4765_p13 }
  0x1d   : > { %p4772_p7 = por %p4771_p4, %p4770_p3 }
  0x1f   : > { %p4773_p8 = pnand %p4772_p7, %p4766_p0 }
  0x21   : > { %4776 = shalt.err (!%p4773_p8)
}
  0x22   : > { %s4777_s16 = scalar_lea.vmem %s4984_s30, 65536  ;;  %s4891_s17 = smov [#allocation2]  }
  0x23   : > { %p4778_p12 = scmp.ne.s32.totalorder %s4984_s30, %s4777_s16  ;;  %s4781_s24 = sshll.u32 %s4891_s17, 4  ;;  %s4782_s24 = int_to_ptr.vmem [resolvable:$false] %s4781_s24 }
  0x24   : > { %s4783_s25 = scalar_lea.vmem %s4782_s24, 131072  ;;  %p4784_p10 = scmp.lt.s32.totalorder %s4984_s30, %s4782_s24 }
  0x25   : > { %p4779_p13 = pnand %p4778_p12, %p4954_p5  ;;  %p4785_p9 = scmp.lt.s32.totalorder %s4783_s25, %s4777_s16 }
  0x27   : > { %p4780_p11 = pneg %p4779_p13  ;;  %p4786_p1 = por %p4785_p9, %p4784_p10 }
  0x29   : > { %p4787_p2 = pnand %p4786_p1, %p4780_p11 }
  0x2b   : > { %4790 = shalt.err (!%p4787_p2)
}
  0x2c   : > { %s4892_s26 = smov 512   ;;  %s4893_s27 = smov 32  }
  0x2d   : > { %4715 = dma.hbm_to_vmem [thread:$0]  (%p4954_p5), %s4982_s28, 65536, %s4984_s30, %s118_s3, %s4892_s26, %s4892_s26, %s4893_s27  }
  0x2e   : > { %138 = sbr.rel (!%p4954_p5) target bundleno = 81 (0x51), region = 24  ;;  %s4689_s29 = sshll.u32 (%p4954_p5), %s4975_s23, 9 }
  0x2f   : > { %s4690_s4 = sshll.u32 (%p4954_p5), %s4889_s12, 7  ;;  %s140_s8 = scalar_lea.sflag (%p4954_p5), [#allocation6], %s4975_s23 }
  0x30   : > { %s145_s5 = ssub.s32 (%p4954_p5), 5000, %s4690_s4  ;;  %s143_s14 = scalar_lea.vmem (%p4954_p5), [#allocation5], %s4689_s29 }
  0x31   : > { %p146_p9 = scmp.lt.s32.totalorder (%p4954_p5), %s145_s5, 128 }
  0x35   : > { %s6822_s5 = smov (!%p146_p9, %s145_s5), 128 }
  0x36   : > { %s5014_s6 = sshll.u32 %s6822_s5, 6 }
  0x37   : > { %s151_s7 = ssub.s32 8192, %s5014_s6 }
  0x38   : > { %152 = vsyncadd %s140_s8, %s151_s7  ;;  %p4693_p5 = scmp.ne.s32.totalorder %s5014_s6, 0  ;;  %s4712_s19 = sshll.u32 %s4889_s12, 13 }
  0x39   : > { %s5025_s3 = scalar_lea.hbm %s6806_s1, %s4712_s19  ;;  %s158_s16 = sshll.u32 %s143_s14, 4  ;;  %s5027_s16 = int_to_ptr.vmem [resolvable:$true] %s158_s16 }
  0x3a   : > { %s4791_s17 = scalar_lea.hbm %s5025_s3, %s5014_s6  ;;  %s4795_s26 = scalar_lea.hbm %s6806_s1, 320000 }
  0x3b   : > { %p4792_p10 = scmp.ne.s32.totalorder %s5025_s3, %s4791_s17  ;;  %p4796_p3 = scmp.lt.u32.totalorder %s5025_s3, %s6806_s1 }
  0x3c   : > { %p4797_p4 = scmp.lt.u32.totalorder %s4795_s26, %s4791_s17  ;;  %p4799_p8 = scmp.lt.u32.totalorder %s4791_s17, %s5025_s3 }
  0x3d   : > { %p4793_p11 = pnand %p4792_p10, %p4693_p5 }
  0x3e   : > { %p4798_p7 = por %p4797_p4, %p4796_p3 }
  0x3f   : > { %p4794_p0 = pneg %p4793_p11 }
  0x40   : > { %p4800_p12 = por %p4799_p8, %p4798_p7 }
  0x42   : > { %p4801_p13 = pnand %p4800_p12, %p4794_p0 }
  0x44   : > { %4804 = shalt.err (!%p4801_p13)
}
  0x45   : > { %s4805_s4 = scalar_lea.vmem %s5027_s16, %s5014_s6  ;;  %s4894_s5 = smov [#allocation5]  }
  0x46   : > { %p4806_p1 = scmp.ne.s32.totalorder %s5027_s16, %s4805_s4  ;;  %s4809_s7 = sshll.u32 %s4894_s5, 4  ;;  %s4810_s7 = int_to_ptr.vmem [resolvable:$false] %s4809_s7 }
  0x47   : > { %s4811_s14 = scalar_lea.vmem %s4810_s7, 16384  ;;  %p4812_p10 = scmp.lt.s32.totalorder %s5027_s16, %s4810_s7 }
  0x48   : > { %p4807_p2 = pnand %p4806_p1, %p4693_p5  ;;  %p4813_p11 = scmp.lt.s32.totalorder %s4811_s14, %s4805_s4 }
  0x4a   : > { %p4808_p9 = pneg %p4807_p2  ;;  %p4814_p3 = por %p4813_p11, %p4812_p10 }
  0x4c   : > { %p4815_p4 = pnand %p4814_p3, %p4808_p9 }
  0x4e   : > { %4818 = shalt.err (!%p4815_p4)
}
  0x4f   : > { %s4895_s19 = smov 64   ;;  %s4896_s28 = smov 4  }
  0x50   : > { %164 = dma.hbm_to_vmem [thread:$0]  (%p4693_p5), %s5025_s3, %s5014_s6, %s5027_s16, %s140_s8, %s4895_s19, %s4895_s19, %s4896_s28  }
  0x51 PF: > { %p4698_p0 = scmp.ge.s32.totalorder %s4889_s12, 1  ;;  %p166_p7 = scmp.lt.s32.totalorder %s4889_s12, 3 }
  0x53   : > { %p167_p8 = pnand %p4698_p0, %p166_p7 }
  0x54   : > { %s5058_s30 = sand.u32 (!%p167_p8), 1, %s4881_s10  }
  0x55   : > { %170 = sbr.rel (%p167_p8) target bundleno = 439 (0x1b7), region = 28  ;;  %s4699_s17 = sshll.u32 (!%p167_p8), %s5058_s30, 12 }
  0x56   : > { %s173_s24 = scalar_lea.sflag (!%p167_p8), [#allocation3], %s5058_s30  ;;  %s5064_s23 = scalar_lea.vmem (!%p167_p8), [#allocation2], %s4699_s17 }
  0x5c   : > { %4864 = dma.done.wait (%p4958_p6), %s173_s24, 65536  }
  0x5d   : > { %4866 = vsyncadd (%p4958_p6), %s173_s24, 4294901760  ;;  %s4700_s6 = sshll.u32 %s5058_s30, 9  ;;  %s182_s8 = scalar_lea.sflag [#allocation6], %s5058_s30 }
  0x5e   : > { %s5072_s3 = scalar_lea.vmem [#allocation5], %s4700_s6 }
  0x5f   : > { %4868 = dma.done.wait (%p4958_p6), %s182_s8, 8192  }
  0x60   : > { %4870 = vsyncadd (%p4958_p6), %s182_s8, 4294959104  ;;  %v987_v0 = vlaneseq  ;;  %v219_v6 = vld [vmem:[%s5064_s23] sm:$0xff]  ;;  %v220_v8 = vld [vmem:[%s5064_s23 + $0x8] sm:$0xff]  ;;  %s5111_s20 = scalar_lea.vmem [#allocation7], %s4699_s17  ;;  %s4714_s16 = sshll.u32 %s4936_s13, 16 }
  0x61   : > { %v731_v7 = vld [vmem:[%s5072_s3] sm:$0xf]  ;;  %v221_v11 = vld [vmem:[%s5064_s23 + $0x10] sm:$0xff]  ;;  %v222_v13 = vld [vmem:[%s5064_s23 + $0x18] sm:$0xff]  ;;  %s4586_s25 = sshll.u32 %s5111_s20, 4  ;;  %s6755_s27 = scalar_lea.hbm %s6807_s2, %s4714_s16  ;;  %s6757_s25 = int_to_ptr.vmem [resolvable:$true] %s4586_s25 }
  0x62   : > { %v988_v1 = vshrl.u32 %v987_v0, 7  ;;  %v223_v15 = vld [vmem:[%s5064_s23 + $0x20] sm:$0xff]  ;;  %v224_v17 = vld [vmem:[%s5064_s23 + $0x28] sm:$0xff]  ;;  %v225_v18 = vld [vmem:[%s5064_s23 + $0x30] sm:$0xff]  ;;  %s4572_s29 = scalar_lea.sflag [#allocation4], %s5058_s30  ;;  %s4819_s4 = scalar_lea.vmem %s6757_s25, 65536 }
  0x63   : > { %v732_v16 = vld [vmem:[%s5072_s3 + $0x4] sm:$0xf]  ;;  %v226_v23 = vld [vmem:[%s5064_s23 + $0x38] sm:$0xff]  ;;  %v733_v25 = vld [vmem:[%s5072_s3 + $0x8] sm:$0xf]  ;;  %p4820_p6 = scmp.ne.s32.totalorder %s6757_s25, %s4819_s4  ;;  %p6814_p5 = scmp.ne.s32.totalorder %s6812_s21, 0 }
  0x64   : > { %v5078_v2 = vsub.s32 0, %v988_v1  ;;  %v5080_v3 = vsub.s32 1, %v988_v1  ;;  %v5082_v4 = vsub.s32 2, %v988_v1  ;;  %v5084_v5 = vsub.s32 3, %v988_v1  ;;  %v227_v24 = vld [vmem:[%s5064_s23 + $0x40] sm:$0xff]  ;;  %v228_v30 = vld [vmem:[%s5064_s23 + $0x48] sm:$0xff] }
  0x65   : > { %v229_v31 = vld [vmem:[%s5064_s23 + $0x50] sm:$0xff]  ;;  %v230_v32 = vld [vmem:[%s5064_s23 + $0x58] sm:$0xff]  ;;  %v734_v37 = vld [vmem:[%s5072_s3 + $0xc] sm:$0xf]  ;;  %p4821_p12 = pnand %p4820_p6, %p6814_p5  ;;  %s4897_s5 = smov [#allocation7]  }
  0x66   : > { %v990_v9 = vrot.slane %v731_v7, %v5078_v2  ;;  %v994_v10 = vrot.slane %v731_v7, %v5080_v3  ;;  %v998_v12 = vrot.slane %v731_v7, %v5082_v4  ;;  %v1002_v14 = vrot.slane %v731_v7, %v5084_v5  ;;  %v231_v42 = vld [vmem:[%s5064_s23 + $0x60] sm:$0xff]  ;;  %v232_v43 = vld [vmem:[%s5064_s23 + $0x68] sm:$0xff]  ;;  %v233_v44 = vld [vmem:[%s5064_s23 + $0x70] sm:$0xff]  ;;  %s4823_s7 = sshll.u32 %s4897_s5, 4  ;;  %s4824_s7 = int_to_ptr.vmem [resolvable:$false] %s4823_s7 }
  0x67   : > { %v1006_v26 = vrot.slane %v732_v16, %v5078_v2  ;;  %v1010_v27 = vrot.slane %v732_v16, %v5080_v3  ;;  %v1014_v28 = vrot.slane %v732_v16, %v5082_v4  ;;  %v1018_v29 = vrot.slane %v732_v16, %v5084_v5  ;;  %v234_v49 = vld [vmem:[%s5064_s23 + $0x78] sm:$0xff]  ;;  %v235_v50 = vld [vmem:[%s5064_s23 + $0x80] sm:$0xff]  ;;  %v735_v51 = vld [vmem:[%s5072_s3 + $0x10] sm:$0xf]  ;;  %p4822_p13 = pneg %p4821_p12  ;;  %s4825_s14 = scalar_lea.vmem %s4824_s7, 131072 }
  0x68   : > { %v3547_v19 = vadd.f32 %v990_v9, %v219_v6  ;;  %v3548_v20 = vadd.f32 %v994_v10, %v220_v8  ;;  %v3549_v21 = vadd.f32 %v998_v12, %v221_v11  ;;  %v3550_v22 = vadd.f32 %v1002_v14, %v222_v13  ;;  %v236_v56 = vld [vmem:[%s5064_s23 + $0x88] sm:$0xff]  ;;  %v237_v57 = vld [vmem:[%s5064_s23 + $0x90] sm:$0xff]  ;;  %v238_v58 = vld [vmem:[%s5064_s23 + $0x98] sm:$0xff]  ;;  %p4826_p1 = scmp.lt.s32.totalorder %s6757_s25, %s4824_s7  ;;  %p4827_p2 = scmp.lt.s32.totalorder %s4825_s14, %s4819_s4 }
  0x69   : > { %v1022_v33 = vrot.slane %v733_v25, %v5078_v2  ;;  %v1026_v34 = vrot.slane %v733_v25, %v5080_v3  ;;  %v1030_v35 = vrot.slane %v733_v25, %v5082_v4  ;;  %v1034_v36 = vrot.slane %v733_v25, %v5084_v5  ;;  %v736_v63 = vld [vmem:[%s5072_s3 + $0x14] sm:$0xf]  ;;  %v239_v8 = vld [vmem:[%s5064_s23 + $0xa0] sm:$0xff]  ;;  %v240_v9 = vld [vmem:[%s5064_s23 + $0xa8] sm:$0xff] }
  0x6a   : > { %4059 = vst [vmem:[%s5111_s20] sm:$0xff] %v3547_v19  ;;  %4060 = vst [vmem:[%s5111_s20 + $0x8] sm:$0xff] %v3548_v20  ;;  %v3551_v38 = vadd.f32 %v1006_v26, %v223_v15  ;;  %v3552_v39 = vadd.f32 %v1010_v27, %v224_v17  ;;  %v3553_v40 = vadd.f32 %v1014_v28, %v225_v18  ;;  %v737_v10 = vld [vmem:[%s5072_s3 + $0x18] sm:$0xf]  ;;  %v241_v15 = vld [vmem:[%s5064_s23 + $0xb0] sm:$0xff]  ;;  %p4828_p9 = por %p4827_p2, %p4826_p1 }
  0x6b   : > { %4061 = vst [vmem:[%s5111_s20 + $0x10] sm:$0xff] %v3549_v21  ;;  %4062 = vst [vmem:[%s5111_s20 + $0x18] sm:$0xff] %v3550_v22  ;;  %v3554_v41 = vadd.f32 %v1018_v29, %v226_v23  ;;  %v3555_v45 = vadd.f32 %v1022_v33, %v227_v24  ;;  %v3556_v46 = vadd.f32 %v1026_v34, %v228_v30  ;;  %v242_v16 = vld [vmem:[%s5064_s23 + $0xb8] sm:$0xff]  ;;  %v243_v17 = vld [vmem:[%s5064_s23 + $0xc0] sm:$0xff] }
  0x6c   : > { %v3557_v47 = vadd.f32 %v1030_v35, %v229_v31  ;;  %v3558_v48 = vadd.f32 %v1034_v36, %v230_v32  ;;  %4063 = vst [vmem:[%s5111_s20 + $0x20] sm:$0xff] %v3551_v38  ;;  %4064 = vst [vmem:[%s5111_s20 + $0x28] sm:$0xff] %v3552_v39  ;;  %v1038_v52 = vrot.slane %v734_v37, %v5078_v2  ;;  %v244_v22 = vld [vmem:[%s5064_s23 + $0xc8] sm:$0xff]  ;;  %v245_v23 = vld [vmem:[%s5064_s23 + $0xd0] sm:$0xff]  ;;  %p4829_p10 = pnand %p4828_p9, %p4822_p13 }
  0x6d   : > { %4065 = vst [vmem:[%s5111_s20 + $0x30] sm:$0xff] %v3553_v40  ;;  %4066 = vst [vmem:[%s5111_s20 + $0x38] sm:$0xff] %v3554_v41  ;;  %v1042_v53 = vrot.slane %v734_v37, %v5080_v3  ;;  %v1046_v54 = vrot.slane %v734_v37, %v5082_v4  ;;  %v1050_v55 = vrot.slane %v734_v37, %v5084_v5  ;;  %v246_v24 = vld [vmem:[%s5064_s23 + $0xd8] sm:$0xff]  ;;  %v247_v34 = vld [vmem:[%s5064_s23 + $0xe0] sm:$0xff] }
  0x6e   : > { %4067 = vst [vmem:[%s5111_s20 + $0x40] sm:$0xff] %v3555_v45  ;;  %4068 = vst [vmem:[%s5111_s20 + $0x48] sm:$0xff] %v3556_v46  ;;  %v1054_v59 = vrot.slane %v735_v51, %v5078_v2  ;;  %v1058_v60 = vrot.slane %v735_v51, %v5080_v3  ;;  %v1062_v61 = vrot.slane %v735_v51, %v5082_v4  ;;  %v738_v29 = vld [vmem:[%s5072_s3 + $0x1c] sm:$0xf]  ;;  %v248_v35 = vld [vmem:[%s5064_s23 + $0xe8] sm:$0xff] }
  0x6f   : > { %4069 = vst [vmem:[%s5111_s20 + $0x50] sm:$0xff] %v3557_v47  ;;  %4070 = vst [vmem:[%s5111_s20 + $0x58] sm:$0xff] %v3558_v48  ;;  %v1066_v62 = vrot.slane %v735_v51, %v5084_v5  ;;  %v3559_v0 = vadd.f32 %v1038_v52, %v231_v42  ;;  %v3560_v1 = vadd.f32 %v1042_v53, %v232_v43  ;;  %v739_v36 = vld [vmem:[%s5072_s3 + $0x20] sm:$0xf]  ;;  %v249_v41 = vld [vmem:[%s5064_s23 + $0xf0] sm:$0xff] }
  0x70   : > { %v3561_v6 = vadd.f32 %v1046_v54, %v233_v44  ;;  %v3562_v7 = vadd.f32 %v1050_v55, %v234_v49  ;;  %v3563_v11 = vadd.f32 %v1054_v59, %v235_v50  ;;  %v3564_v12 = vadd.f32 %v1058_v60, %v236_v56  ;;  %v250_v42 = vld [vmem:[%s5064_s23 + $0xf8] sm:$0xff]  ;;  %v251_v43 = vld [vmem:[%s5064_s23 + $0x100] sm:$0xff]  ;;  %v252_v48 = vld [vmem:[%s5064_s23 + $0x108] sm:$0xff] }
  0x71   : > { %v3565_v13 = vadd.f32 %v1062_v61, %v237_v57  ;;  %v3566_v14 = vadd.f32 %v1066_v62, %v238_v58  ;;  %4071 = vst [vmem:[%s5111_s20 + $0x60] sm:$0xff] %v3559_v0  ;;  %4072 = vst [vmem:[%s5111_s20 + $0x68] sm:$0xff] %v3560_v1  ;;  %v1070_v18 = vrot.slane %v736_v63, %v5078_v2  ;;  %v253_v49 = vld [vmem:[%s5064_s23 + $0x110] sm:$0xff]  ;;  %v254_v50 = vld [vmem:[%s5064_s23 + $0x118] sm:$0xff] }
  0x72   : > { %4073 = vst [vmem:[%s5111_s20 + $0x70] sm:$0xff] %v3561_v6  ;;  %4074 = vst [vmem:[%s5111_s20 + $0x78] sm:$0xff] %v3562_v7  ;;  %v1074_v19 = vrot.slane %v736_v63, %v5080_v3  ;;  %v1078_v20 = vrot.slane %v736_v63, %v5082_v4  ;;  %v1082_v21 = vrot.slane %v736_v63, %v5084_v5  ;;  %v740_v55 = vld [vmem:[%s5072_s3 + $0x24] sm:$0xf]  ;;  %v256_v61 = vld [vmem:[%s5064_s23 + $0x128] sm:$0xff] }
  0x73   : > { %4075 = vst [vmem:[%s5111_s20 + $0x80] sm:$0xff] %v3563_v11  ;;  %4076 = vst [vmem:[%s5111_s20 + $0x88] sm:$0xff] %v3564_v12  ;;  %v1086_v25 = vrot.slane %v737_v10, %v5078_v2  ;;  %v1090_v26 = vrot.slane %v737_v10, %v5080_v3  ;;  %v1094_v27 = vrot.slane %v737_v10, %v5082_v4  ;;  %v255_v60 = vld [vmem:[%s5064_s23 + $0x120] sm:$0xff]  ;;  %v741_v62 = vld [vmem:[%s5072_s3 + $0x28] sm:$0xf] }
  0x74   : > { %4077 = vst [vmem:[%s5111_s20 + $0x90] sm:$0xff] %v3565_v13  ;;  %4078 = vst [vmem:[%s5111_s20 + $0x98] sm:$0xff] %v3566_v14  ;;  %v1098_v28 = vrot.slane %v737_v10, %v5084_v5  ;;  %v3567_v30 = vadd.f32 %v1070_v18, %v239_v8  ;;  %v3568_v31 = vadd.f32 %v1074_v19, %v240_v9  ;;  %v257_v7 = vld [vmem:[%s5064_s23 + $0x130] sm:$0xff]  ;;  %v258_v8 = vld [vmem:[%s5064_s23 + $0x138] sm:$0xff] }
  0x75   : > { %v3569_v32 = vadd.f32 %v1078_v20, %v241_v15  ;;  %v3570_v33 = vadd.f32 %v1082_v21, %v242_v16  ;;  %v3571_v37 = vadd.f32 %v1086_v25, %v243_v17  ;;  %v3572_v38 = vadd.f32 %v1090_v26, %v244_v22  ;;  %v259_v9 = vld [vmem:[%s5064_s23 + $0x140] sm:$0xff]  ;;  %v260_v14 = vld [vmem:[%s5064_s23 + $0x148] sm:$0xff]  ;;  %v261_v15 = vld [vmem:[%s5064_s23 + $0x150] sm:$0xff] }
  0x76   : > { %v3573_v39 = vadd.f32 %v1094_v27, %v245_v23  ;;  %v3574_v40 = vadd.f32 %v1098_v28, %v246_v24  ;;  %4079 = vst [vmem:[%s5111_s20 + $0xa0] sm:$0xff] %v3567_v30  ;;  %4080 = vst [vmem:[%s5111_s20 + $0xa8] sm:$0xff] %v3568_v31  ;;  %v1102_v44 = vrot.slane %v738_v29, %v5078_v2  ;;  %v262_v16 = vld [vmem:[%s5064_s23 + $0x158] sm:$0xff]  ;;  %v742_v21 = vld [vmem:[%s5072_s3 + $0x2c] sm:$0xf] }
  0x77   : > { %4081 = vst [vmem:[%s5111_s20 + $0xb0] sm:$0xff] %v3569_v32  ;;  %4082 = vst [vmem:[%s5111_s20 + $0xb8] sm:$0xff] %v3570_v33  ;;  %v1106_v45 = vrot.slane %v738_v29, %v5080_v3  ;;  %v1110_v46 = vrot.slane %v738_v29, %v5082_v4  ;;  %v1114_v47 = vrot.slane %v738_v29, %v5084_v5  ;;  %v263_v26 = vld [vmem:[%s5064_s23 + $0x160] sm:$0xff]  ;;  %v264_v27 = vld [vmem:[%s5064_s23 + $0x168] sm:$0xff] }
  0x78   : > { %4083 = vst [vmem:[%s5111_s20 + $0xc0] sm:$0xff] %v3571_v37  ;;  %4084 = vst [vmem:[%s5111_s20 + $0xc8] sm:$0xff] %v3572_v38  ;;  %v1118_v51 = vrot.slane %v739_v36, %v5078_v2  ;;  %v1122_v52 = vrot.slane %v739_v36, %v5080_v3  ;;  %v1126_v53 = vrot.slane %v739_v36, %v5082_v4  ;;  %v743_v28 = vld [vmem:[%s5072_s3 + $0x30] sm:$0xf] }
  0x79   : > { %4085 = vst [vmem:[%s5111_s20 + $0xd0] sm:$0xff] %v3573_v39  ;;  %4086 = vst [vmem:[%s5111_s20 + $0xd8] sm:$0xff] %v3574_v40  ;;  %v1130_v54 = vrot.slane %v739_v36, %v5084_v5  ;;  %v3575_v56 = vadd.f32 %v1102_v44, %v247_v34  ;;  %v3576_v57 = vadd.f32 %v1106_v45, %v248_v35  ;;  %v265_v33 = vld [vmem:[%s5064_s23 + $0x170] sm:$0xff]  ;;  %v266_v34 = vld [vmem:[%s5064_s23 + $0x178] sm:$0xff] }
  0x7a   : > { %v3577_v58 = vadd.f32 %v1110_v46, %v249_v41  ;;  %v3578_v59 = vadd.f32 %v1114_v47, %v250_v42  ;;  %v3579_v63 = vadd.f32 %v1118_v51, %v251_v43  ;;  %v3580_v0 = vadd.f32 %v1122_v52, %v252_v48  ;;  %v267_v35 = vld [vmem:[%s5064_s23 + $0x180] sm:$0xff]  ;;  %v268_v40 = vld [vmem:[%s5064_s23 + $0x188] sm:$0xff]  ;;  %v269_v41 = vld [vmem:[%s5064_s23 + $0x190] sm:$0xff] }
  0x7b   : > { %v3581_v1 = vadd.f32 %v1126_v53, %v253_v49  ;;  %v3582_v6 = vadd.f32 %v1130_v54, %v254_v50  ;;  %4087 = vst [vmem:[%s5111_s20 + $0xe0] sm:$0xff] %v3575_v56  ;;  %4088 = vst [vmem:[%s5111_s20 + $0xe8] sm:$0xff] %v3576_v57  ;;  %v1134_v10 = vrot.slane %v740_v55, %v5078_v2  ;;  %v270_v42 = vld [vmem:[%s5064_s23 + $0x198] sm:$0xff]  ;;  %v744_v47 = vld [vmem:[%s5072_s3 + $0x34] sm:$0xf] }
  0x7c   : > { %4089 = vst [vmem:[%s5111_s20 + $0xf0] sm:$0xff] %v3577_v58  ;;  %4090 = vst [vmem:[%s5111_s20 + $0xf8] sm:$0xff] %v3578_v59  ;;  %v1138_v11 = vrot.slane %v740_v55, %v5080_v3  ;;  %v1142_v12 = vrot.slane %v740_v55, %v5082_v4  ;;  %v1146_v13 = vrot.slane %v740_v55, %v5084_v5  ;;  %v271_v52 = vld [vmem:[%s5064_s23 + $0x1a0] sm:$0xff]  ;;  %v272_v53 = vld [vmem:[%s5064_s23 + $0x1a8] sm:$0xff] }
  0x7d   : > { %4091 = vst [vmem:[%s5111_s20 + $0x100] sm:$0xff] %v3579_v63  ;;  %4092 = vst [vmem:[%s5111_s20 + $0x108] sm:$0xff] %v3580_v0  ;;  %v1150_v17 = vrot.slane %v741_v62, %v5078_v2  ;;  %v1154_v18 = vrot.slane %v741_v62, %v5080_v3  ;;  %v1158_v19 = vrot.slane %v741_v62, %v5082_v4  ;;  %v745_v54 = vld [vmem:[%s5072_s3 + $0x38] sm:$0xf]  ;;  %v273_v59 = vld [vmem:[%s5064_s23 + $0x1b0] sm:$0xff] }
  0x7e   : > { %4093 = vst [vmem:[%s5111_s20 + $0x110] sm:$0xff] %v3581_v1  ;;  %4094 = vst [vmem:[%s5111_s20 + $0x118] sm:$0xff] %v3582_v6  ;;  %v1162_v20 = vrot.slane %v741_v62, %v5084_v5  ;;  %v3583_v22 = vadd.f32 %v1134_v10, %v255_v60  ;;  %v3584_v23 = vadd.f32 %v1138_v11, %v256_v61  ;;  %v274_v60 = vld [vmem:[%s5064_s23 + $0x1b8] sm:$0xff]  ;;  %v275_v61 = vld [vmem:[%s5064_s23 + $0x1c0] sm:$0xff] }
  0x7f   : > { %v3585_v24 = vadd.f32 %v1142_v12, %v257_v7  ;;  %v3586_v25 = vadd.f32 %v1146_v13, %v258_v8  ;;  %v3587_v29 = vadd.f32 %v1150_v17, %v259_v9  ;;  %v3588_v30 = vadd.f32 %v1154_v18, %v260_v14  ;;  %v276_v6 = vld [vmem:[%s5064_s23 + $0x1c8] sm:$0xff]  ;;  %v277_v7 = vld [vmem:[%s5064_s23 + $0x1d0] sm:$0xff]  ;;  %v278_v8 = vld [vmem:[%s5064_s23 + $0x1d8] sm:$0xff] }
  0x80   : > { %v3589_v31 = vadd.f32 %v1158_v19, %v261_v15  ;;  %v3590_v32 = vadd.f32 %v1162_v20, %v262_v16  ;;  %4095 = vst [vmem:[%s5111_s20 + $0x120] sm:$0xff] %v3583_v22  ;;  %4096 = vst [vmem:[%s5111_s20 + $0x128] sm:$0xff] %v3584_v23  ;;  %v1166_v36 = vrot.slane %v742_v21, %v5078_v2  ;;  %v746_v13 = vld [vmem:[%s5072_s3 + $0x3c] sm:$0xf]  ;;  %v279_v18 = vld [vmem:[%s5064_s23 + $0x1e0] sm:$0xff] }
  0x81   : > { %4097 = vst [vmem:[%s5111_s20 + $0x130] sm:$0xff] %v3585_v24  ;;  %4098 = vst [vmem:[%s5111_s20 + $0x138] sm:$0xff] %v3586_v25  ;;  %v1170_v37 = vrot.slane %v742_v21, %v5080_v3  ;;  %v1174_v38 = vrot.slane %v742_v21, %v5082_v4  ;;  %v1178_v39 = vrot.slane %v742_v21, %v5084_v5  ;;  %v280_v19 = vld [vmem:[%s5064_s23 + $0x1e8] sm:$0xff]  ;;  %v747_v20 = vld [vmem:[%s5072_s3 + $0x40] sm:$0xf] }
  0x82   : > { %4099 = vst [vmem:[%s5111_s20 + $0x140] sm:$0xff] %v3587_v29  ;;  %4100 = vst [vmem:[%s5111_s20 + $0x148] sm:$0xff] %v3588_v30  ;;  %v1182_v43 = vrot.slane %v743_v28, %v5078_v2  ;;  %v1186_v44 = vrot.slane %v743_v28, %v5080_v3  ;;  %v1190_v45 = vrot.slane %v743_v28, %v5082_v4  ;;  %v281_v25 = vld [vmem:[%s5064_s23 + $0x1f0] sm:$0xff] }
  0x83   : > { %4101 = vst [vmem:[%s5111_s20 + $0x150] sm:$0xff] %v3589_v31  ;;  %4102 = vst [vmem:[%s5111_s20 + $0x158] sm:$0xff] %v3590_v32  ;;  %v1194_v46 = vrot.slane %v743_v28, %v5084_v5  ;;  %v3591_v48 = vadd.f32 %v1166_v36, %v263_v26  ;;  %v3592_v49 = vadd.f32 %v1170_v37, %v264_v27  ;;  %v282_v26 = vld [vmem:[%s5064_s23 + $0x1f8] sm:$0xff]  ;;  %v283_v27 = vld [vmem:[%s5064_s23 + $0x200] sm:$0xff] }
  0x84   : > { %v3593_v50 = vadd.f32 %v1174_v38, %v265_v33  ;;  %v3594_v51 = vadd.f32 %v1178_v39, %v266_v34  ;;  %v3595_v55 = vadd.f32 %v1182_v43, %v267_v35  ;;  %v3596_v56 = vadd.f32 %v1186_v44, %v268_v40  ;;  %v284_v32 = vld [vmem:[%s5064_s23 + $0x208] sm:$0xff]  ;;  %v285_v33 = vld [vmem:[%s5064_s23 + $0x210] sm:$0xff]  ;;  %v286_v34 = vld [vmem:[%s5064_s23 + $0x218] sm:$0xff] }
  0x85   : > { %v3597_v57 = vadd.f32 %v1190_v45, %v269_v41  ;;  %v3598_v58 = vadd.f32 %v1194_v46, %v270_v42  ;;  %4103 = vst [vmem:[%s5111_s20 + $0x160] sm:$0xff] %v3591_v48  ;;  %4104 = vst [vmem:[%s5111_s20 + $0x168] sm:$0xff] %v3592_v49  ;;  %v1198_v62 = vrot.slane %v744_v47, %v5078_v2  ;;  %v748_v39 = vld [vmem:[%s5072_s3 + $0x44] sm:$0xf]  ;;  %v288_v45 = vld [vmem:[%s5064_s23 + $0x228] sm:$0xff] }
  0x86   : > { %4105 = vst [vmem:[%s5111_s20 + $0x170] sm:$0xff] %v3593_v50  ;;  %4106 = vst [vmem:[%s5111_s20 + $0x178] sm:$0xff] %v3594_v51  ;;  %v1202_v63 = vrot.slane %v744_v47, %v5080_v3  ;;  %v1206_v0 = vrot.slane %v744_v47, %v5082_v4  ;;  %v1210_v1 = vrot.slane %v744_v47, %v5084_v5  ;;  %v287_v44 = vld [vmem:[%s5064_s23 + $0x220] sm:$0xff]  ;;  %v749_v46 = vld [vmem:[%s5072_s3 + $0x48] sm:$0xf] }
  0x87   : > { %4107 = vst [vmem:[%s5111_s20 + $0x180] sm:$0xff] %v3595_v55  ;;  %4108 = vst [vmem:[%s5111_s20 + $0x188] sm:$0xff] %v3596_v56  ;;  %v1214_v9 = vrot.slane %v745_v54, %v5078_v2  ;;  %v1218_v10 = vrot.slane %v745_v54, %v5080_v3  ;;  %v1222_v11 = vrot.slane %v745_v54, %v5082_v4  ;;  %v289_v51 = vld [vmem:[%s5064_s23 + $0x230] sm:$0xff] }
  0x88   : > { %4109 = vst [vmem:[%s5111_s20 + $0x190] sm:$0xff] %v3597_v57  ;;  %4110 = vst [vmem:[%s5111_s20 + $0x198] sm:$0xff] %v3598_v58  ;;  %v1226_v12 = vrot.slane %v745_v54, %v5084_v5  ;;  %v3599_v14 = vadd.f32 %v1198_v62, %v271_v52  ;;  %v3600_v15 = vadd.f32 %v1202_v63, %v272_v53  ;;  %v290_v52 = vld [vmem:[%s5064_s23 + $0x238] sm:$0xff]  ;;  %v291_v53 = vld [vmem:[%s5064_s23 + $0x240] sm:$0xff] }
  0x89   : > { %v3601_v16 = vadd.f32 %v1206_v0, %v273_v59  ;;  %v3602_v17 = vadd.f32 %v1210_v1, %v274_v60  ;;  %v3603_v21 = vadd.f32 %v1214_v9, %v275_v61  ;;  %v3604_v22 = vadd.f32 %v1218_v10, %v276_v6  ;;  %v292_v58 = vld [vmem:[%s5064_s23 + $0x248] sm:$0xff]  ;;  %v293_v59 = vld [vmem:[%s5064_s23 + $0x250] sm:$0xff]  ;;  %v294_v60 = vld [vmem:[%s5064_s23 + $0x258] sm:$0xff] }
  0x8a   : > { %v3605_v23 = vadd.f32 %v1222_v11, %v277_v7  ;;  %v3606_v24 = vadd.f32 %v1226_v12, %v278_v8  ;;  %4111 = vst [vmem:[%s5111_s20 + $0x1a0] sm:$0xff] %v3599_v14  ;;  %4112 = vst [vmem:[%s5111_s20 + $0x1a8] sm:$0xff] %v3600_v15  ;;  %v1230_v28 = vrot.slane %v746_v13, %v5078_v2  ;;  %v750_v1 = vld [vmem:[%s5072_s3 + $0x4c] sm:$0xf]  ;;  %v295_v10 = vld [vmem:[%s5064_s23 + $0x260] sm:$0xff] }
  0x8b   : > { %4113 = vst [vmem:[%s5111_s20 + $0x1b0] sm:$0xff] %v3601_v16  ;;  %4114 = vst [vmem:[%s5111_s20 + $0x1b8] sm:$0xff] %v3602_v17  ;;  %v1234_v29 = vrot.slane %v746_v13, %v5080_v3  ;;  %v1238_v30 = vrot.slane %v746_v13, %v5082_v4  ;;  %v1242_v31 = vrot.slane %v746_v13, %v5084_v5  ;;  %v296_v11 = vld [vmem:[%s5064_s23 + $0x268] sm:$0xff]  ;;  %v751_v12 = vld [vmem:[%s5072_s3 + $0x50] sm:$0xf] }
  0x8c   : > { %4115 = vst [vmem:[%s5111_s20 + $0x1c0] sm:$0xff] %v3603_v21  ;;  %4116 = vst [vmem:[%s5111_s20 + $0x1c8] sm:$0xff] %v3604_v22  ;;  %v1246_v35 = vrot.slane %v747_v20, %v5078_v2  ;;  %v1250_v36 = vrot.slane %v747_v20, %v5080_v3  ;;  %v1254_v37 = vrot.slane %v747_v20, %v5082_v4  ;;  %v297_v17 = vld [vmem:[%s5064_s23 + $0x270] sm:$0xff] }
  0x8d   : > { %4117 = vst [vmem:[%s5111_s20 + $0x1d0] sm:$0xff] %v3605_v23  ;;  %4118 = vst [vmem:[%s5111_s20 + $0x1d8] sm:$0xff] %v3606_v24  ;;  %v1258_v38 = vrot.slane %v747_v20, %v5084_v5  ;;  %v3607_v40 = vadd.f32 %v1230_v28, %v279_v18  ;;  %v3608_v41 = vadd.f32 %v1234_v29, %v280_v19  ;;  %v298_v18 = vld [vmem:[%s5064_s23 + $0x278] sm:$0xff]  ;;  %v299_v19 = vld [vmem:[%s5064_s23 + $0x280] sm:$0xff] }
  0x8e   : > { %v3609_v42 = vadd.f32 %v1238_v30, %v281_v25  ;;  %v3610_v43 = vadd.f32 %v1242_v31, %v282_v26  ;;  %v3611_v47 = vadd.f32 %v1246_v35, %v283_v27  ;;  %v3612_v48 = vadd.f32 %v1250_v36, %v284_v32  ;;  %v300_v24 = vld [vmem:[%s5064_s23 + $0x288] sm:$0xff]  ;;  %v301_v25 = vld [vmem:[%s5064_s23 + $0x290] sm:$0xff]  ;;  %v302_v26 = vld [vmem:[%s5064_s23 + $0x298] sm:$0xff] }
  0x8f   : > { %v3613_v49 = vadd.f32 %v1254_v37, %v285_v33  ;;  %v3614_v50 = vadd.f32 %v1258_v38, %v286_v34  ;;  %4119 = vst [vmem:[%s5111_s20 + $0x1e0] sm:$0xff] %v3607_v40  ;;  %4120 = vst [vmem:[%s5111_s20 + $0x1e8] sm:$0xff] %v3608_v41  ;;  %v1262_v54 = vrot.slane %v748_v39, %v5078_v2  ;;  %v752_v31 = vld [vmem:[%s5072_s3 + $0x54] sm:$0xf]  ;;  %v303_v36 = vld [vmem:[%s5064_s23 + $0x2a0] sm:$0xff] }
  0x90   : > { %4121 = vst [vmem:[%s5111_s20 + $0x1f0] sm:$0xff] %v3609_v42  ;;  %4122 = vst [vmem:[%s5111_s20 + $0x1f8] sm:$0xff] %v3610_v43  ;;  %v1266_v55 = vrot.slane %v748_v39, %v5080_v3  ;;  %v1270_v56 = vrot.slane %v748_v39, %v5082_v4  ;;  %v1274_v57 = vrot.slane %v748_v39, %v5084_v5  ;;  %v304_v37 = vld [vmem:[%s5064_s23 + $0x2a8] sm:$0xff]  ;;  %v753_v38 = vld [vmem:[%s5072_s3 + $0x58] sm:$0xf] }
  0x91   : > { %4123 = vst [vmem:[%s5111_s20 + $0x200] sm:$0xff] %v3611_v47  ;;  %4124 = vst [vmem:[%s5111_s20 + $0x208] sm:$0xff] %v3612_v48  ;;  %v1278_v61 = vrot.slane %v749_v46, %v5078_v2  ;;  %v1282_v62 = vrot.slane %v749_v46, %v5080_v3  ;;  %v1286_v63 = vrot.slane %v749_v46, %v5082_v4  ;;  %v305_v43 = vld [vmem:[%s5064_s23 + $0x2b0] sm:$0xff] }
  0x92   : > { %4125 = vst [vmem:[%s5111_s20 + $0x210] sm:$0xff] %v3613_v49  ;;  %4126 = vst [vmem:[%s5111_s20 + $0x218] sm:$0xff] %v3614_v50  ;;  %v1290_v0 = vrot.slane %v749_v46, %v5084_v5  ;;  %v3615_v6 = vadd.f32 %v1262_v54, %v287_v44  ;;  %v3616_v7 = vadd.f32 %v1266_v55, %v288_v45  ;;  %v306_v44 = vld [vmem:[%s5064_s23 + $0x2b8] sm:$0xff]  ;;  %v307_v45 = vld [vmem:[%s5064_s23 + $0x2c0] sm:$0xff] }
  0x93   : > { %v3617_v8 = vadd.f32 %v1270_v56, %v289_v51  ;;  %v3618_v9 = vadd.f32 %v1274_v57, %v290_v52  ;;  %v3619_v13 = vadd.f32 %v1278_v61, %v291_v53  ;;  %v3620_v14 = vadd.f32 %v1282_v62, %v292_v58  ;;  %v308_v50 = vld [vmem:[%s5064_s23 + $0x2c8] sm:$0xff]  ;;  %v309_v51 = vld [vmem:[%s5064_s23 + $0x2d0] sm:$0xff]  ;;  %v310_v52 = vld [vmem:[%s5064_s23 + $0x2d8] sm:$0xff] }
  0x94   : > { %v3621_v15 = vadd.f32 %v1286_v63, %v293_v59  ;;  %v3622_v16 = vadd.f32 %v1290_v0, %v294_v60  ;;  %4127 = vst [vmem:[%s5111_s20 + $0x220] sm:$0xff] %v3615_v6  ;;  %4128 = vst [vmem:[%s5111_s20 + $0x228] sm:$0xff] %v3616_v7  ;;  %v1294_v20 = vrot.slane %v750_v1, %v5078_v2  ;;  %v754_v57 = vld [vmem:[%s5072_s3 + $0x5c] sm:$0xf]  ;;  %v311_v62 = vld [vmem:[%s5064_s23 + $0x2e0] sm:$0xff] }
  0x95   : > { %4129 = vst [vmem:[%s5111_s20 + $0x230] sm:$0xff] %v3617_v8  ;;  %4130 = vst [vmem:[%s5111_s20 + $0x238] sm:$0xff] %v3618_v9  ;;  %v1298_v21 = vrot.slane %v750_v1, %v5080_v3  ;;  %v1302_v22 = vrot.slane %v750_v1, %v5082_v4  ;;  %v1306_v23 = vrot.slane %v750_v1, %v5084_v5  ;;  %v312_v63 = vld [vmem:[%s5064_s23 + $0x2e8] sm:$0xff]  ;;  %v755_v0 = vld [vmem:[%s5072_s3 + $0x60] sm:$0xf] }
  0x96   : > { %4131 = vst [vmem:[%s5111_s20 + $0x240] sm:$0xff] %v3619_v13  ;;  %4132 = vst [vmem:[%s5111_s20 + $0x248] sm:$0xff] %v3620_v14  ;;  %v1310_v27 = vrot.slane %v751_v12, %v5078_v2  ;;  %v1314_v28 = vrot.slane %v751_v12, %v5080_v3  ;;  %v1318_v29 = vrot.slane %v751_v12, %v5082_v4  ;;  %v313_v9 = vld [vmem:[%s5064_s23 + $0x2f0] sm:$0xff] }
  0x97   : > { %4133 = vst [vmem:[%s5111_s20 + $0x250] sm:$0xff] %v3621_v15  ;;  %4134 = vst [vmem:[%s5111_s20 + $0x258] sm:$0xff] %v3622_v16  ;;  %v1322_v30 = vrot.slane %v751_v12, %v5084_v5  ;;  %v3623_v32 = vadd.f32 %v1294_v20, %v295_v10  ;;  %v3624_v33 = vadd.f32 %v1298_v21, %v296_v11  ;;  %v314_v10 = vld [vmem:[%s5064_s23 + $0x2f8] sm:$0xff]  ;;  %v315_v11 = vld [vmem:[%s5064_s23 + $0x300] sm:$0xff] }
  0x98   : > { %v3625_v34 = vadd.f32 %v1302_v22, %v297_v17  ;;  %v3626_v35 = vadd.f32 %v1306_v23, %v298_v18  ;;  %v3627_v39 = vadd.f32 %v1310_v27, %v299_v19  ;;  %v3628_v40 = vadd.f32 %v1314_v28, %v300_v24  ;;  %v316_v16 = vld [vmem:[%s5064_s23 + $0x308] sm:$0xff]  ;;  %v317_v17 = vld [vmem:[%s5064_s23 + $0x310] sm:$0xff]  ;;  %v318_v18 = vld [vmem:[%s5064_s23 + $0x318] sm:$0xff] }
  0x99   : > { %v3629_v41 = vadd.f32 %v1318_v29, %v301_v25  ;;  %v3630_v42 = vadd.f32 %v1322_v30, %v302_v26  ;;  %4135 = vst [vmem:[%s5111_s20 + $0x260] sm:$0xff] %v3623_v32  ;;  %4136 = vst [vmem:[%s5111_s20 + $0x268] sm:$0xff] %v3624_v33  ;;  %v1326_v46 = vrot.slane %v752_v31, %v5078_v2  ;;  %v756_v23 = vld [vmem:[%s5072_s3 + $0x64] sm:$0xf]  ;;  %v320_v29 = vld [vmem:[%s5064_s23 + $0x328] sm:$0xff] }
  0x9a   : > { %4137 = vst [vmem:[%s5111_s20 + $0x270] sm:$0xff] %v3625_v34  ;;  %4138 = vst [vmem:[%s5111_s20 + $0x278] sm:$0xff] %v3626_v35  ;;  %v1330_v47 = vrot.slane %v752_v31, %v5080_v3  ;;  %v1334_v48 = vrot.slane %v752_v31, %v5082_v4  ;;  %v1338_v49 = vrot.slane %v752_v31, %v5084_v5  ;;  %v319_v28 = vld [vmem:[%s5064_s23 + $0x320] sm:$0xff]  ;;  %v757_v30 = vld [vmem:[%s5072_s3 + $0x68] sm:$0xf] }
  0x9b   : > { %4139 = vst [vmem:[%s5111_s20 + $0x280] sm:$0xff] %v3627_v39  ;;  %4140 = vst [vmem:[%s5111_s20 + $0x288] sm:$0xff] %v3628_v40  ;;  %v1342_v53 = vrot.slane %v753_v38, %v5078_v2  ;;  %v1346_v54 = vrot.slane %v753_v38, %v5080_v3  ;;  %v1350_v55 = vrot.slane %v753_v38, %v5082_v4  ;;  %v321_v35 = vld [vmem:[%s5064_s23 + $0x330] sm:$0xff] }
  0x9c   : > { %4141 = vst [vmem:[%s5111_s20 + $0x290] sm:$0xff] %v3629_v41  ;;  %4142 = vst [vmem:[%s5111_s20 + $0x298] sm:$0xff] %v3630_v42  ;;  %v1354_v56 = vrot.slane %v753_v38, %v5084_v5  ;;  %v3631_v58 = vadd.f32 %v1326_v46, %v303_v36  ;;  %v3632_v59 = vadd.f32 %v1330_v47, %v304_v37  ;;  %v322_v36 = vld [vmem:[%s5064_s23 + $0x338] sm:$0xff]  ;;  %v323_v37 = vld [vmem:[%s5064_s23 + $0x340] sm:$0xff] }
  0x9d   : > { %v3633_v60 = vadd.f32 %v1334_v48, %v305_v43  ;;  %v3634_v61 = vadd.f32 %v1338_v49, %v306_v44  ;;  %v3635_v1 = vadd.f32 %v1342_v53, %v307_v45  ;;  %v3636_v6 = vadd.f32 %v1346_v54, %v308_v50  ;;  %v324_v42 = vld [vmem:[%s5064_s23 + $0x348] sm:$0xff]  ;;  %v325_v43 = vld [vmem:[%s5064_s23 + $0x350] sm:$0xff]  ;;  %v326_v44 = vld [vmem:[%s5064_s23 + $0x358] sm:$0xff] }
  0x9e   : > { %v3637_v7 = vadd.f32 %v1350_v55, %v309_v51  ;;  %v3638_v8 = vadd.f32 %v1354_v56, %v310_v52  ;;  %4143 = vst [vmem:[%s5111_s20 + $0x2a0] sm:$0xff] %v3631_v58  ;;  %4144 = vst [vmem:[%s5111_s20 + $0x2a8] sm:$0xff] %v3632_v59  ;;  %v1358_v12 = vrot.slane %v754_v57, %v5078_v2  ;;  %v758_v49 = vld [vmem:[%s5072_s3 + $0x6c] sm:$0xf]  ;;  %v327_v54 = vld [vmem:[%s5064_s23 + $0x360] sm:$0xff] }
  0x9f   : > { %4145 = vst [vmem:[%s5111_s20 + $0x2b0] sm:$0xff] %v3633_v60  ;;  %4146 = vst [vmem:[%s5111_s20 + $0x2b8] sm:$0xff] %v3634_v61  ;;  %v1362_v13 = vrot.slane %v754_v57, %v5080_v3  ;;  %v1366_v14 = vrot.slane %v754_v57, %v5082_v4  ;;  %v1370_v15 = vrot.slane %v754_v57, %v5084_v5  ;;  %v328_v55 = vld [vmem:[%s5064_s23 + $0x368] sm:$0xff]  ;;  %v759_v56 = vld [vmem:[%s5072_s3 + $0x70] sm:$0xf] }
  0xa0   : > { %4147 = vst [vmem:[%s5111_s20 + $0x2c0] sm:$0xff] %v3635_v1  ;;  %4148 = vst [vmem:[%s5111_s20 + $0x2c8] sm:$0xff] %v3636_v6  ;;  %v1374_v19 = vrot.slane %v755_v0, %v5078_v2  ;;  %v1378_v20 = vrot.slane %v755_v0, %v5080_v3  ;;  %v1382_v21 = vrot.slane %v755_v0, %v5082_v4  ;;  %v329_v61 = vld [vmem:[%s5064_s23 + $0x370] sm:$0xff] }
  0xa1   : > { %4149 = vst [vmem:[%s5111_s20 + $0x2d0] sm:$0xff] %v3637_v7  ;;  %4150 = vst [vmem:[%s5111_s20 + $0x2d8] sm:$0xff] %v3638_v8  ;;  %v1386_v22 = vrot.slane %v755_v0, %v5084_v5  ;;  %v3639_v24 = vadd.f32 %v1358_v12, %v311_v62  ;;  %v3640_v25 = vadd.f32 %v1362_v13, %v312_v63  ;;  %v330_v62 = vld [vmem:[%s5064_s23 + $0x378] sm:$0xff]  ;;  %v331_v63 = vld [vmem:[%s5064_s23 + $0x380] sm:$0xff] }
  0xa2   : > { %v3641_v26 = vadd.f32 %v1366_v14, %v313_v9  ;;  %v3642_v27 = vadd.f32 %v1370_v15, %v314_v10  ;;  %v3643_v31 = vadd.f32 %v1374_v19, %v315_v11  ;;  %v3644_v32 = vadd.f32 %v1378_v20, %v316_v16  ;;  %v332_v8 = vld [vmem:[%s5064_s23 + $0x388] sm:$0xff]  ;;  %v333_v9 = vld [vmem:[%s5064_s23 + $0x390] sm:$0xff]  ;;  %v334_v10 = vld [vmem:[%s5064_s23 + $0x398] sm:$0xff] }
  0xa3   : > { %v3645_v33 = vadd.f32 %v1382_v21, %v317_v17  ;;  %v3646_v34 = vadd.f32 %v1386_v22, %v318_v18  ;;  %4151 = vst [vmem:[%s5111_s20 + $0x2e0] sm:$0xff] %v3639_v24  ;;  %4152 = vst [vmem:[%s5111_s20 + $0x2e8] sm:$0xff] %v3640_v25  ;;  %v1390_v38 = vrot.slane %v756_v23, %v5078_v2  ;;  %v760_v15 = vld [vmem:[%s5072_s3 + $0x74] sm:$0xf]  ;;  %v335_v20 = vld [vmem:[%s5064_s23 + $0x3a0] sm:$0xff] }
  0xa4   : > { %4153 = vst [vmem:[%s5111_s20 + $0x2f0] sm:$0xff] %v3641_v26  ;;  %4154 = vst [vmem:[%s5111_s20 + $0x2f8] sm:$0xff] %v3642_v27  ;;  %v1394_v39 = vrot.slane %v756_v23, %v5080_v3  ;;  %v1398_v40 = vrot.slane %v756_v23, %v5082_v4  ;;  %v1402_v41 = vrot.slane %v756_v23, %v5084_v5  ;;  %v336_v21 = vld [vmem:[%s5064_s23 + $0x3a8] sm:$0xff]  ;;  %v761_v22 = vld [vmem:[%s5072_s3 + $0x78] sm:$0xf] }
  0xa5   : > { %4155 = vst [vmem:[%s5111_s20 + $0x300] sm:$0xff] %v3643_v31  ;;  %4156 = vst [vmem:[%s5111_s20 + $0x308] sm:$0xff] %v3644_v32  ;;  %v1406_v45 = vrot.slane %v757_v30, %v5078_v2  ;;  %v1410_v46 = vrot.slane %v757_v30, %v5080_v3  ;;  %v1414_v47 = vrot.slane %v757_v30, %v5082_v4  ;;  %v337_v27 = vld [vmem:[%s5064_s23 + $0x3b0] sm:$0xff] }
  0xa6   : > { %4157 = vst [vmem:[%s5111_s20 + $0x310] sm:$0xff] %v3645_v33  ;;  %4158 = vst [vmem:[%s5111_s20 + $0x318] sm:$0xff] %v3646_v34  ;;  %v1418_v48 = vrot.slane %v757_v30, %v5084_v5  ;;  %v3647_v50 = vadd.f32 %v1390_v38, %v319_v28  ;;  %v3648_v51 = vadd.f32 %v1394_v39, %v320_v29  ;;  %v338_v28 = vld [vmem:[%s5064_s23 + $0x3b8] sm:$0xff]  ;;  %v339_v29 = vld [vmem:[%s5064_s23 + $0x3c0] sm:$0xff] }
  0xa7   : > { %v3649_v52 = vadd.f32 %v1398_v40, %v321_v35  ;;  %v3650_v53 = vadd.f32 %v1402_v41, %v322_v36  ;;  %v3651_v57 = vadd.f32 %v1406_v45, %v323_v37  ;;  %v3652_v58 = vadd.f32 %v1410_v46, %v324_v42  ;;  %v340_v34 = vld [vmem:[%s5064_s23 + $0x3c8] sm:$0xff]  ;;  %v341_v35 = vld [vmem:[%s5064_s23 + $0x3d0] sm:$0xff]  ;;  %v342_v36 = vld [vmem:[%s5064_s23 + $0x3d8] sm:$0xff] }
  0xa8   : > { %v3653_v59 = vadd.f32 %v1414_v47, %v325_v43  ;;  %v3654_v60 = vadd.f32 %v1418_v48, %v326_v44  ;;  %4159 = vst [vmem:[%s5111_s20 + $0x320] sm:$0xff] %v3647_v50  ;;  %4160 = vst [vmem:[%s5111_s20 + $0x328] sm:$0xff] %v3648_v51  ;;  %v1422_v0 = vrot.slane %v758_v49, %v5078_v2  ;;  %v762_v41 = vld [vmem:[%s5072_s3 + $0x7c] sm:$0xf]  ;;  %v343_v46 = vld [vmem:[%s5064_s23 + $0x3e0] sm:$0xff] }
  0xa9   : > { %4161 = vst [vmem:[%s5111_s20 + $0x330] sm:$0xff] %v3649_v52  ;;  %4162 = vst [vmem:[%s5111_s20 + $0x338] sm:$0xff] %v3650_v53  ;;  %v1426_v1 = vrot.slane %v758_v49, %v5080_v3  ;;  %v1430_v6 = vrot.slane %v758_v49, %v5082_v4  ;;  %v1434_v7 = vrot.slane %v758_v49, %v5084_v5  ;;  %v344_v47 = vld [vmem:[%s5064_s23 + $0x3e8] sm:$0xff]  ;;  %v763_v48 = vld [vmem:[%s5072_s3 + $0x80] sm:$0xf] }
  0xaa   : > { %4163 = vst [vmem:[%s5111_s20 + $0x340] sm:$0xff] %v3651_v57  ;;  %4164 = vst [vmem:[%s5111_s20 + $0x348] sm:$0xff] %v3652_v58  ;;  %v1438_v11 = vrot.slane %v759_v56, %v5078_v2  ;;  %v1442_v12 = vrot.slane %v759_v56, %v5080_v3  ;;  %v1446_v13 = vrot.slane %v759_v56, %v5082_v4  ;;  %v345_v53 = vld [vmem:[%s5064_s23 + $0x3f0] sm:$0xff] }
  0xab   : > { %4165 = vst [vmem:[%s5111_s20 + $0x350] sm:$0xff] %v3653_v59  ;;  %4166 = vst [vmem:[%s5111_s20 + $0x358] sm:$0xff] %v3654_v60  ;;  %v1450_v14 = vrot.slane %v759_v56, %v5084_v5  ;;  %v3655_v16 = vadd.f32 %v1422_v0, %v327_v54  ;;  %v3656_v17 = vadd.f32 %v1426_v1, %v328_v55  ;;  %v346_v54 = vld [vmem:[%s5064_s23 + $0x3f8] sm:$0xff]  ;;  %v347_v55 = vld [vmem:[%s5064_s23 + $0x400] sm:$0xff] }
  0xac   : > { %v3657_v18 = vadd.f32 %v1430_v6, %v329_v61  ;;  %v3658_v19 = vadd.f32 %v1434_v7, %v330_v62  ;;  %v3659_v23 = vadd.f32 %v1438_v11, %v331_v63  ;;  %v3660_v24 = vadd.f32 %v1442_v12, %v332_v8  ;;  %v348_v60 = vld [vmem:[%s5064_s23 + $0x408] sm:$0xff]  ;;  %v349_v61 = vld [vmem:[%s5064_s23 + $0x410] sm:$0xff]  ;;  %v350_v62 = vld [vmem:[%s5064_s23 + $0x418] sm:$0xff] }
  0xad   : > { %v3661_v25 = vadd.f32 %v1446_v13, %v333_v9  ;;  %v3662_v26 = vadd.f32 %v1450_v14, %v334_v10  ;;  %4167 = vst [vmem:[%s5111_s20 + $0x360] sm:$0xff] %v3655_v16  ;;  %4168 = vst [vmem:[%s5111_s20 + $0x368] sm:$0xff] %v3656_v17  ;;  %v1454_v30 = vrot.slane %v760_v15, %v5078_v2  ;;  %v764_v7 = vld [vmem:[%s5072_s3 + $0x84] sm:$0xf]  ;;  %v352_v13 = vld [vmem:[%s5064_s23 + $0x428] sm:$0xff] }
  0xae   : > { %4169 = vst [vmem:[%s5111_s20 + $0x370] sm:$0xff] %v3657_v18  ;;  %4170 = vst [vmem:[%s5111_s20 + $0x378] sm:$0xff] %v3658_v19  ;;  %v1458_v31 = vrot.slane %v760_v15, %v5080_v3  ;;  %v1462_v32 = vrot.slane %v760_v15, %v5082_v4  ;;  %v1466_v33 = vrot.slane %v760_v15, %v5084_v5  ;;  %v351_v12 = vld [vmem:[%s5064_s23 + $0x420] sm:$0xff]  ;;  %v765_v14 = vld [vmem:[%s5072_s3 + $0x88] sm:$0xf] }
  0xaf   : > { %4171 = vst [vmem:[%s5111_s20 + $0x380] sm:$0xff] %v3659_v23  ;;  %4172 = vst [vmem:[%s5111_s20 + $0x388] sm:$0xff] %v3660_v24  ;;  %v1470_v37 = vrot.slane %v761_v22, %v5078_v2  ;;  %v1474_v38 = vrot.slane %v761_v22, %v5080_v3  ;;  %v1478_v39 = vrot.slane %v761_v22, %v5082_v4  ;;  %v353_v19 = vld [vmem:[%s5064_s23 + $0x430] sm:$0xff] }
  0xb0   : > { %4173 = vst [vmem:[%s5111_s20 + $0x390] sm:$0xff] %v3661_v25  ;;  %4174 = vst [vmem:[%s5111_s20 + $0x398] sm:$0xff] %v3662_v26  ;;  %v1482_v40 = vrot.slane %v761_v22, %v5084_v5  ;;  %v3663_v42 = vadd.f32 %v1454_v30, %v335_v20  ;;  %v3664_v43 = vadd.f32 %v1458_v31, %v336_v21  ;;  %v354_v20 = vld [vmem:[%s5064_s23 + $0x438] sm:$0xff]  ;;  %v355_v21 = vld [vmem:[%s5064_s23 + $0x440] sm:$0xff] }
  0xb1   : > { %v3665_v44 = vadd.f32 %v1462_v32, %v337_v27  ;;  %v3666_v45 = vadd.f32 %v1466_v33, %v338_v28  ;;  %v3667_v49 = vadd.f32 %v1470_v37, %v339_v29  ;;  %v3668_v50 = vadd.f32 %v1474_v38, %v340_v34  ;;  %v356_v26 = vld [vmem:[%s5064_s23 + $0x448] sm:$0xff]  ;;  %v357_v27 = vld [vmem:[%s5064_s23 + $0x450] sm:$0xff]  ;;  %v358_v28 = vld [vmem:[%s5064_s23 + $0x458] sm:$0xff] }
  0xb2   : > { %v3669_v51 = vadd.f32 %v1478_v39, %v341_v35  ;;  %v3670_v52 = vadd.f32 %v1482_v40, %v342_v36  ;;  %4175 = vst [vmem:[%s5111_s20 + $0x3a0] sm:$0xff] %v3663_v42  ;;  %4176 = vst [vmem:[%s5111_s20 + $0x3a8] sm:$0xff] %v3664_v43  ;;  %v1486_v56 = vrot.slane %v762_v41, %v5078_v2  ;;  %v766_v33 = vld [vmem:[%s5072_s3 + $0x8c] sm:$0xf]  ;;  %v359_v38 = vld [vmem:[%s5064_s23 + $0x460] sm:$0xff] }
  0xb3   : > { %4177 = vst [vmem:[%s5111_s20 + $0x3b0] sm:$0xff] %v3665_v44  ;;  %4178 = vst [vmem:[%s5111_s20 + $0x3b8] sm:$0xff] %v3666_v45  ;;  %v1490_v57 = vrot.slane %v762_v41, %v5080_v3  ;;  %v1494_v58 = vrot.slane %v762_v41, %v5082_v4  ;;  %v1498_v59 = vrot.slane %v762_v41, %v5084_v5  ;;  %v360_v39 = vld [vmem:[%s5064_s23 + $0x468] sm:$0xff]  ;;  %v767_v40 = vld [vmem:[%s5072_s3 + $0x90] sm:$0xf] }
  0xb4   : > { %4179 = vst [vmem:[%s5111_s20 + $0x3c0] sm:$0xff] %v3667_v49  ;;  %4180 = vst [vmem:[%s5111_s20 + $0x3c8] sm:$0xff] %v3668_v50  ;;  %v1502_v63 = vrot.slane %v763_v48, %v5078_v2  ;;  %v1506_v0 = vrot.slane %v763_v48, %v5080_v3  ;;  %v1510_v1 = vrot.slane %v763_v48, %v5082_v4  ;;  %v361_v45 = vld [vmem:[%s5064_s23 + $0x470] sm:$0xff] }
  0xb5   : > { %4181 = vst [vmem:[%s5111_s20 + $0x3d0] sm:$0xff] %v3669_v51  ;;  %4182 = vst [vmem:[%s5111_s20 + $0x3d8] sm:$0xff] %v3670_v52  ;;  %v1514_v6 = vrot.slane %v763_v48, %v5084_v5  ;;  %v3671_v8 = vadd.f32 %v1486_v56, %v343_v46  ;;  %v3672_v9 = vadd.f32 %v1490_v57, %v344_v47  ;;  %v362_v46 = vld [vmem:[%s5064_s23 + $0x478] sm:$0xff]  ;;  %v363_v47 = vld [vmem:[%s5064_s23 + $0x480] sm:$0xff] }
  0xb6   : > { %v3673_v10 = vadd.f32 %v1494_v58, %v345_v53  ;;  %v3674_v11 = vadd.f32 %v1498_v59, %v346_v54  ;;  %v3675_v15 = vadd.f32 %v1502_v63, %v347_v55  ;;  %v3676_v16 = vadd.f32 %v1506_v0, %v348_v60  ;;  %v364_v52 = vld [vmem:[%s5064_s23 + $0x488] sm:$0xff]  ;;  %v365_v53 = vld [vmem:[%s5064_s23 + $0x490] sm:$0xff]  ;;  %v366_v54 = vld [vmem:[%s5064_s23 + $0x498] sm:$0xff] }
  0xb7   : > { %v3677_v17 = vadd.f32 %v1510_v1, %v349_v61  ;;  %v3678_v18 = vadd.f32 %v1514_v6, %v350_v62  ;;  %4183 = vst [vmem:[%s5111_s20 + $0x3e0] sm:$0xff] %v3671_v8  ;;  %4184 = vst [vmem:[%s5111_s20 + $0x3e8] sm:$0xff] %v3672_v9  ;;  %v1518_v22 = vrot.slane %v764_v7, %v5078_v2  ;;  %v768_v59 = vld [vmem:[%s5072_s3 + $0x94] sm:$0xf]  ;;  %v367_v0 = vld [vmem:[%s5064_s23 + $0x4a0] sm:$0xff] }
  0xb8   : > { %4185 = vst [vmem:[%s5111_s20 + $0x3f0] sm:$0xff] %v3673_v10  ;;  %4186 = vst [vmem:[%s5111_s20 + $0x3f8] sm:$0xff] %v3674_v11  ;;  %v1522_v23 = vrot.slane %v764_v7, %v5080_v3  ;;  %v1526_v24 = vrot.slane %v764_v7, %v5082_v4  ;;  %v1530_v25 = vrot.slane %v764_v7, %v5084_v5  ;;  %v368_v1 = vld [vmem:[%s5064_s23 + $0x4a8] sm:$0xff]  ;;  %v769_v6 = vld [vmem:[%s5072_s3 + $0x98] sm:$0xf] }
  0xb9   : > { %4187 = vst [vmem:[%s5111_s20 + $0x400] sm:$0xff] %v3675_v15  ;;  %4188 = vst [vmem:[%s5111_s20 + $0x408] sm:$0xff] %v3676_v16  ;;  %v1534_v29 = vrot.slane %v765_v14, %v5078_v2  ;;  %v1538_v30 = vrot.slane %v765_v14, %v5080_v3  ;;  %v1542_v31 = vrot.slane %v765_v14, %v5082_v4  ;;  %v369_v11 = vld [vmem:[%s5064_s23 + $0x4b0] sm:$0xff] }
  0xba   : > { %4189 = vst [vmem:[%s5111_s20 + $0x410] sm:$0xff] %v3677_v17  ;;  %4190 = vst [vmem:[%s5111_s20 + $0x418] sm:$0xff] %v3678_v18  ;;  %v1546_v32 = vrot.slane %v765_v14, %v5084_v5  ;;  %v3679_v34 = vadd.f32 %v1518_v22, %v351_v12  ;;  %v3680_v35 = vadd.f32 %v1522_v23, %v352_v13  ;;  %v370_v12 = vld [vmem:[%s5064_s23 + $0x4b8] sm:$0xff]  ;;  %v371_v13 = vld [vmem:[%s5064_s23 + $0x4c0] sm:$0xff] }
  0xbb   : > { %v3681_v36 = vadd.f32 %v1526_v24, %v353_v19  ;;  %v3682_v37 = vadd.f32 %v1530_v25, %v354_v20  ;;  %v3683_v41 = vadd.f32 %v1534_v29, %v355_v21  ;;  %v3684_v42 = vadd.f32 %v1538_v30, %v356_v26  ;;  %v372_v18 = vld [vmem:[%s5064_s23 + $0x4c8] sm:$0xff]  ;;  %v373_v19 = vld [vmem:[%s5064_s23 + $0x4d0] sm:$0xff]  ;;  %v374_v20 = vld [vmem:[%s5064_s23 + $0x4d8] sm:$0xff] }
  0xbc   : > { %v3685_v43 = vadd.f32 %v1542_v31, %v357_v27  ;;  %v3686_v44 = vadd.f32 %v1546_v32, %v358_v28  ;;  %4191 = vst [vmem:[%s5111_s20 + $0x420] sm:$0xff] %v3679_v34  ;;  %4192 = vst [vmem:[%s5111_s20 + $0x428] sm:$0xff] %v3680_v35  ;;  %v1550_v48 = vrot.slane %v766_v33, %v5078_v2  ;;  %v770_v25 = vld [vmem:[%s5072_s3 + $0x9c] sm:$0xf]  ;;  %v375_v30 = vld [vmem:[%s5064_s23 + $0x4e0] sm:$0xff] }
  0xbd   : > { %4193 = vst [vmem:[%s5111_s20 + $0x430] sm:$0xff] %v3681_v36  ;;  %4194 = vst [vmem:[%s5111_s20 + $0x438] sm:$0xff] %v3682_v37  ;;  %v1554_v49 = vrot.slane %v766_v33, %v5080_v3  ;;  %v1558_v50 = vrot.slane %v766_v33, %v5082_v4  ;;  %v1562_v51 = vrot.slane %v766_v33, %v5084_v5  ;;  %v376_v31 = vld [vmem:[%s5064_s23 + $0x4e8] sm:$0xff]  ;;  %v771_v32 = vld [vmem:[%s5072_s3 + $0xa0] sm:$0xf] }
  0xbe   : > { %4195 = vst [vmem:[%s5111_s20 + $0x440] sm:$0xff] %v3683_v41  ;;  %4196 = vst [vmem:[%s5111_s20 + $0x448] sm:$0xff] %v3684_v42  ;;  %v1566_v55 = vrot.slane %v767_v40, %v5078_v2  ;;  %v1570_v56 = vrot.slane %v767_v40, %v5080_v3  ;;  %v1574_v57 = vrot.slane %v767_v40, %v5082_v4  ;;  %v377_v37 = vld [vmem:[%s5064_s23 + $0x4f0] sm:$0xff] }
  0xbf   : > { %4197 = vst [vmem:[%s5111_s20 + $0x450] sm:$0xff] %v3685_v43  ;;  %4198 = vst [vmem:[%s5111_s20 + $0x458] sm:$0xff] %v3686_v44  ;;  %v1578_v58 = vrot.slane %v767_v40, %v5084_v5  ;;  %v3687_v60 = vadd.f32 %v1550_v48, %v359_v38  ;;  %v3688_v61 = vadd.f32 %v1554_v49, %v360_v39  ;;  %v378_v38 = vld [vmem:[%s5064_s23 + $0x4f8] sm:$0xff]  ;;  %v379_v39 = vld [vmem:[%s5064_s23 + $0x500] sm:$0xff] }
  0xc0   : > { %v3689_v62 = vadd.f32 %v1558_v50, %v361_v45  ;;  %v3690_v63 = vadd.f32 %v1562_v51, %v362_v46  ;;  %v3691_v7 = vadd.f32 %v1566_v55, %v363_v47  ;;  %v3692_v8 = vadd.f32 %v1570_v56, %v364_v52  ;;  %v380_v44 = vld [vmem:[%s5064_s23 + $0x508] sm:$0xff]  ;;  %v381_v45 = vld [vmem:[%s5064_s23 + $0x510] sm:$0xff]  ;;  %v382_v46 = vld [vmem:[%s5064_s23 + $0x518] sm:$0xff] }
  0xc1   : > { %v3693_v9 = vadd.f32 %v1574_v57, %v365_v53  ;;  %v3694_v10 = vadd.f32 %v1578_v58, %v366_v54  ;;  %4199 = vst [vmem:[%s5111_s20 + $0x460] sm:$0xff] %v3687_v60  ;;  %4200 = vst [vmem:[%s5111_s20 + $0x468] sm:$0xff] %v3688_v61  ;;  %v1582_v14 = vrot.slane %v768_v59, %v5078_v2  ;;  %v772_v51 = vld [vmem:[%s5072_s3 + $0xa4] sm:$0xf]  ;;  %v384_v57 = vld [vmem:[%s5064_s23 + $0x528] sm:$0xff] }
  0xc2   : > { %4201 = vst [vmem:[%s5111_s20 + $0x470] sm:$0xff] %v3689_v62  ;;  %4202 = vst [vmem:[%s5111_s20 + $0x478] sm:$0xff] %v3690_v63  ;;  %v1586_v15 = vrot.slane %v768_v59, %v5080_v3  ;;  %v1590_v16 = vrot.slane %v768_v59, %v5082_v4  ;;  %v1594_v17 = vrot.slane %v768_v59, %v5084_v5  ;;  %v383_v56 = vld [vmem:[%s5064_s23 + $0x520] sm:$0xff]  ;;  %v773_v58 = vld [vmem:[%s5072_s3 + $0xa8] sm:$0xf] }
  0xc3   : > { %4203 = vst [vmem:[%s5111_s20 + $0x480] sm:$0xff] %v3691_v7  ;;  %4204 = vst [vmem:[%s5111_s20 + $0x488] sm:$0xff] %v3692_v8  ;;  %v1598_v21 = vrot.slane %v769_v6, %v5078_v2  ;;  %v1602_v22 = vrot.slane %v769_v6, %v5080_v3  ;;  %v1606_v23 = vrot.slane %v769_v6, %v5082_v4  ;;  %v385_v63 = vld [vmem:[%s5064_s23 + $0x530] sm:$0xff] }
  0xc4   : > { %4205 = vst [vmem:[%s5111_s20 + $0x490] sm:$0xff] %v3693_v9  ;;  %4206 = vst [vmem:[%s5111_s20 + $0x498] sm:$0xff] %v3694_v10  ;;  %v1610_v24 = vrot.slane %v769_v6, %v5084_v5  ;;  %v3695_v26 = vadd.f32 %v1582_v14, %v367_v0  ;;  %v3696_v27 = vadd.f32 %v1586_v15, %v368_v1  ;;  %v386_v0 = vld [vmem:[%s5064_s23 + $0x538] sm:$0xff]  ;;  %v387_v1 = vld [vmem:[%s5064_s23 + $0x540] sm:$0xff] }
  0xc5   : > { %v3697_v28 = vadd.f32 %v1590_v16, %v369_v11  ;;  %v3698_v29 = vadd.f32 %v1594_v17, %v370_v12  ;;  %v3699_v33 = vadd.f32 %v1598_v21, %v371_v13  ;;  %v3700_v34 = vadd.f32 %v1602_v22, %v372_v18  ;;  %v388_v10 = vld [vmem:[%s5064_s23 + $0x548] sm:$0xff]  ;;  %v389_v11 = vld [vmem:[%s5064_s23 + $0x550] sm:$0xff]  ;;  %v390_v12 = vld [vmem:[%s5064_s23 + $0x558] sm:$0xff] }
  0xc6   : > { %v3701_v35 = vadd.f32 %v1606_v23, %v373_v19  ;;  %v3702_v36 = vadd.f32 %v1610_v24, %v374_v20  ;;  %4207 = vst [vmem:[%s5111_s20 + $0x4a0] sm:$0xff] %v3695_v26  ;;  %4208 = vst [vmem:[%s5111_s20 + $0x4a8] sm:$0xff] %v3696_v27  ;;  %v1614_v40 = vrot.slane %v770_v25, %v5078_v2  ;;  %v774_v17 = vld [vmem:[%s5072_s3 + $0xac] sm:$0xf]  ;;  %v391_v22 = vld [vmem:[%s5064_s23 + $0x560] sm:$0xff] }
  0xc7   : > { %4209 = vst [vmem:[%s5111_s20 + $0x4b0] sm:$0xff] %v3697_v28  ;;  %4210 = vst [vmem:[%s5111_s20 + $0x4b8] sm:$0xff] %v3698_v29  ;;  %v1618_v41 = vrot.slane %v770_v25, %v5080_v3  ;;  %v1622_v42 = vrot.slane %v770_v25, %v5082_v4  ;;  %v1626_v43 = vrot.slane %v770_v25, %v5084_v5  ;;  %v392_v23 = vld [vmem:[%s5064_s23 + $0x568] sm:$0xff]  ;;  %v775_v24 = vld [vmem:[%s5072_s3 + $0xb0] sm:$0xf] }
  0xc8   : > { %4211 = vst [vmem:[%s5111_s20 + $0x4c0] sm:$0xff] %v3699_v33  ;;  %4212 = vst [vmem:[%s5111_s20 + $0x4c8] sm:$0xff] %v3700_v34  ;;  %v1630_v47 = vrot.slane %v771_v32, %v5078_v2  ;;  %v1634_v48 = vrot.slane %v771_v32, %v5080_v3  ;;  %v1638_v49 = vrot.slane %v771_v32, %v5082_v4  ;;  %v393_v29 = vld [vmem:[%s5064_s23 + $0x570] sm:$0xff] }
  0xc9   : > { %4213 = vst [vmem:[%s5111_s20 + $0x4d0] sm:$0xff] %v3701_v35  ;;  %4214 = vst [vmem:[%s5111_s20 + $0x4d8] sm:$0xff] %v3702_v36  ;;  %v1642_v50 = vrot.slane %v771_v32, %v5084_v5  ;;  %v3703_v52 = vadd.f32 %v1614_v40, %v375_v30  ;;  %v3704_v53 = vadd.f32 %v1618_v41, %v376_v31  ;;  %v394_v30 = vld [vmem:[%s5064_s23 + $0x578] sm:$0xff]  ;;  %v395_v31 = vld [vmem:[%s5064_s23 + $0x580] sm:$0xff] }
  0xca   : > { %v3705_v54 = vadd.f32 %v1622_v42, %v377_v37  ;;  %v3706_v55 = vadd.f32 %v1626_v43, %v378_v38  ;;  %v3707_v59 = vadd.f32 %v1630_v47, %v379_v39  ;;  %v3708_v60 = vadd.f32 %v1634_v48, %v380_v44  ;;  %v396_v36 = vld [vmem:[%s5064_s23 + $0x588] sm:$0xff]  ;;  %v397_v37 = vld [vmem:[%s5064_s23 + $0x590] sm:$0xff]  ;;  %v398_v38 = vld [vmem:[%s5064_s23 + $0x598] sm:$0xff] }
  0xcb   : > { %v3709_v61 = vadd.f32 %v1638_v49, %v381_v45  ;;  %v3710_v62 = vadd.f32 %v1642_v50, %v382_v46  ;;  %4215 = vst [vmem:[%s5111_s20 + $0x4e0] sm:$0xff] %v3703_v52  ;;  %4216 = vst [vmem:[%s5111_s20 + $0x4e8] sm:$0xff] %v3704_v53  ;;  %v1646_v6 = vrot.slane %v772_v51, %v5078_v2  ;;  %v776_v43 = vld [vmem:[%s5072_s3 + $0xb4] sm:$0xf]  ;;  %v399_v48 = vld [vmem:[%s5064_s23 + $0x5a0] sm:$0xff] }
  0xcc   : > { %4217 = vst [vmem:[%s5111_s20 + $0x4f0] sm:$0xff] %v3705_v54  ;;  %4218 = vst [vmem:[%s5111_s20 + $0x4f8] sm:$0xff] %v3706_v55  ;;  %v1650_v7 = vrot.slane %v772_v51, %v5080_v3  ;;  %v1654_v8 = vrot.slane %v772_v51, %v5082_v4  ;;  %v1658_v9 = vrot.slane %v772_v51, %v5084_v5  ;;  %v400_v49 = vld [vmem:[%s5064_s23 + $0x5a8] sm:$0xff]  ;;  %v777_v50 = vld [vmem:[%s5072_s3 + $0xb8] sm:$0xf] }
  0xcd   : > { %4219 = vst [vmem:[%s5111_s20 + $0x500] sm:$0xff] %v3707_v59  ;;  %4220 = vst [vmem:[%s5111_s20 + $0x508] sm:$0xff] %v3708_v60  ;;  %v1662_v13 = vrot.slane %v773_v58, %v5078_v2  ;;  %v1666_v14 = vrot.slane %v773_v58, %v5080_v3  ;;  %v1670_v15 = vrot.slane %v773_v58, %v5082_v4  ;;  %v401_v55 = vld [vmem:[%s5064_s23 + $0x5b0] sm:$0xff] }
  0xce   : > { %4221 = vst [vmem:[%s5111_s20 + $0x510] sm:$0xff] %v3709_v61  ;;  %4222 = vst [vmem:[%s5111_s20 + $0x518] sm:$0xff] %v3710_v62  ;;  %v1674_v16 = vrot.slane %v773_v58, %v5084_v5  ;;  %v3711_v18 = vadd.f32 %v1646_v6, %v383_v56  ;;  %v3712_v19 = vadd.f32 %v1650_v7, %v384_v57  ;;  %v402_v56 = vld [vmem:[%s5064_s23 + $0x5b8] sm:$0xff]  ;;  %v403_v57 = vld [vmem:[%s5064_s23 + $0x5c0] sm:$0xff] }
  0xcf   : > { %v3713_v20 = vadd.f32 %v1654_v8, %v385_v63  ;;  %v3714_v21 = vadd.f32 %v1658_v9, %v386_v0  ;;  %v3715_v25 = vadd.f32 %v1662_v13, %v387_v1  ;;  %v3716_v26 = vadd.f32 %v1666_v14, %v388_v10  ;;  %v404_v62 = vld [vmem:[%s5064_s23 + $0x5c8] sm:$0xff]  ;;  %v405_v63 = vld [vmem:[%s5064_s23 + $0x5d0] sm:$0xff]  ;;  %v406_v0 = vld [vmem:[%s5064_s23 + $0x5d8] sm:$0xff] }
  0xd0   : > { %v3717_v27 = vadd.f32 %v1670_v15, %v389_v11  ;;  %v3718_v28 = vadd.f32 %v1674_v16, %v390_v12  ;;  %4223 = vst [vmem:[%s5111_s20 + $0x520] sm:$0xff] %v3711_v18  ;;  %4224 = vst [vmem:[%s5111_s20 + $0x528] sm:$0xff] %v3712_v19  ;;  %v1678_v32 = vrot.slane %v774_v17, %v5078_v2  ;;  %v778_v9 = vld [vmem:[%s5072_s3 + $0xbc] sm:$0xf]  ;;  %v407_v14 = vld [vmem:[%s5064_s23 + $0x5e0] sm:$0xff] }
  0xd1   : > { %4225 = vst [vmem:[%s5111_s20 + $0x530] sm:$0xff] %v3713_v20  ;;  %4226 = vst [vmem:[%s5111_s20 + $0x538] sm:$0xff] %v3714_v21  ;;  %v1682_v33 = vrot.slane %v774_v17, %v5080_v3  ;;  %v1686_v34 = vrot.slane %v774_v17, %v5082_v4  ;;  %v1690_v35 = vrot.slane %v774_v17, %v5084_v5  ;;  %v408_v15 = vld [vmem:[%s5064_s23 + $0x5e8] sm:$0xff]  ;;  %v779_v16 = vld [vmem:[%s5072_s3 + $0xc0] sm:$0xf] }
  0xd2   : > { %4227 = vst [vmem:[%s5111_s20 + $0x540] sm:$0xff] %v3715_v25  ;;  %4228 = vst [vmem:[%s5111_s20 + $0x548] sm:$0xff] %v3716_v26  ;;  %v1694_v39 = vrot.slane %v775_v24, %v5078_v2  ;;  %v1698_v40 = vrot.slane %v775_v24, %v5080_v3  ;;  %v1702_v41 = vrot.slane %v775_v24, %v5082_v4  ;;  %v409_v21 = vld [vmem:[%s5064_s23 + $0x5f0] sm:$0xff] }
  0xd3   : > { %4229 = vst [vmem:[%s5111_s20 + $0x550] sm:$0xff] %v3717_v27  ;;  %4230 = vst [vmem:[%s5111_s20 + $0x558] sm:$0xff] %v3718_v28  ;;  %v1706_v42 = vrot.slane %v775_v24, %v5084_v5  ;;  %v3719_v44 = vadd.f32 %v1678_v32, %v391_v22  ;;  %v3720_v45 = vadd.f32 %v1682_v33, %v392_v23  ;;  %v410_v22 = vld [vmem:[%s5064_s23 + $0x5f8] sm:$0xff]  ;;  %v411_v23 = vld [vmem:[%s5064_s23 + $0x600] sm:$0xff] }
  0xd4   : > { %v3721_v46 = vadd.f32 %v1686_v34, %v393_v29  ;;  %v3722_v47 = vadd.f32 %v1690_v35, %v394_v30  ;;  %v3723_v51 = vadd.f32 %v1694_v39, %v395_v31  ;;  %v3724_v52 = vadd.f32 %v1698_v40, %v396_v36  ;;  %v412_v28 = vld [vmem:[%s5064_s23 + $0x608] sm:$0xff]  ;;  %v413_v29 = vld [vmem:[%s5064_s23 + $0x610] sm:$0xff]  ;;  %v414_v30 = vld [vmem:[%s5064_s23 + $0x618] sm:$0xff] }
  0xd5   : > { %v3725_v53 = vadd.f32 %v1702_v41, %v397_v37  ;;  %v3726_v54 = vadd.f32 %v1706_v42, %v398_v38  ;;  %4231 = vst [vmem:[%s5111_s20 + $0x560] sm:$0xff] %v3719_v44  ;;  %4232 = vst [vmem:[%s5111_s20 + $0x568] sm:$0xff] %v3720_v45  ;;  %v1710_v58 = vrot.slane %v776_v43, %v5078_v2  ;;  %v780_v35 = vld [vmem:[%s5072_s3 + $0xc4] sm:$0xf]  ;;  %v416_v41 = vld [vmem:[%s5064_s23 + $0x628] sm:$0xff] }
  0xd6   : > { %4233 = vst [vmem:[%s5111_s20 + $0x570] sm:$0xff] %v3721_v46  ;;  %4234 = vst [vmem:[%s5111_s20 + $0x578] sm:$0xff] %v3722_v47  ;;  %v1714_v59 = vrot.slane %v776_v43, %v5080_v3  ;;  %v1718_v60 = vrot.slane %v776_v43, %v5082_v4  ;;  %v1722_v61 = vrot.slane %v776_v43, %v5084_v5  ;;  %v415_v40 = vld [vmem:[%s5064_s23 + $0x620] sm:$0xff]  ;;  %v781_v42 = vld [vmem:[%s5072_s3 + $0xc8] sm:$0xf] }
  0xd7   : > { %4235 = vst [vmem:[%s5111_s20 + $0x580] sm:$0xff] %v3723_v51  ;;  %4236 = vst [vmem:[%s5111_s20 + $0x588] sm:$0xff] %v3724_v52  ;;  %v1726_v1 = vrot.slane %v777_v50, %v5078_v2  ;;  %v1730_v6 = vrot.slane %v777_v50, %v5080_v3  ;;  %v1734_v7 = vrot.slane %v777_v50, %v5082_v4  ;;  %v417_v47 = vld [vmem:[%s5064_s23 + $0x630] sm:$0xff] }
  0xd8   : > { %4237 = vst [vmem:[%s5111_s20 + $0x590] sm:$0xff] %v3725_v53  ;;  %4238 = vst [vmem:[%s5111_s20 + $0x598] sm:$0xff] %v3726_v54  ;;  %v1738_v8 = vrot.slane %v777_v50, %v5084_v5  ;;  %v3727_v10 = vadd.f32 %v1710_v58, %v399_v48  ;;  %v3728_v11 = vadd.f32 %v1714_v59, %v400_v49  ;;  %v418_v48 = vld [vmem:[%s5064_s23 + $0x638] sm:$0xff]  ;;  %v419_v49 = vld [vmem:[%s5064_s23 + $0x640] sm:$0xff] }
  0xd9   : > { %v3729_v12 = vadd.f32 %v1718_v60, %v401_v55  ;;  %v3730_v13 = vadd.f32 %v1722_v61, %v402_v56  ;;  %v3731_v17 = vadd.f32 %v1726_v1, %v403_v57  ;;  %v3732_v18 = vadd.f32 %v1730_v6, %v404_v62  ;;  %v420_v54 = vld [vmem:[%s5064_s23 + $0x648] sm:$0xff]  ;;  %v421_v55 = vld [vmem:[%s5064_s23 + $0x650] sm:$0xff]  ;;  %v422_v56 = vld [vmem:[%s5064_s23 + $0x658] sm:$0xff] }
  0xda   : > { %v3733_v19 = vadd.f32 %v1734_v7, %v405_v63  ;;  %v3734_v20 = vadd.f32 %v1738_v8, %v406_v0  ;;  %4239 = vst [vmem:[%s5111_s20 + $0x5a0] sm:$0xff] %v3727_v10  ;;  %4240 = vst [vmem:[%s5111_s20 + $0x5a8] sm:$0xff] %v3728_v11  ;;  %v1742_v24 = vrot.slane %v778_v9, %v5078_v2  ;;  %v782_v61 = vld [vmem:[%s5072_s3 + $0xcc] sm:$0xf]  ;;  %v423_v6 = vld [vmem:[%s5064_s23 + $0x660] sm:$0xff] }
  0xdb   : > { %4241 = vst [vmem:[%s5111_s20 + $0x5b0] sm:$0xff] %v3729_v12  ;;  %4242 = vst [vmem:[%s5111_s20 + $0x5b8] sm:$0xff] %v3730_v13  ;;  %v1746_v25 = vrot.slane %v778_v9, %v5080_v3  ;;  %v1750_v26 = vrot.slane %v778_v9, %v5082_v4  ;;  %v1754_v27 = vrot.slane %v778_v9, %v5084_v5  ;;  %v424_v7 = vld [vmem:[%s5064_s23 + $0x668] sm:$0xff]  ;;  %v783_v8 = vld [vmem:[%s5072_s3 + $0xd0] sm:$0xf] }
  0xdc   : > { %4243 = vst [vmem:[%s5111_s20 + $0x5c0] sm:$0xff] %v3731_v17  ;;  %4244 = vst [vmem:[%s5111_s20 + $0x5c8] sm:$0xff] %v3732_v18  ;;  %v1758_v31 = vrot.slane %v779_v16, %v5078_v2  ;;  %v1762_v32 = vrot.slane %v779_v16, %v5080_v3  ;;  %v1766_v33 = vrot.slane %v779_v16, %v5082_v4  ;;  %v425_v13 = vld [vmem:[%s5064_s23 + $0x670] sm:$0xff] }
  0xdd   : > { %4245 = vst [vmem:[%s5111_s20 + $0x5d0] sm:$0xff] %v3733_v19  ;;  %4246 = vst [vmem:[%s5111_s20 + $0x5d8] sm:$0xff] %v3734_v20  ;;  %v1770_v34 = vrot.slane %v779_v16, %v5084_v5  ;;  %v3735_v36 = vadd.f32 %v1742_v24, %v407_v14  ;;  %v3736_v37 = vadd.f32 %v1746_v25, %v408_v15  ;;  %v426_v14 = vld [vmem:[%s5064_s23 + $0x678] sm:$0xff]  ;;  %v427_v15 = vld [vmem:[%s5064_s23 + $0x680] sm:$0xff] }
  0xde   : > { %v3737_v38 = vadd.f32 %v1750_v26, %v409_v21  ;;  %v3738_v39 = vadd.f32 %v1754_v27, %v410_v22  ;;  %v3739_v43 = vadd.f32 %v1758_v31, %v411_v23  ;;  %v3740_v44 = vadd.f32 %v1762_v32, %v412_v28  ;;  %v428_v20 = vld [vmem:[%s5064_s23 + $0x688] sm:$0xff]  ;;  %v429_v21 = vld [vmem:[%s5064_s23 + $0x690] sm:$0xff]  ;;  %v430_v22 = vld [vmem:[%s5064_s23 + $0x698] sm:$0xff] }
  0xdf   : > { %v3741_v45 = vadd.f32 %v1766_v33, %v413_v29  ;;  %v3742_v46 = vadd.f32 %v1770_v34, %v414_v30  ;;  %4247 = vst [vmem:[%s5111_s20 + $0x5e0] sm:$0xff] %v3735_v36  ;;  %4248 = vst [vmem:[%s5111_s20 + $0x5e8] sm:$0xff] %v3736_v37  ;;  %v1774_v50 = vrot.slane %v780_v35, %v5078_v2  ;;  %v784_v27 = vld [vmem:[%s5072_s3 + $0xd4] sm:$0xf]  ;;  %v431_v32 = vld [vmem:[%s5064_s23 + $0x6a0] sm:$0xff] }
  0xe0   : > { %4249 = vst [vmem:[%s5111_s20 + $0x5f0] sm:$0xff] %v3737_v38  ;;  %4250 = vst [vmem:[%s5111_s20 + $0x5f8] sm:$0xff] %v3738_v39  ;;  %v1778_v51 = vrot.slane %v780_v35, %v5080_v3  ;;  %v1782_v52 = vrot.slane %v780_v35, %v5082_v4  ;;  %v1786_v53 = vrot.slane %v780_v35, %v5084_v5  ;;  %v432_v33 = vld [vmem:[%s5064_s23 + $0x6a8] sm:$0xff]  ;;  %v785_v34 = vld [vmem:[%s5072_s3 + $0xd8] sm:$0xf] }
  0xe1   : > { %4251 = vst [vmem:[%s5111_s20 + $0x600] sm:$0xff] %v3739_v43  ;;  %4252 = vst [vmem:[%s5111_s20 + $0x608] sm:$0xff] %v3740_v44  ;;  %v1790_v57 = vrot.slane %v781_v42, %v5078_v2  ;;  %v1794_v58 = vrot.slane %v781_v42, %v5080_v3  ;;  %v1798_v59 = vrot.slane %v781_v42, %v5082_v4  ;;  %v433_v39 = vld [vmem:[%s5064_s23 + $0x6b0] sm:$0xff] }
  0xe2   : > { %4253 = vst [vmem:[%s5111_s20 + $0x610] sm:$0xff] %v3741_v45  ;;  %4254 = vst [vmem:[%s5111_s20 + $0x618] sm:$0xff] %v3742_v46  ;;  %v1802_v60 = vrot.slane %v781_v42, %v5084_v5  ;;  %v3743_v62 = vadd.f32 %v1774_v50, %v415_v40  ;;  %v3744_v63 = vadd.f32 %v1778_v51, %v416_v41  ;;  %v434_v40 = vld [vmem:[%s5064_s23 + $0x6b8] sm:$0xff]  ;;  %v435_v41 = vld [vmem:[%s5064_s23 + $0x6c0] sm:$0xff] }
  0xe3   : > { %v3745_v0 = vadd.f32 %v1782_v52, %v417_v47  ;;  %v3746_v1 = vadd.f32 %v1786_v53, %v418_v48  ;;  %v3747_v9 = vadd.f32 %v1790_v57, %v419_v49  ;;  %v3748_v10 = vadd.f32 %v1794_v58, %v420_v54  ;;  %v436_v46 = vld [vmem:[%s5064_s23 + $0x6c8] sm:$0xff]  ;;  %v437_v47 = vld [vmem:[%s5064_s23 + $0x6d0] sm:$0xff]  ;;  %v438_v48 = vld [vmem:[%s5064_s23 + $0x6d8] sm:$0xff] }
  0xe4   : > { %v3749_v11 = vadd.f32 %v1798_v59, %v421_v55  ;;  %v3750_v12 = vadd.f32 %v1802_v60, %v422_v56  ;;  %4255 = vst [vmem:[%s5111_s20 + $0x620] sm:$0xff] %v3743_v62  ;;  %4256 = vst [vmem:[%s5111_s20 + $0x628] sm:$0xff] %v3744_v63  ;;  %v1806_v16 = vrot.slane %v782_v61, %v5078_v2  ;;  %v786_v53 = vld [vmem:[%s5072_s3 + $0xdc] sm:$0xf]  ;;  %v439_v58 = vld [vmem:[%s5064_s23 + $0x6e0] sm:$0xff] }
  0xe5   : > { %4257 = vst [vmem:[%s5111_s20 + $0x630] sm:$0xff] %v3745_v0  ;;  %4258 = vst [vmem:[%s5111_s20 + $0x638] sm:$0xff] %v3746_v1  ;;  %v1810_v17 = vrot.slane %v782_v61, %v5080_v3  ;;  %v1814_v18 = vrot.slane %v782_v61, %v5082_v4  ;;  %v1818_v19 = vrot.slane %v782_v61, %v5084_v5  ;;  %v440_v59 = vld [vmem:[%s5064_s23 + $0x6e8] sm:$0xff]  ;;  %v787_v60 = vld [vmem:[%s5072_s3 + $0xe0] sm:$0xf] }
  0xe6   : > { %4259 = vst [vmem:[%s5111_s20 + $0x640] sm:$0xff] %v3747_v9  ;;  %4260 = vst [vmem:[%s5111_s20 + $0x648] sm:$0xff] %v3748_v10  ;;  %v1822_v23 = vrot.slane %v783_v8, %v5078_v2  ;;  %v1826_v24 = vrot.slane %v783_v8, %v5080_v3  ;;  %v1830_v25 = vrot.slane %v783_v8, %v5082_v4  ;;  %v441_v1 = vld [vmem:[%s5064_s23 + $0x6f0] sm:$0xff] }
  0xe7   : > { %4261 = vst [vmem:[%s5111_s20 + $0x650] sm:$0xff] %v3749_v11  ;;  %4262 = vst [vmem:[%s5111_s20 + $0x658] sm:$0xff] %v3750_v12  ;;  %v1834_v26 = vrot.slane %v783_v8, %v5084_v5  ;;  %v3751_v28 = vadd.f32 %v1806_v16, %v423_v6  ;;  %v3752_v29 = vadd.f32 %v1810_v17, %v424_v7  ;;  %v442_v6 = vld [vmem:[%s5064_s23 + $0x6f8] sm:$0xff]  ;;  %v443_v7 = vld [vmem:[%s5064_s23 + $0x700] sm:$0xff] }
  0xe8   : > { %v3753_v30 = vadd.f32 %v1814_v18, %v425_v13  ;;  %v3754_v31 = vadd.f32 %v1818_v19, %v426_v14  ;;  %v3755_v35 = vadd.f32 %v1822_v23, %v427_v15  ;;  %v3756_v36 = vadd.f32 %v1826_v24, %v428_v20  ;;  %v444_v12 = vld [vmem:[%s5064_s23 + $0x708] sm:$0xff]  ;;  %v445_v13 = vld [vmem:[%s5064_s23 + $0x710] sm:$0xff]  ;;  %v446_v14 = vld [vmem:[%s5064_s23 + $0x718] sm:$0xff] }
  0xe9   : > { %v3757_v37 = vadd.f32 %v1830_v25, %v429_v21  ;;  %v3758_v38 = vadd.f32 %v1834_v26, %v430_v22  ;;  %4263 = vst [vmem:[%s5111_s20 + $0x660] sm:$0xff] %v3751_v28  ;;  %4264 = vst [vmem:[%s5111_s20 + $0x668] sm:$0xff] %v3752_v29  ;;  %v1838_v42 = vrot.slane %v784_v27, %v5078_v2  ;;  %v788_v19 = vld [vmem:[%s5072_s3 + $0xe4] sm:$0xf]  ;;  %v448_v25 = vld [vmem:[%s5064_s23 + $0x728] sm:$0xff] }
  0xea   : > { %4265 = vst [vmem:[%s5111_s20 + $0x670] sm:$0xff] %v3753_v30  ;;  %4266 = vst [vmem:[%s5111_s20 + $0x678] sm:$0xff] %v3754_v31  ;;  %v1842_v43 = vrot.slane %v784_v27, %v5080_v3  ;;  %v1846_v44 = vrot.slane %v784_v27, %v5082_v4  ;;  %v1850_v45 = vrot.slane %v784_v27, %v5084_v5  ;;  %v447_v24 = vld [vmem:[%s5064_s23 + $0x720] sm:$0xff]  ;;  %v789_v26 = vld [vmem:[%s5072_s3 + $0xe8] sm:$0xf] }
  0xeb   : > { %4267 = vst [vmem:[%s5111_s20 + $0x680] sm:$0xff] %v3755_v35  ;;  %4268 = vst [vmem:[%s5111_s20 + $0x688] sm:$0xff] %v3756_v36  ;;  %v1854_v49 = vrot.slane %v785_v34, %v5078_v2  ;;  %v1858_v50 = vrot.slane %v785_v34, %v5080_v3  ;;  %v1862_v51 = vrot.slane %v785_v34, %v5082_v4  ;;  %v449_v31 = vld [vmem:[%s5064_s23 + $0x730] sm:$0xff] }
  0xec   : > { %4269 = vst [vmem:[%s5111_s20 + $0x690] sm:$0xff] %v3757_v37  ;;  %4270 = vst [vmem:[%s5111_s20 + $0x698] sm:$0xff] %v3758_v38  ;;  %v1866_v52 = vrot.slane %v785_v34, %v5084_v5  ;;  %v3759_v54 = vadd.f32 %v1838_v42, %v431_v32  ;;  %v3760_v55 = vadd.f32 %v1842_v43, %v432_v33  ;;  %v450_v32 = vld [vmem:[%s5064_s23 + $0x738] sm:$0xff]  ;;  %v451_v33 = vld [vmem:[%s5064_s23 + $0x740] sm:$0xff] }
  0xed   : > { %v3761_v56 = vadd.f32 %v1846_v44, %v433_v39  ;;  %v3762_v57 = vadd.f32 %v1850_v45, %v434_v40  ;;  %v3763_v61 = vadd.f32 %v1854_v49, %v435_v41  ;;  %v3764_v62 = vadd.f32 %v1858_v50, %v436_v46  ;;  %v452_v38 = vld [vmem:[%s5064_s23 + $0x748] sm:$0xff]  ;;  %v453_v39 = vld [vmem:[%s5064_s23 + $0x750] sm:$0xff]  ;;  %v454_v40 = vld [vmem:[%s5064_s23 + $0x758] sm:$0xff] }
  0xee   : > { %v3765_v63 = vadd.f32 %v1862_v51, %v437_v47  ;;  %v3766_v0 = vadd.f32 %v1866_v52, %v438_v48  ;;  %4271 = vst [vmem:[%s5111_s20 + $0x6a0] sm:$0xff] %v3759_v54  ;;  %4272 = vst [vmem:[%s5111_s20 + $0x6a8] sm:$0xff] %v3760_v55  ;;  %v1870_v8 = vrot.slane %v786_v53, %v5078_v2  ;;  %v790_v45 = vld [vmem:[%s5072_s3 + $0xec] sm:$0xf]  ;;  %v455_v50 = vld [vmem:[%s5064_s23 + $0x760] sm:$0xff] }
  0xef   : > { %4273 = vst [vmem:[%s5111_s20 + $0x6b0] sm:$0xff] %v3761_v56  ;;  %4274 = vst [vmem:[%s5111_s20 + $0x6b8] sm:$0xff] %v3762_v57  ;;  %v1874_v9 = vrot.slane %v786_v53, %v5080_v3  ;;  %v1878_v10 = vrot.slane %v786_v53, %v5082_v4  ;;  %v1882_v11 = vrot.slane %v786_v53, %v5084_v5  ;;  %v456_v51 = vld [vmem:[%s5064_s23 + $0x768] sm:$0xff]  ;;  %v791_v52 = vld [vmem:[%s5072_s3 + $0xf0] sm:$0xf] }
  0xf0   : > { %4275 = vst [vmem:[%s5111_s20 + $0x6c0] sm:$0xff] %v3763_v61  ;;  %4276 = vst [vmem:[%s5111_s20 + $0x6c8] sm:$0xff] %v3764_v62  ;;  %v1886_v15 = vrot.slane %v787_v60, %v5078_v2  ;;  %v1890_v16 = vrot.slane %v787_v60, %v5080_v3  ;;  %v1894_v17 = vrot.slane %v787_v60, %v5082_v4  ;;  %v457_v57 = vld [vmem:[%s5064_s23 + $0x770] sm:$0xff] }
  0xf1   : > { %4277 = vst [vmem:[%s5111_s20 + $0x6d0] sm:$0xff] %v3765_v63  ;;  %4278 = vst [vmem:[%s5111_s20 + $0x6d8] sm:$0xff] %v3766_v0  ;;  %v1898_v18 = vrot.slane %v787_v60, %v5084_v5  ;;  %v3767_v20 = vadd.f32 %v1870_v8, %v439_v58  ;;  %v3768_v21 = vadd.f32 %v1874_v9, %v440_v59  ;;  %v458_v58 = vld [vmem:[%s5064_s23 + $0x778] sm:$0xff]  ;;  %v459_v59 = vld [vmem:[%s5064_s23 + $0x780] sm:$0xff] }
  0xf2   : > { %v3769_v22 = vadd.f32 %v1878_v10, %v441_v1  ;;  %v3770_v23 = vadd.f32 %v1882_v11, %v442_v6  ;;  %v3771_v27 = vadd.f32 %v1886_v15, %v443_v7  ;;  %v3772_v28 = vadd.f32 %v1890_v16, %v444_v12  ;;  %v460_v0 = vld [vmem:[%s5064_s23 + $0x788] sm:$0xff]  ;;  %v461_v1 = vld [vmem:[%s5064_s23 + $0x790] sm:$0xff]  ;;  %v462_v6 = vld [vmem:[%s5064_s23 + $0x798] sm:$0xff] }
  0xf3   : > { %v3773_v29 = vadd.f32 %v1894_v17, %v445_v13  ;;  %v3774_v30 = vadd.f32 %v1898_v18, %v446_v14  ;;  %4279 = vst [vmem:[%s5111_s20 + $0x6e0] sm:$0xff] %v3767_v20  ;;  %4280 = vst [vmem:[%s5111_s20 + $0x6e8] sm:$0xff] %v3768_v21  ;;  %v1902_v34 = vrot.slane %v788_v19, %v5078_v2  ;;  %v792_v11 = vld [vmem:[%s5072_s3 + $0xf4] sm:$0xf]  ;;  %v463_v16 = vld [vmem:[%s5064_s23 + $0x7a0] sm:$0xff] }
  0xf4   : > { %4281 = vst [vmem:[%s5111_s20 + $0x6f0] sm:$0xff] %v3769_v22  ;;  %4282 = vst [vmem:[%s5111_s20 + $0x6f8] sm:$0xff] %v3770_v23  ;;  %v1906_v35 = vrot.slane %v788_v19, %v5080_v3  ;;  %v1910_v36 = vrot.slane %v788_v19, %v5082_v4  ;;  %v1914_v37 = vrot.slane %v788_v19, %v5084_v5  ;;  %v464_v17 = vld [vmem:[%s5064_s23 + $0x7a8] sm:$0xff]  ;;  %v793_v18 = vld [vmem:[%s5072_s3 + $0xf8] sm:$0xf] }
  0xf5   : > { %4283 = vst [vmem:[%s5111_s20 + $0x700] sm:$0xff] %v3771_v27  ;;  %4284 = vst [vmem:[%s5111_s20 + $0x708] sm:$0xff] %v3772_v28  ;;  %v1918_v41 = vrot.slane %v789_v26, %v5078_v2  ;;  %v1922_v42 = vrot.slane %v789_v26, %v5080_v3  ;;  %v1926_v43 = vrot.slane %v789_v26, %v5082_v4  ;;  %v465_v23 = vld [vmem:[%s5064_s23 + $0x7b0] sm:$0xff] }
  0xf6   : > { %4285 = vst [vmem:[%s5111_s20 + $0x710] sm:$0xff] %v3773_v29  ;;  %4286 = vst [vmem:[%s5111_s20 + $0x718] sm:$0xff] %v3774_v30  ;;  %v1930_v44 = vrot.slane %v789_v26, %v5084_v5  ;;  %v3775_v46 = vadd.f32 %v1902_v34, %v447_v24  ;;  %v3776_v47 = vadd.f32 %v1906_v35, %v448_v25  ;;  %v466_v24 = vld [vmem:[%s5064_s23 + $0x7b8] sm:$0xff]  ;;  %v467_v25 = vld [vmem:[%s5064_s23 + $0x7c0] sm:$0xff] }
  0xf7   : > { %v3777_v48 = vadd.f32 %v1910_v36, %v449_v31  ;;  %v3778_v49 = vadd.f32 %v1914_v37, %v450_v32  ;;  %v3779_v53 = vadd.f32 %v1918_v41, %v451_v33  ;;  %v3780_v54 = vadd.f32 %v1922_v42, %v452_v38  ;;  %v468_v30 = vld [vmem:[%s5064_s23 + $0x7c8] sm:$0xff]  ;;  %v469_v31 = vld [vmem:[%s5064_s23 + $0x7d0] sm:$0xff]  ;;  %v470_v32 = vld [vmem:[%s5064_s23 + $0x7d8] sm:$0xff] }
  0xf8   : > { %v3781_v55 = vadd.f32 %v1926_v43, %v453_v39  ;;  %v3782_v56 = vadd.f32 %v1930_v44, %v454_v40  ;;  %4287 = vst [vmem:[%s5111_s20 + $0x720] sm:$0xff] %v3775_v46  ;;  %4288 = vst [vmem:[%s5111_s20 + $0x728] sm:$0xff] %v3776_v47  ;;  %v1934_v60 = vrot.slane %v790_v45, %v5078_v2  ;;  %v794_v37 = vld [vmem:[%s5072_s3 + $0xfc] sm:$0xf]  ;;  %v471_v42 = vld [vmem:[%s5064_s23 + $0x7e0] sm:$0xff] }
  0xf9   : > { %4289 = vst [vmem:[%s5111_s20 + $0x730] sm:$0xff] %v3777_v48  ;;  %4290 = vst [vmem:[%s5111_s20 + $0x738] sm:$0xff] %v3778_v49  ;;  %v1938_v61 = vrot.slane %v790_v45, %v5080_v3  ;;  %v1942_v62 = vrot.slane %v790_v45, %v5082_v4  ;;  %v1946_v63 = vrot.slane %v790_v45, %v5084_v5  ;;  %v472_v43 = vld [vmem:[%s5064_s23 + $0x7e8] sm:$0xff]  ;;  %v795_v44 = vld [vmem:[%s5072_s3 + $0x100] sm:$0xf] }
  0xfa   : > { %4291 = vst [vmem:[%s5111_s20 + $0x740] sm:$0xff] %v3779_v53  ;;  %4292 = vst [vmem:[%s5111_s20 + $0x748] sm:$0xff] %v3780_v54  ;;  %v1950_v7 = vrot.slane %v791_v52, %v5078_v2  ;;  %v1954_v8 = vrot.slane %v791_v52, %v5080_v3  ;;  %v1958_v9 = vrot.slane %v791_v52, %v5082_v4  ;;  %v473_v49 = vld [vmem:[%s5064_s23 + $0x7f0] sm:$0xff] }
  0xfb   : > { %4293 = vst [vmem:[%s5111_s20 + $0x750] sm:$0xff] %v3781_v55  ;;  %4294 = vst [vmem:[%s5111_s20 + $0x758] sm:$0xff] %v3782_v56  ;;  %v1962_v10 = vrot.slane %v791_v52, %v5084_v5  ;;  %v3783_v12 = vadd.f32 %v1934_v60, %v455_v50  ;;  %v3784_v13 = vadd.f32 %v1938_v61, %v456_v51  ;;  %v474_v50 = vld [vmem:[%s5064_s23 + $0x7f8] sm:$0xff]  ;;  %v475_v51 = vld [vmem:[%s5064_s23 + $0x800] sm:$0xff] }
  0xfc   : > { %v3785_v14 = vadd.f32 %v1942_v62, %v457_v57  ;;  %v3786_v15 = vadd.f32 %v1946_v63, %v458_v58  ;;  %v3787_v19 = vadd.f32 %v1950_v7, %v459_v59  ;;  %v3788_v20 = vadd.f32 %v1954_v8, %v460_v0  ;;  %v476_v56 = vld [vmem:[%s5064_s23 + $0x808] sm:$0xff]  ;;  %v477_v57 = vld [vmem:[%s5064_s23 + $0x810] sm:$0xff]  ;;  %v478_v58 = vld [vmem:[%s5064_s23 + $0x818] sm:$0xff] }
  0xfd   : > { %v3789_v21 = vadd.f32 %v1958_v9, %v461_v1  ;;  %v3790_v22 = vadd.f32 %v1962_v10, %v462_v6  ;;  %4295 = vst [vmem:[%s5111_s20 + $0x760] sm:$0xff] %v3783_v12  ;;  %4296 = vst [vmem:[%s5111_s20 + $0x768] sm:$0xff] %v3784_v13  ;;  %v1966_v26 = vrot.slane %v792_v11, %v5078_v2  ;;  %v796_v63 = vld [vmem:[%s5072_s3 + $0x104] sm:$0xf]  ;;  %v480_v9 = vld [vmem:[%s5064_s23 + $0x828] sm:$0xff] }
  0xfe   : > { %4297 = vst [vmem:[%s5111_s20 + $0x770] sm:$0xff] %v3785_v14  ;;  %4298 = vst [vmem:[%s5111_s20 + $0x778] sm:$0xff] %v3786_v15  ;;  %v1970_v27 = vrot.slane %v792_v11, %v5080_v3  ;;  %v1974_v28 = vrot.slane %v792_v11, %v5082_v4  ;;  %v1978_v29 = vrot.slane %v792_v11, %v5084_v5  ;;  %v479_v8 = vld [vmem:[%s5064_s23 + $0x820] sm:$0xff]  ;;  %v797_v10 = vld [vmem:[%s5072_s3 + $0x108] sm:$0xf] }
  0xff   : > { %4299 = vst [vmem:[%s5111_s20 + $0x780] sm:$0xff] %v3787_v19  ;;  %4300 = vst [vmem:[%s5111_s20 + $0x788] sm:$0xff] %v3788_v20  ;;  %v1982_v33 = vrot.slane %v793_v18, %v5078_v2  ;;  %v1986_v34 = vrot.slane %v793_v18, %v5080_v3  ;;  %v1990_v35 = vrot.slane %v793_v18, %v5082_v4  ;;  %v481_v15 = vld [vmem:[%s5064_s23 + $0x830] sm:$0xff] }
 0x100   : > { %4301 = vst [vmem:[%s5111_s20 + $0x790] sm:$0xff] %v3789_v21  ;;  %4302 = vst [vmem:[%s5111_s20 + $0x798] sm:$0xff] %v3790_v22  ;;  %v1994_v36 = vrot.slane %v793_v18, %v5084_v5  ;;  %v3791_v38 = vadd.f32 %v1966_v26, %v463_v16  ;;  %v3792_v39 = vadd.f32 %v1970_v27, %v464_v17  ;;  %v482_v16 = vld [vmem:[%s5064_s23 + $0x838] sm:$0xff]  ;;  %v483_v17 = vld [vmem:[%s5064_s23 + $0x840] sm:$0xff] }
 0x101   : > { %v3793_v40 = vadd.f32 %v1974_v28, %v465_v23  ;;  %v3794_v41 = vadd.f32 %v1978_v29, %v466_v24  ;;  %v3795_v45 = vadd.f32 %v1982_v33, %v467_v25  ;;  %v3796_v46 = vadd.f32 %v1986_v34, %v468_v30  ;;  %v484_v22 = vld [vmem:[%s5064_s23 + $0x848] sm:$0xff]  ;;  %v485_v23 = vld [vmem:[%s5064_s23 + $0x850] sm:$0xff]  ;;  %v486_v24 = vld [vmem:[%s5064_s23 + $0x858] sm:$0xff] }
 0x102   : > { %v3797_v47 = vadd.f32 %v1990_v35, %v469_v31  ;;  %v3798_v48 = vadd.f32 %v1994_v36, %v470_v32  ;;  %4303 = vst [vmem:[%s5111_s20 + $0x7a0] sm:$0xff] %v3791_v38  ;;  %4304 = vst [vmem:[%s5111_s20 + $0x7a8] sm:$0xff] %v3792_v39  ;;  %v1998_v52 = vrot.slane %v794_v37, %v5078_v2  ;;  %v798_v29 = vld [vmem:[%s5072_s3 + $0x10c] sm:$0xf]  ;;  %v487_v34 = vld [vmem:[%s5064_s23 + $0x860] sm:$0xff] }
 0x103   : > { %4305 = vst [vmem:[%s5111_s20 + $0x7b0] sm:$0xff] %v3793_v40  ;;  %4306 = vst [vmem:[%s5111_s20 + $0x7b8] sm:$0xff] %v3794_v41  ;;  %v2002_v53 = vrot.slane %v794_v37, %v5080_v3  ;;  %v2006_v54 = vrot.slane %v794_v37, %v5082_v4  ;;  %v2010_v55 = vrot.slane %v794_v37, %v5084_v5  ;;  %v488_v35 = vld [vmem:[%s5064_s23 + $0x868] sm:$0xff]  ;;  %v799_v36 = vld [vmem:[%s5072_s3 + $0x110] sm:$0xf] }
 0x104   : > { %4307 = vst [vmem:[%s5111_s20 + $0x7c0] sm:$0xff] %v3795_v45  ;;  %4308 = vst [vmem:[%s5111_s20 + $0x7c8] sm:$0xff] %v3796_v46  ;;  %v2014_v59 = vrot.slane %v795_v44, %v5078_v2  ;;  %v2018_v60 = vrot.slane %v795_v44, %v5080_v3  ;;  %v2022_v61 = vrot.slane %v795_v44, %v5082_v4  ;;  %v489_v41 = vld [vmem:[%s5064_s23 + $0x870] sm:$0xff] }
 0x105   : > { %4309 = vst [vmem:[%s5111_s20 + $0x7d0] sm:$0xff] %v3797_v47  ;;  %4310 = vst [vmem:[%s5111_s20 + $0x7d8] sm:$0xff] %v3798_v48  ;;  %v2026_v62 = vrot.slane %v795_v44, %v5084_v5  ;;  %v3799_v0 = vadd.f32 %v1998_v52, %v471_v42  ;;  %v3800_v1 = vadd.f32 %v2002_v53, %v472_v43  ;;  %v490_v42 = vld [vmem:[%s5064_s23 + $0x878] sm:$0xff]  ;;  %v491_v43 = vld [vmem:[%s5064_s23 + $0x880] sm:$0xff] }
 0x106   : > { %v3801_v6 = vadd.f32 %v2006_v54, %v473_v49  ;;  %v3802_v7 = vadd.f32 %v2010_v55, %v474_v50  ;;  %v3803_v11 = vadd.f32 %v2014_v59, %v475_v51  ;;  %v3804_v12 = vadd.f32 %v2018_v60, %v476_v56  ;;  %v492_v48 = vld [vmem:[%s5064_s23 + $0x888] sm:$0xff]  ;;  %v493_v49 = vld [vmem:[%s5064_s23 + $0x890] sm:$0xff]  ;;  %v494_v50 = vld [vmem:[%s5064_s23 + $0x898] sm:$0xff] }
 0x107   : > { %v3805_v13 = vadd.f32 %v2022_v61, %v477_v57  ;;  %v3806_v14 = vadd.f32 %v2026_v62, %v478_v58  ;;  %4311 = vst [vmem:[%s5111_s20 + $0x7e0] sm:$0xff] %v3799_v0  ;;  %4312 = vst [vmem:[%s5111_s20 + $0x7e8] sm:$0xff] %v3800_v1  ;;  %v2030_v18 = vrot.slane %v796_v63, %v5078_v2  ;;  %v800_v55 = vld [vmem:[%s5072_s3 + $0x114] sm:$0xf]  ;;  %v495_v60 = vld [vmem:[%s5064_s23 + $0x8a0] sm:$0xff] }
 0x108   : > { %4313 = vst [vmem:[%s5111_s20 + $0x7f0] sm:$0xff] %v3801_v6  ;;  %4314 = vst [vmem:[%s5111_s20 + $0x7f8] sm:$0xff] %v3802_v7  ;;  %v2034_v19 = vrot.slane %v796_v63, %v5080_v3  ;;  %v2038_v20 = vrot.slane %v796_v63, %v5082_v4  ;;  %v2042_v21 = vrot.slane %v796_v63, %v5084_v5  ;;  %v496_v61 = vld [vmem:[%s5064_s23 + $0x8a8] sm:$0xff]  ;;  %v801_v62 = vld [vmem:[%s5072_s3 + $0x118] sm:$0xf] }
 0x109   : > { %4315 = vst [vmem:[%s5111_s20 + $0x800] sm:$0xff] %v3803_v11  ;;  %4316 = vst [vmem:[%s5111_s20 + $0x808] sm:$0xff] %v3804_v12  ;;  %v2046_v25 = vrot.slane %v797_v10, %v5078_v2  ;;  %v2050_v26 = vrot.slane %v797_v10, %v5080_v3  ;;  %v2054_v27 = vrot.slane %v797_v10, %v5082_v4  ;;  %v497_v7 = vld [vmem:[%s5064_s23 + $0x8b0] sm:$0xff] }
 0x10a   : > { %4317 = vst [vmem:[%s5111_s20 + $0x810] sm:$0xff] %v3805_v13  ;;  %4318 = vst [vmem:[%s5111_s20 + $0x818] sm:$0xff] %v3806_v14  ;;  %v2058_v28 = vrot.slane %v797_v10, %v5084_v5  ;;  %v3807_v30 = vadd.f32 %v2030_v18, %v479_v8  ;;  %v3808_v31 = vadd.f32 %v2034_v19, %v480_v9  ;;  %v498_v8 = vld [vmem:[%s5064_s23 + $0x8b8] sm:$0xff]  ;;  %v499_v9 = vld [vmem:[%s5064_s23 + $0x8c0] sm:$0xff] }
 0x10b   : > { %v3809_v32 = vadd.f32 %v2038_v20, %v481_v15  ;;  %v3810_v33 = vadd.f32 %v2042_v21, %v482_v16  ;;  %v3811_v37 = vadd.f32 %v2046_v25, %v483_v17  ;;  %v3812_v38 = vadd.f32 %v2050_v26, %v484_v22  ;;  %v500_v14 = vld [vmem:[%s5064_s23 + $0x8c8] sm:$0xff]  ;;  %v501_v15 = vld [vmem:[%s5064_s23 + $0x8d0] sm:$0xff]  ;;  %v502_v16 = vld [vmem:[%s5064_s23 + $0x8d8] sm:$0xff] }
 0x10c   : > { %v3813_v39 = vadd.f32 %v2054_v27, %v485_v23  ;;  %v3814_v40 = vadd.f32 %v2058_v28, %v486_v24  ;;  %4319 = vst [vmem:[%s5111_s20 + $0x820] sm:$0xff] %v3807_v30  ;;  %4320 = vst [vmem:[%s5111_s20 + $0x828] sm:$0xff] %v3808_v31  ;;  %v2062_v44 = vrot.slane %v798_v29, %v5078_v2  ;;  %v802_v21 = vld [vmem:[%s5072_s3 + $0x11c] sm:$0xf]  ;;  %v503_v26 = vld [vmem:[%s5064_s23 + $0x8e0] sm:$0xff] }
 0x10d   : > { %4321 = vst [vmem:[%s5111_s20 + $0x830] sm:$0xff] %v3809_v32  ;;  %4322 = vst [vmem:[%s5111_s20 + $0x838] sm:$0xff] %v3810_v33  ;;  %v2066_v45 = vrot.slane %v798_v29, %v5080_v3  ;;  %v2070_v46 = vrot.slane %v798_v29, %v5082_v4  ;;  %v2074_v47 = vrot.slane %v798_v29, %v5084_v5  ;;  %v504_v27 = vld [vmem:[%s5064_s23 + $0x8e8] sm:$0xff]  ;;  %v803_v28 = vld [vmem:[%s5072_s3 + $0x120] sm:$0xf] }
 0x10e   : > { %4323 = vst [vmem:[%s5111_s20 + $0x840] sm:$0xff] %v3811_v37  ;;  %4324 = vst [vmem:[%s5111_s20 + $0x848] sm:$0xff] %v3812_v38  ;;  %v2078_v51 = vrot.slane %v799_v36, %v5078_v2  ;;  %v2082_v52 = vrot.slane %v799_v36, %v5080_v3  ;;  %v2086_v53 = vrot.slane %v799_v36, %v5082_v4  ;;  %v505_v33 = vld [vmem:[%s5064_s23 + $0x8f0] sm:$0xff] }
 0x10f   : > { %4325 = vst [vmem:[%s5111_s20 + $0x850] sm:$0xff] %v3813_v39  ;;  %4326 = vst [vmem:[%s5111_s20 + $0x858] sm:$0xff] %v3814_v40  ;;  %v2090_v54 = vrot.slane %v799_v36, %v5084_v5  ;;  %v3815_v56 = vadd.f32 %v2062_v44, %v487_v34  ;;  %v3816_v57 = vadd.f32 %v2066_v45, %v488_v35  ;;  %v506_v34 = vld [vmem:[%s5064_s23 + $0x8f8] sm:$0xff]  ;;  %v507_v35 = vld [vmem:[%s5064_s23 + $0x900] sm:$0xff] }
 0x110   : > { %v3817_v58 = vadd.f32 %v2070_v46, %v489_v41  ;;  %v3818_v59 = vadd.f32 %v2074_v47, %v490_v42  ;;  %v3819_v63 = vadd.f32 %v2078_v51, %v491_v43  ;;  %v3820_v0 = vadd.f32 %v2082_v52, %v492_v48  ;;  %v508_v40 = vld [vmem:[%s5064_s23 + $0x908] sm:$0xff]  ;;  %v509_v41 = vld [vmem:[%s5064_s23 + $0x910] sm:$0xff]  ;;  %v510_v42 = vld [vmem:[%s5064_s23 + $0x918] sm:$0xff] }
 0x111   : > { %v3821_v1 = vadd.f32 %v2086_v53, %v493_v49  ;;  %v3822_v6 = vadd.f32 %v2090_v54, %v494_v50  ;;  %4327 = vst [vmem:[%s5111_s20 + $0x860] sm:$0xff] %v3815_v56  ;;  %4328 = vst [vmem:[%s5111_s20 + $0x868] sm:$0xff] %v3816_v57  ;;  %v2094_v10 = vrot.slane %v800_v55, %v5078_v2  ;;  %v804_v47 = vld [vmem:[%s5072_s3 + $0x124] sm:$0xf]  ;;  %v512_v53 = vld [vmem:[%s5064_s23 + $0x928] sm:$0xff] }
 0x112   : > { %4329 = vst [vmem:[%s5111_s20 + $0x870] sm:$0xff] %v3817_v58  ;;  %4330 = vst [vmem:[%s5111_s20 + $0x878] sm:$0xff] %v3818_v59  ;;  %v2098_v11 = vrot.slane %v800_v55, %v5080_v3  ;;  %v2102_v12 = vrot.slane %v800_v55, %v5082_v4  ;;  %v2106_v13 = vrot.slane %v800_v55, %v5084_v5  ;;  %v511_v52 = vld [vmem:[%s5064_s23 + $0x920] sm:$0xff]  ;;  %v805_v54 = vld [vmem:[%s5072_s3 + $0x128] sm:$0xf] }
 0x113   : > { %4331 = vst [vmem:[%s5111_s20 + $0x880] sm:$0xff] %v3819_v63  ;;  %4332 = vst [vmem:[%s5111_s20 + $0x888] sm:$0xff] %v3820_v0  ;;  %v2110_v17 = vrot.slane %v801_v62, %v5078_v2  ;;  %v2114_v18 = vrot.slane %v801_v62, %v5080_v3  ;;  %v2118_v19 = vrot.slane %v801_v62, %v5082_v4  ;;  %v513_v59 = vld [vmem:[%s5064_s23 + $0x930] sm:$0xff] }
 0x114   : > { %4333 = vst [vmem:[%s5111_s20 + $0x890] sm:$0xff] %v3821_v1  ;;  %4334 = vst [vmem:[%s5111_s20 + $0x898] sm:$0xff] %v3822_v6  ;;  %v2122_v20 = vrot.slane %v801_v62, %v5084_v5  ;;  %v3823_v22 = vadd.f32 %v2094_v10, %v495_v60  ;;  %v3824_v23 = vadd.f32 %v2098_v11, %v496_v61  ;;  %v514_v60 = vld [vmem:[%s5064_s23 + $0x938] sm:$0xff]  ;;  %v515_v61 = vld [vmem:[%s5064_s23 + $0x940] sm:$0xff] }
 0x115   : > { %v3825_v24 = vadd.f32 %v2102_v12, %v497_v7  ;;  %v3826_v25 = vadd.f32 %v2106_v13, %v498_v8  ;;  %v3827_v29 = vadd.f32 %v2110_v17, %v499_v9  ;;  %v3828_v30 = vadd.f32 %v2114_v18, %v500_v14  ;;  %v516_v6 = vld [vmem:[%s5064_s23 + $0x948] sm:$0xff]  ;;  %v517_v7 = vld [vmem:[%s5064_s23 + $0x950] sm:$0xff]  ;;  %v518_v8 = vld [vmem:[%s5064_s23 + $0x958] sm:$0xff] }
 0x116   : > { %v3829_v31 = vadd.f32 %v2118_v19, %v501_v15  ;;  %v3830_v32 = vadd.f32 %v2122_v20, %v502_v16  ;;  %4335 = vst [vmem:[%s5111_s20 + $0x8a0] sm:$0xff] %v3823_v22  ;;  %4336 = vst [vmem:[%s5111_s20 + $0x8a8] sm:$0xff] %v3824_v23  ;;  %v2126_v36 = vrot.slane %v802_v21, %v5078_v2  ;;  %v806_v13 = vld [vmem:[%s5072_s3 + $0x12c] sm:$0xf]  ;;  %v519_v18 = vld [vmem:[%s5064_s23 + $0x960] sm:$0xff] }
 0x117   : > { %4337 = vst [vmem:[%s5111_s20 + $0x8b0] sm:$0xff] %v3825_v24  ;;  %4338 = vst [vmem:[%s5111_s20 + $0x8b8] sm:$0xff] %v3826_v25  ;;  %v2130_v37 = vrot.slane %v802_v21, %v5080_v3  ;;  %v2134_v38 = vrot.slane %v802_v21, %v5082_v4  ;;  %v2138_v39 = vrot.slane %v802_v21, %v5084_v5  ;;  %v520_v19 = vld [vmem:[%s5064_s23 + $0x968] sm:$0xff]  ;;  %v807_v20 = vld [vmem:[%s5072_s3 + $0x130] sm:$0xf] }
 0x118   : > { %4339 = vst [vmem:[%s5111_s20 + $0x8c0] sm:$0xff] %v3827_v29  ;;  %4340 = vst [vmem:[%s5111_s20 + $0x8c8] sm:$0xff] %v3828_v30  ;;  %v2142_v43 = vrot.slane %v803_v28, %v5078_v2  ;;  %v2146_v44 = vrot.slane %v803_v28, %v5080_v3  ;;  %v2150_v45 = vrot.slane %v803_v28, %v5082_v4  ;;  %v521_v25 = vld [vmem:[%s5064_s23 + $0x970] sm:$0xff] }
 0x119   : > { %4341 = vst [vmem:[%s5111_s20 + $0x8d0] sm:$0xff] %v3829_v31  ;;  %4342 = vst [vmem:[%s5111_s20 + $0x8d8] sm:$0xff] %v3830_v32  ;;  %v2154_v46 = vrot.slane %v803_v28, %v5084_v5  ;;  %v3831_v48 = vadd.f32 %v2126_v36, %v503_v26  ;;  %v3832_v49 = vadd.f32 %v2130_v37, %v504_v27  ;;  %v522_v26 = vld [vmem:[%s5064_s23 + $0x978] sm:$0xff]  ;;  %v523_v27 = vld [vmem:[%s5064_s23 + $0x980] sm:$0xff] }
 0x11a   : > { %v3833_v50 = vadd.f32 %v2134_v38, %v505_v33  ;;  %v3834_v51 = vadd.f32 %v2138_v39, %v506_v34  ;;  %v3835_v55 = vadd.f32 %v2142_v43, %v507_v35  ;;  %v3836_v56 = vadd.f32 %v2146_v44, %v508_v40  ;;  %v524_v32 = vld [vmem:[%s5064_s23 + $0x988] sm:$0xff]  ;;  %v525_v33 = vld [vmem:[%s5064_s23 + $0x990] sm:$0xff]  ;;  %v526_v34 = vld [vmem:[%s5064_s23 + $0x998] sm:$0xff] }
 0x11b   : > { %v3837_v57 = vadd.f32 %v2150_v45, %v509_v41  ;;  %v3838_v58 = vadd.f32 %v2154_v46, %v510_v42  ;;  %4343 = vst [vmem:[%s5111_s20 + $0x8e0] sm:$0xff] %v3831_v48  ;;  %4344 = vst [vmem:[%s5111_s20 + $0x8e8] sm:$0xff] %v3832_v49  ;;  %v2158_v62 = vrot.slane %v804_v47, %v5078_v2  ;;  %v808_v39 = vld [vmem:[%s5072_s3 + $0x134] sm:$0xf]  ;;  %v527_v44 = vld [vmem:[%s5064_s23 + $0x9a0] sm:$0xff] }
 0x11c   : > { %4345 = vst [vmem:[%s5111_s20 + $0x8f0] sm:$0xff] %v3833_v50  ;;  %4346 = vst [vmem:[%s5111_s20 + $0x8f8] sm:$0xff] %v3834_v51  ;;  %v2162_v63 = vrot.slane %v804_v47, %v5080_v3  ;;  %v2166_v0 = vrot.slane %v804_v47, %v5082_v4  ;;  %v2170_v1 = vrot.slane %v804_v47, %v5084_v5  ;;  %v528_v45 = vld [vmem:[%s5064_s23 + $0x9a8] sm:$0xff]  ;;  %v809_v46 = vld [vmem:[%s5072_s3 + $0x138] sm:$0xf] }
 0x11d   : > { %4347 = vst [vmem:[%s5111_s20 + $0x900] sm:$0xff] %v3835_v55  ;;  %4348 = vst [vmem:[%s5111_s20 + $0x908] sm:$0xff] %v3836_v56  ;;  %v2174_v9 = vrot.slane %v805_v54, %v5078_v2  ;;  %v2178_v10 = vrot.slane %v805_v54, %v5080_v3  ;;  %v2182_v11 = vrot.slane %v805_v54, %v5082_v4  ;;  %v529_v51 = vld [vmem:[%s5064_s23 + $0x9b0] sm:$0xff] }
 0x11e   : > { %4349 = vst [vmem:[%s5111_s20 + $0x910] sm:$0xff] %v3837_v57  ;;  %4350 = vst [vmem:[%s5111_s20 + $0x918] sm:$0xff] %v3838_v58  ;;  %v2186_v12 = vrot.slane %v805_v54, %v5084_v5  ;;  %v3839_v14 = vadd.f32 %v2158_v62, %v511_v52  ;;  %v3840_v15 = vadd.f32 %v2162_v63, %v512_v53  ;;  %v530_v52 = vld [vmem:[%s5064_s23 + $0x9b8] sm:$0xff]  ;;  %v531_v53 = vld [vmem:[%s5064_s23 + $0x9c0] sm:$0xff] }
 0x11f   : > { %v3841_v16 = vadd.f32 %v2166_v0, %v513_v59  ;;  %v3842_v17 = vadd.f32 %v2170_v1, %v514_v60  ;;  %v3843_v21 = vadd.f32 %v2174_v9, %v515_v61  ;;  %v3844_v22 = vadd.f32 %v2178_v10, %v516_v6  ;;  %v532_v58 = vld [vmem:[%s5064_s23 + $0x9c8] sm:$0xff]  ;;  %v533_v59 = vld [vmem:[%s5064_s23 + $0x9d0] sm:$0xff]  ;;  %v534_v60 = vld [vmem:[%s5064_s23 + $0x9d8] sm:$0xff] }
 0x120   : > { %v3845_v23 = vadd.f32 %v2182_v11, %v517_v7  ;;  %v3846_v24 = vadd.f32 %v2186_v12, %v518_v8  ;;  %4351 = vst [vmem:[%s5111_s20 + $0x920] sm:$0xff] %v3839_v14  ;;  %4352 = vst [vmem:[%s5111_s20 + $0x928] sm:$0xff] %v3840_v15  ;;  %v2190_v28 = vrot.slane %v806_v13, %v5078_v2  ;;  %v810_v1 = vld [vmem:[%s5072_s3 + $0x13c] sm:$0xf]  ;;  %v535_v10 = vld [vmem:[%s5064_s23 + $0x9e0] sm:$0xff] }
 0x121   : > { %4353 = vst [vmem:[%s5111_s20 + $0x930] sm:$0xff] %v3841_v16  ;;  %4354 = vst [vmem:[%s5111_s20 + $0x938] sm:$0xff] %v3842_v17  ;;  %v2194_v29 = vrot.slane %v806_v13, %v5080_v3  ;;  %v2198_v30 = vrot.slane %v806_v13, %v5082_v4  ;;  %v2202_v31 = vrot.slane %v806_v13, %v5084_v5  ;;  %v536_v11 = vld [vmem:[%s5064_s23 + $0x9e8] sm:$0xff]  ;;  %v811_v12 = vld [vmem:[%s5072_s3 + $0x140] sm:$0xf] }
 0x122   : > { %4355 = vst [vmem:[%s5111_s20 + $0x940] sm:$0xff] %v3843_v21  ;;  %4356 = vst [vmem:[%s5111_s20 + $0x948] sm:$0xff] %v3844_v22  ;;  %v2206_v35 = vrot.slane %v807_v20, %v5078_v2  ;;  %v2210_v36 = vrot.slane %v807_v20, %v5080_v3  ;;  %v2214_v37 = vrot.slane %v807_v20, %v5082_v4  ;;  %v537_v17 = vld [vmem:[%s5064_s23 + $0x9f0] sm:$0xff] }
 0x123   : > { %4357 = vst [vmem:[%s5111_s20 + $0x950] sm:$0xff] %v3845_v23  ;;  %4358 = vst [vmem:[%s5111_s20 + $0x958] sm:$0xff] %v3846_v24  ;;  %v2218_v38 = vrot.slane %v807_v20, %v5084_v5  ;;  %v3847_v40 = vadd.f32 %v2190_v28, %v519_v18  ;;  %v3848_v41 = vadd.f32 %v2194_v29, %v520_v19  ;;  %v538_v18 = vld [vmem:[%s5064_s23 + $0x9f8] sm:$0xff]  ;;  %v539_v19 = vld [vmem:[%s5064_s23 + $0xa00] sm:$0xff] }
 0x124   : > { %v3849_v42 = vadd.f32 %v2198_v30, %v521_v25  ;;  %v3850_v43 = vadd.f32 %v2202_v31, %v522_v26  ;;  %v3851_v47 = vadd.f32 %v2206_v35, %v523_v27  ;;  %v3852_v48 = vadd.f32 %v2210_v36, %v524_v32  ;;  %v540_v24 = vld [vmem:[%s5064_s23 + $0xa08] sm:$0xff]  ;;  %v541_v25 = vld [vmem:[%s5064_s23 + $0xa10] sm:$0xff]  ;;  %v542_v26 = vld [vmem:[%s5064_s23 + $0xa18] sm:$0xff] }
 0x125   : > { %v3853_v49 = vadd.f32 %v2214_v37, %v525_v33  ;;  %v3854_v50 = vadd.f32 %v2218_v38, %v526_v34  ;;  %4359 = vst [vmem:[%s5111_s20 + $0x960] sm:$0xff] %v3847_v40  ;;  %4360 = vst [vmem:[%s5111_s20 + $0x968] sm:$0xff] %v3848_v41  ;;  %v2222_v54 = vrot.slane %v808_v39, %v5078_v2  ;;  %v812_v31 = vld [vmem:[%s5072_s3 + $0x144] sm:$0xf]  ;;  %v544_v37 = vld [vmem:[%s5064_s23 + $0xa28] sm:$0xff] }
 0x126   : > { %4361 = vst [vmem:[%s5111_s20 + $0x970] sm:$0xff] %v3849_v42  ;;  %4362 = vst [vmem:[%s5111_s20 + $0x978] sm:$0xff] %v3850_v43  ;;  %v2226_v55 = vrot.slane %v808_v39, %v5080_v3  ;;  %v2230_v56 = vrot.slane %v808_v39, %v5082_v4  ;;  %v2234_v57 = vrot.slane %v808_v39, %v5084_v5  ;;  %v543_v36 = vld [vmem:[%s5064_s23 + $0xa20] sm:$0xff]  ;;  %v813_v38 = vld [vmem:[%s5072_s3 + $0x148] sm:$0xf] }
 0x127   : > { %4363 = vst [vmem:[%s5111_s20 + $0x980] sm:$0xff] %v3851_v47  ;;  %4364 = vst [vmem:[%s5111_s20 + $0x988] sm:$0xff] %v3852_v48  ;;  %v2238_v61 = vrot.slane %v809_v46, %v5078_v2  ;;  %v2242_v62 = vrot.slane %v809_v46, %v5080_v3  ;;  %v2246_v63 = vrot.slane %v809_v46, %v5082_v4  ;;  %v545_v43 = vld [vmem:[%s5064_s23 + $0xa30] sm:$0xff] }
 0x128   : > { %4365 = vst [vmem:[%s5111_s20 + $0x990] sm:$0xff] %v3853_v49  ;;  %4366 = vst [vmem:[%s5111_s20 + $0x998] sm:$0xff] %v3854_v50  ;;  %v2250_v0 = vrot.slane %v809_v46, %v5084_v5  ;;  %v3855_v6 = vadd.f32 %v2222_v54, %v527_v44  ;;  %v3856_v7 = vadd.f32 %v2226_v55, %v528_v45  ;;  %v546_v44 = vld [vmem:[%s5064_s23 + $0xa38] sm:$0xff]  ;;  %v547_v45 = vld [vmem:[%s5064_s23 + $0xa40] sm:$0xff] }
 0x129   : > { %v3857_v8 = vadd.f32 %v2230_v56, %v529_v51  ;;  %v3858_v9 = vadd.f32 %v2234_v57, %v530_v52  ;;  %v3859_v13 = vadd.f32 %v2238_v61, %v531_v53  ;;  %v3860_v14 = vadd.f32 %v2242_v62, %v532_v58  ;;  %v548_v50 = vld [vmem:[%s5064_s23 + $0xa48] sm:$0xff]  ;;  %v549_v51 = vld [vmem:[%s5064_s23 + $0xa50] sm:$0xff]  ;;  %v550_v52 = vld [vmem:[%s5064_s23 + $0xa58] sm:$0xff] }
 0x12a   : > { %v3861_v15 = vadd.f32 %v2246_v63, %v533_v59  ;;  %v3862_v16 = vadd.f32 %v2250_v0, %v534_v60  ;;  %4367 = vst [vmem:[%s5111_s20 + $0x9a0] sm:$0xff] %v3855_v6  ;;  %4368 = vst [vmem:[%s5111_s20 + $0x9a8] sm:$0xff] %v3856_v7  ;;  %v2254_v20 = vrot.slane %v810_v1, %v5078_v2  ;;  %v814_v57 = vld [vmem:[%s5072_s3 + $0x14c] sm:$0xf]  ;;  %v551_v62 = vld [vmem:[%s5064_s23 + $0xa60] sm:$0xff] }
 0x12b   : > { %4369 = vst [vmem:[%s5111_s20 + $0x9b0] sm:$0xff] %v3857_v8  ;;  %4370 = vst [vmem:[%s5111_s20 + $0x9b8] sm:$0xff] %v3858_v9  ;;  %v2258_v21 = vrot.slane %v810_v1, %v5080_v3  ;;  %v2262_v22 = vrot.slane %v810_v1, %v5082_v4  ;;  %v2266_v23 = vrot.slane %v810_v1, %v5084_v5  ;;  %v552_v63 = vld [vmem:[%s5064_s23 + $0xa68] sm:$0xff]  ;;  %v815_v0 = vld [vmem:[%s5072_s3 + $0x150] sm:$0xf] }
 0x12c   : > { %4371 = vst [vmem:[%s5111_s20 + $0x9c0] sm:$0xff] %v3859_v13  ;;  %4372 = vst [vmem:[%s5111_s20 + $0x9c8] sm:$0xff] %v3860_v14  ;;  %v2270_v27 = vrot.slane %v811_v12, %v5078_v2  ;;  %v2274_v28 = vrot.slane %v811_v12, %v5080_v3  ;;  %v2278_v29 = vrot.slane %v811_v12, %v5082_v4  ;;  %v553_v9 = vld [vmem:[%s5064_s23 + $0xa70] sm:$0xff] }
 0x12d   : > { %4373 = vst [vmem:[%s5111_s20 + $0x9d0] sm:$0xff] %v3861_v15  ;;  %4374 = vst [vmem:[%s5111_s20 + $0x9d8] sm:$0xff] %v3862_v16  ;;  %v2282_v30 = vrot.slane %v811_v12, %v5084_v5  ;;  %v3863_v32 = vadd.f32 %v2254_v20, %v535_v10  ;;  %v3864_v33 = vadd.f32 %v2258_v21, %v536_v11  ;;  %v554_v10 = vld [vmem:[%s5064_s23 + $0xa78] sm:$0xff]  ;;  %v555_v11 = vld [vmem:[%s5064_s23 + $0xa80] sm:$0xff] }
 0x12e   : > { %v3865_v34 = vadd.f32 %v2262_v22, %v537_v17  ;;  %v3866_v35 = vadd.f32 %v2266_v23, %v538_v18  ;;  %v3867_v39 = vadd.f32 %v2270_v27, %v539_v19  ;;  %v3868_v40 = vadd.f32 %v2274_v28, %v540_v24  ;;  %v556_v16 = vld [vmem:[%s5064_s23 + $0xa88] sm:$0xff]  ;;  %v557_v17 = vld [vmem:[%s5064_s23 + $0xa90] sm:$0xff]  ;;  %v558_v18 = vld [vmem:[%s5064_s23 + $0xa98] sm:$0xff] }
 0x12f   : > { %v3869_v41 = vadd.f32 %v2278_v29, %v541_v25  ;;  %v3870_v42 = vadd.f32 %v2282_v30, %v542_v26  ;;  %4375 = vst [vmem:[%s5111_s20 + $0x9e0] sm:$0xff] %v3863_v32  ;;  %4376 = vst [vmem:[%s5111_s20 + $0x9e8] sm:$0xff] %v3864_v33  ;;  %v2286_v46 = vrot.slane %v812_v31, %v5078_v2  ;;  %v816_v23 = vld [vmem:[%s5072_s3 + $0x154] sm:$0xf]  ;;  %v559_v28 = vld [vmem:[%s5064_s23 + $0xaa0] sm:$0xff] }
 0x130   : > { %4377 = vst [vmem:[%s5111_s20 + $0x9f0] sm:$0xff] %v3865_v34  ;;  %4378 = vst [vmem:[%s5111_s20 + $0x9f8] sm:$0xff] %v3866_v35  ;;  %v2290_v47 = vrot.slane %v812_v31, %v5080_v3  ;;  %v2294_v48 = vrot.slane %v812_v31, %v5082_v4  ;;  %v2298_v49 = vrot.slane %v812_v31, %v5084_v5  ;;  %v560_v29 = vld [vmem:[%s5064_s23 + $0xaa8] sm:$0xff]  ;;  %v817_v30 = vld [vmem:[%s5072_s3 + $0x158] sm:$0xf] }
 0x131   : > { %4379 = vst [vmem:[%s5111_s20 + $0xa00] sm:$0xff] %v3867_v39  ;;  %4380 = vst [vmem:[%s5111_s20 + $0xa08] sm:$0xff] %v3868_v40  ;;  %v2302_v53 = vrot.slane %v813_v38, %v5078_v2  ;;  %v2306_v54 = vrot.slane %v813_v38, %v5080_v3  ;;  %v2310_v55 = vrot.slane %v813_v38, %v5082_v4  ;;  %v561_v35 = vld [vmem:[%s5064_s23 + $0xab0] sm:$0xff] }
 0x132   : > { %4381 = vst [vmem:[%s5111_s20 + $0xa10] sm:$0xff] %v3869_v41  ;;  %4382 = vst [vmem:[%s5111_s20 + $0xa18] sm:$0xff] %v3870_v42  ;;  %v2314_v56 = vrot.slane %v813_v38, %v5084_v5  ;;  %v3871_v58 = vadd.f32 %v2286_v46, %v543_v36  ;;  %v3872_v59 = vadd.f32 %v2290_v47, %v544_v37  ;;  %v562_v36 = vld [vmem:[%s5064_s23 + $0xab8] sm:$0xff]  ;;  %v563_v37 = vld [vmem:[%s5064_s23 + $0xac0] sm:$0xff] }
 0x133   : > { %v3873_v60 = vadd.f32 %v2294_v48, %v545_v43  ;;  %v3874_v61 = vadd.f32 %v2298_v49, %v546_v44  ;;  %v3875_v1 = vadd.f32 %v2302_v53, %v547_v45  ;;  %v3876_v6 = vadd.f32 %v2306_v54, %v548_v50  ;;  %v564_v42 = vld [vmem:[%s5064_s23 + $0xac8] sm:$0xff]  ;;  %v565_v43 = vld [vmem:[%s5064_s23 + $0xad0] sm:$0xff]  ;;  %v566_v44 = vld [vmem:[%s5064_s23 + $0xad8] sm:$0xff] }
 0x134   : > { %v3877_v7 = vadd.f32 %v2310_v55, %v549_v51  ;;  %v3878_v8 = vadd.f32 %v2314_v56, %v550_v52  ;;  %4383 = vst [vmem:[%s5111_s20 + $0xa20] sm:$0xff] %v3871_v58  ;;  %4384 = vst [vmem:[%s5111_s20 + $0xa28] sm:$0xff] %v3872_v59  ;;  %v2318_v12 = vrot.slane %v814_v57, %v5078_v2  ;;  %v818_v49 = vld [vmem:[%s5072_s3 + $0x15c] sm:$0xf]  ;;  %v567_v54 = vld [vmem:[%s5064_s23 + $0xae0] sm:$0xff] }
 0x135   : > { %4385 = vst [vmem:[%s5111_s20 + $0xa30] sm:$0xff] %v3873_v60  ;;  %4386 = vst [vmem:[%s5111_s20 + $0xa38] sm:$0xff] %v3874_v61  ;;  %v2322_v13 = vrot.slane %v814_v57, %v5080_v3  ;;  %v2326_v14 = vrot.slane %v814_v57, %v5082_v4  ;;  %v2330_v15 = vrot.slane %v814_v57, %v5084_v5  ;;  %v568_v55 = vld [vmem:[%s5064_s23 + $0xae8] sm:$0xff]  ;;  %v819_v56 = vld [vmem:[%s5072_s3 + $0x160] sm:$0xf] }
 0x136   : > { %4387 = vst [vmem:[%s5111_s20 + $0xa40] sm:$0xff] %v3875_v1  ;;  %4388 = vst [vmem:[%s5111_s20 + $0xa48] sm:$0xff] %v3876_v6  ;;  %v2334_v19 = vrot.slane %v815_v0, %v5078_v2  ;;  %v2338_v20 = vrot.slane %v815_v0, %v5080_v3  ;;  %v2342_v21 = vrot.slane %v815_v0, %v5082_v4  ;;  %v569_v61 = vld [vmem:[%s5064_s23 + $0xaf0] sm:$0xff] }
 0x137   : > { %4389 = vst [vmem:[%s5111_s20 + $0xa50] sm:$0xff] %v3877_v7  ;;  %4390 = vst [vmem:[%s5111_s20 + $0xa58] sm:$0xff] %v3878_v8  ;;  %v2346_v22 = vrot.slane %v815_v0, %v5084_v5  ;;  %v3879_v24 = vadd.f32 %v2318_v12, %v551_v62  ;;  %v3880_v25 = vadd.f32 %v2322_v13, %v552_v63  ;;  %v570_v62 = vld [vmem:[%s5064_s23 + $0xaf8] sm:$0xff]  ;;  %v571_v63 = vld [vmem:[%s5064_s23 + $0xb00] sm:$0xff] }
 0x138   : > { %v3881_v26 = vadd.f32 %v2326_v14, %v553_v9  ;;  %v3882_v27 = vadd.f32 %v2330_v15, %v554_v10  ;;  %v3883_v31 = vadd.f32 %v2334_v19, %v555_v11  ;;  %v3884_v32 = vadd.f32 %v2338_v20, %v556_v16  ;;  %v572_v8 = vld [vmem:[%s5064_s23 + $0xb08] sm:$0xff]  ;;  %v573_v9 = vld [vmem:[%s5064_s23 + $0xb10] sm:$0xff]  ;;  %v574_v10 = vld [vmem:[%s5064_s23 + $0xb18] sm:$0xff] }
 0x139   : > { %v3885_v33 = vadd.f32 %v2342_v21, %v557_v17  ;;  %v3886_v34 = vadd.f32 %v2346_v22, %v558_v18  ;;  %4391 = vst [vmem:[%s5111_s20 + $0xa60] sm:$0xff] %v3879_v24  ;;  %4392 = vst [vmem:[%s5111_s20 + $0xa68] sm:$0xff] %v3880_v25  ;;  %v2350_v38 = vrot.slane %v816_v23, %v5078_v2  ;;  %v820_v15 = vld [vmem:[%s5072_s3 + $0x164] sm:$0xf]  ;;  %v576_v21 = vld [vmem:[%s5064_s23 + $0xb28] sm:$0xff] }
 0x13a   : > { %4393 = vst [vmem:[%s5111_s20 + $0xa70] sm:$0xff] %v3881_v26  ;;  %4394 = vst [vmem:[%s5111_s20 + $0xa78] sm:$0xff] %v3882_v27  ;;  %v2354_v39 = vrot.slane %v816_v23, %v5080_v3  ;;  %v2358_v40 = vrot.slane %v816_v23, %v5082_v4  ;;  %v2362_v41 = vrot.slane %v816_v23, %v5084_v5  ;;  %v575_v20 = vld [vmem:[%s5064_s23 + $0xb20] sm:$0xff]  ;;  %v821_v22 = vld [vmem:[%s5072_s3 + $0x168] sm:$0xf] }
 0x13b   : > { %4395 = vst [vmem:[%s5111_s20 + $0xa80] sm:$0xff] %v3883_v31  ;;  %4396 = vst [vmem:[%s5111_s20 + $0xa88] sm:$0xff] %v3884_v32  ;;  %v2366_v45 = vrot.slane %v817_v30, %v5078_v2  ;;  %v2370_v46 = vrot.slane %v817_v30, %v5080_v3  ;;  %v2374_v47 = vrot.slane %v817_v30, %v5082_v4  ;;  %v577_v27 = vld [vmem:[%s5064_s23 + $0xb30] sm:$0xff] }
 0x13c   : > { %4397 = vst [vmem:[%s5111_s20 + $0xa90] sm:$0xff] %v3885_v33  ;;  %4398 = vst [vmem:[%s5111_s20 + $0xa98] sm:$0xff] %v3886_v34  ;;  %v2378_v48 = vrot.slane %v817_v30, %v5084_v5  ;;  %v3887_v50 = vadd.f32 %v2350_v38, %v559_v28  ;;  %v3888_v51 = vadd.f32 %v2354_v39, %v560_v29  ;;  %v578_v28 = vld [vmem:[%s5064_s23 + $0xb38] sm:$0xff]  ;;  %v579_v29 = vld [vmem:[%s5064_s23 + $0xb40] sm:$0xff] }
 0x13d   : > { %v3889_v52 = vadd.f32 %v2358_v40, %v561_v35  ;;  %v3890_v53 = vadd.f32 %v2362_v41, %v562_v36  ;;  %v3891_v57 = vadd.f32 %v2366_v45, %v563_v37  ;;  %v3892_v58 = vadd.f32 %v2370_v46, %v564_v42  ;;  %v580_v34 = vld [vmem:[%s5064_s23 + $0xb48] sm:$0xff]  ;;  %v581_v35 = vld [vmem:[%s5064_s23 + $0xb50] sm:$0xff]  ;;  %v582_v36 = vld [vmem:[%s5064_s23 + $0xb58] sm:$0xff] }
 0x13e   : > { %v3893_v59 = vadd.f32 %v2374_v47, %v565_v43  ;;  %v3894_v60 = vadd.f32 %v2378_v48, %v566_v44  ;;  %4399 = vst [vmem:[%s5111_s20 + $0xaa0] sm:$0xff] %v3887_v50  ;;  %4400 = vst [vmem:[%s5111_s20 + $0xaa8] sm:$0xff] %v3888_v51  ;;  %v2382_v0 = vrot.slane %v818_v49, %v5078_v2  ;;  %v822_v41 = vld [vmem:[%s5072_s3 + $0x16c] sm:$0xf]  ;;  %v583_v46 = vld [vmem:[%s5064_s23 + $0xb60] sm:$0xff] }
 0x13f   : > { %4401 = vst [vmem:[%s5111_s20 + $0xab0] sm:$0xff] %v3889_v52  ;;  %4402 = vst [vmem:[%s5111_s20 + $0xab8] sm:$0xff] %v3890_v53  ;;  %v2386_v1 = vrot.slane %v818_v49, %v5080_v3  ;;  %v2390_v6 = vrot.slane %v818_v49, %v5082_v4  ;;  %v2394_v7 = vrot.slane %v818_v49, %v5084_v5  ;;  %v584_v47 = vld [vmem:[%s5064_s23 + $0xb68] sm:$0xff]  ;;  %v823_v48 = vld [vmem:[%s5072_s3 + $0x170] sm:$0xf] }
 0x140   : > { %4403 = vst [vmem:[%s5111_s20 + $0xac0] sm:$0xff] %v3891_v57  ;;  %4404 = vst [vmem:[%s5111_s20 + $0xac8] sm:$0xff] %v3892_v58  ;;  %v2398_v11 = vrot.slane %v819_v56, %v5078_v2  ;;  %v2402_v12 = vrot.slane %v819_v56, %v5080_v3  ;;  %v2406_v13 = vrot.slane %v819_v56, %v5082_v4  ;;  %v585_v53 = vld [vmem:[%s5064_s23 + $0xb70] sm:$0xff] }
 0x141   : > { %4405 = vst [vmem:[%s5111_s20 + $0xad0] sm:$0xff] %v3893_v59  ;;  %4406 = vst [vmem:[%s5111_s20 + $0xad8] sm:$0xff] %v3894_v60  ;;  %v2410_v14 = vrot.slane %v819_v56, %v5084_v5  ;;  %v3895_v16 = vadd.f32 %v2382_v0, %v567_v54  ;;  %v3896_v17 = vadd.f32 %v2386_v1, %v568_v55  ;;  %v586_v54 = vld [vmem:[%s5064_s23 + $0xb78] sm:$0xff]  ;;  %v587_v55 = vld [vmem:[%s5064_s23 + $0xb80] sm:$0xff] }
 0x142   : > { %v3897_v18 = vadd.f32 %v2390_v6, %v569_v61  ;;  %v3898_v19 = vadd.f32 %v2394_v7, %v570_v62  ;;  %v3899_v23 = vadd.f32 %v2398_v11, %v571_v63  ;;  %v3900_v24 = vadd.f32 %v2402_v12, %v572_v8  ;;  %v588_v60 = vld [vmem:[%s5064_s23 + $0xb88] sm:$0xff]  ;;  %v589_v61 = vld [vmem:[%s5064_s23 + $0xb90] sm:$0xff]  ;;  %v590_v62 = vld [vmem:[%s5064_s23 + $0xb98] sm:$0xff] }
 0x143   : > { %v3901_v25 = vadd.f32 %v2406_v13, %v573_v9  ;;  %v3902_v26 = vadd.f32 %v2410_v14, %v574_v10  ;;  %4407 = vst [vmem:[%s5111_s20 + $0xae0] sm:$0xff] %v3895_v16  ;;  %4408 = vst [vmem:[%s5111_s20 + $0xae8] sm:$0xff] %v3896_v17  ;;  %v2414_v30 = vrot.slane %v820_v15, %v5078_v2  ;;  %v824_v7 = vld [vmem:[%s5072_s3 + $0x174] sm:$0xf]  ;;  %v591_v12 = vld [vmem:[%s5064_s23 + $0xba0] sm:$0xff] }
 0x144   : > { %4409 = vst [vmem:[%s5111_s20 + $0xaf0] sm:$0xff] %v3897_v18  ;;  %4410 = vst [vmem:[%s5111_s20 + $0xaf8] sm:$0xff] %v3898_v19  ;;  %v2418_v31 = vrot.slane %v820_v15, %v5080_v3  ;;  %v2422_v32 = vrot.slane %v820_v15, %v5082_v4  ;;  %v2426_v33 = vrot.slane %v820_v15, %v5084_v5  ;;  %v592_v13 = vld [vmem:[%s5064_s23 + $0xba8] sm:$0xff]  ;;  %v825_v14 = vld [vmem:[%s5072_s3 + $0x178] sm:$0xf] }
 0x145   : > { %4411 = vst [vmem:[%s5111_s20 + $0xb00] sm:$0xff] %v3899_v23  ;;  %4412 = vst [vmem:[%s5111_s20 + $0xb08] sm:$0xff] %v3900_v24  ;;  %v2430_v37 = vrot.slane %v821_v22, %v5078_v2  ;;  %v2434_v38 = vrot.slane %v821_v22, %v5080_v3  ;;  %v2438_v39 = vrot.slane %v821_v22, %v5082_v4  ;;  %v593_v19 = vld [vmem:[%s5064_s23 + $0xbb0] sm:$0xff] }
 0x146   : > { %4413 = vst [vmem:[%s5111_s20 + $0xb10] sm:$0xff] %v3901_v25  ;;  %4414 = vst [vmem:[%s5111_s20 + $0xb18] sm:$0xff] %v3902_v26  ;;  %v2442_v40 = vrot.slane %v821_v22, %v5084_v5  ;;  %v3903_v42 = vadd.f32 %v2414_v30, %v575_v20  ;;  %v3904_v43 = vadd.f32 %v2418_v31, %v576_v21  ;;  %v594_v20 = vld [vmem:[%s5064_s23 + $0xbb8] sm:$0xff]  ;;  %v595_v21 = vld [vmem:[%s5064_s23 + $0xbc0] sm:$0xff] }
 0x147   : > { %v3905_v44 = vadd.f32 %v2422_v32, %v577_v27  ;;  %v3906_v45 = vadd.f32 %v2426_v33, %v578_v28  ;;  %v3907_v49 = vadd.f32 %v2430_v37, %v579_v29  ;;  %v3908_v50 = vadd.f32 %v2434_v38, %v580_v34  ;;  %v596_v26 = vld [vmem:[%s5064_s23 + $0xbc8] sm:$0xff]  ;;  %v597_v27 = vld [vmem:[%s5064_s23 + $0xbd0] sm:$0xff]  ;;  %v598_v28 = vld [vmem:[%s5064_s23 + $0xbd8] sm:$0xff] }
 0x148   : > { %v3909_v51 = vadd.f32 %v2438_v39, %v581_v35  ;;  %v3910_v52 = vadd.f32 %v2442_v40, %v582_v36  ;;  %4415 = vst [vmem:[%s5111_s20 + $0xb20] sm:$0xff] %v3903_v42  ;;  %4416 = vst [vmem:[%s5111_s20 + $0xb28] sm:$0xff] %v3904_v43  ;;  %v2446_v56 = vrot.slane %v822_v41, %v5078_v2  ;;  %v826_v33 = vld [vmem:[%s5072_s3 + $0x17c] sm:$0xf]  ;;  %v599_v38 = vld [vmem:[%s5064_s23 + $0xbe0] sm:$0xff] }
 0x149   : > { %4417 = vst [vmem:[%s5111_s20 + $0xb30] sm:$0xff] %v3905_v44  ;;  %4418 = vst [vmem:[%s5111_s20 + $0xb38] sm:$0xff] %v3906_v45  ;;  %v2450_v57 = vrot.slane %v822_v41, %v5080_v3  ;;  %v2454_v58 = vrot.slane %v822_v41, %v5082_v4  ;;  %v2458_v59 = vrot.slane %v822_v41, %v5084_v5  ;;  %v600_v39 = vld [vmem:[%s5064_s23 + $0xbe8] sm:$0xff]  ;;  %v827_v40 = vld [vmem:[%s5072_s3 + $0x180] sm:$0xf] }
 0x14a   : > { %4419 = vst [vmem:[%s5111_s20 + $0xb40] sm:$0xff] %v3907_v49  ;;  %4420 = vst [vmem:[%s5111_s20 + $0xb48] sm:$0xff] %v3908_v50  ;;  %v2462_v63 = vrot.slane %v823_v48, %v5078_v2  ;;  %v2466_v0 = vrot.slane %v823_v48, %v5080_v3  ;;  %v2470_v1 = vrot.slane %v823_v48, %v5082_v4  ;;  %v601_v45 = vld [vmem:[%s5064_s23 + $0xbf0] sm:$0xff] }
 0x14b   : > { %4421 = vst [vmem:[%s5111_s20 + $0xb50] sm:$0xff] %v3909_v51  ;;  %4422 = vst [vmem:[%s5111_s20 + $0xb58] sm:$0xff] %v3910_v52  ;;  %v2474_v6 = vrot.slane %v823_v48, %v5084_v5  ;;  %v3911_v8 = vadd.f32 %v2446_v56, %v583_v46  ;;  %v3912_v9 = vadd.f32 %v2450_v57, %v584_v47  ;;  %v602_v46 = vld [vmem:[%s5064_s23 + $0xbf8] sm:$0xff]  ;;  %v603_v47 = vld [vmem:[%s5064_s23 + $0xc00] sm:$0xff] }
 0x14c   : > { %v3913_v10 = vadd.f32 %v2454_v58, %v585_v53  ;;  %v3914_v11 = vadd.f32 %v2458_v59, %v586_v54  ;;  %v3915_v15 = vadd.f32 %v2462_v63, %v587_v55  ;;  %v3916_v16 = vadd.f32 %v2466_v0, %v588_v60  ;;  %v604_v52 = vld [vmem:[%s5064_s23 + $0xc08] sm:$0xff]  ;;  %v605_v53 = vld [vmem:[%s5064_s23 + $0xc10] sm:$0xff]  ;;  %v606_v54 = vld [vmem:[%s5064_s23 + $0xc18] sm:$0xff] }
 0x14d   : > { %v3917_v17 = vadd.f32 %v2470_v1, %v589_v61  ;;  %v3918_v18 = vadd.f32 %v2474_v6, %v590_v62  ;;  %4423 = vst [vmem:[%s5111_s20 + $0xb60] sm:$0xff] %v3911_v8  ;;  %4424 = vst [vmem:[%s5111_s20 + $0xb68] sm:$0xff] %v3912_v9  ;;  %v2478_v22 = vrot.slane %v824_v7, %v5078_v2  ;;  %v828_v59 = vld [vmem:[%s5072_s3 + $0x184] sm:$0xf]  ;;  %v608_v1 = vld [vmem:[%s5064_s23 + $0xc28] sm:$0xff] }
 0x14e   : > { %4425 = vst [vmem:[%s5111_s20 + $0xb70] sm:$0xff] %v3913_v10  ;;  %4426 = vst [vmem:[%s5111_s20 + $0xb78] sm:$0xff] %v3914_v11  ;;  %v2482_v23 = vrot.slane %v824_v7, %v5080_v3  ;;  %v2486_v24 = vrot.slane %v824_v7, %v5082_v4  ;;  %v2490_v25 = vrot.slane %v824_v7, %v5084_v5  ;;  %v607_v0 = vld [vmem:[%s5064_s23 + $0xc20] sm:$0xff]  ;;  %v829_v6 = vld [vmem:[%s5072_s3 + $0x188] sm:$0xf] }
 0x14f   : > { %4427 = vst [vmem:[%s5111_s20 + $0xb80] sm:$0xff] %v3915_v15  ;;  %4428 = vst [vmem:[%s5111_s20 + $0xb88] sm:$0xff] %v3916_v16  ;;  %v2494_v29 = vrot.slane %v825_v14, %v5078_v2  ;;  %v2498_v30 = vrot.slane %v825_v14, %v5080_v3  ;;  %v2502_v31 = vrot.slane %v825_v14, %v5082_v4  ;;  %v609_v11 = vld [vmem:[%s5064_s23 + $0xc30] sm:$0xff] }
 0x150   : > { %4429 = vst [vmem:[%s5111_s20 + $0xb90] sm:$0xff] %v3917_v17  ;;  %4430 = vst [vmem:[%s5111_s20 + $0xb98] sm:$0xff] %v3918_v18  ;;  %v2506_v32 = vrot.slane %v825_v14, %v5084_v5  ;;  %v3919_v34 = vadd.f32 %v2478_v22, %v591_v12  ;;  %v3920_v35 = vadd.f32 %v2482_v23, %v592_v13  ;;  %v610_v12 = vld [vmem:[%s5064_s23 + $0xc38] sm:$0xff]  ;;  %v611_v13 = vld [vmem:[%s5064_s23 + $0xc40] sm:$0xff] }
 0x151   : > { %v3921_v36 = vadd.f32 %v2486_v24, %v593_v19  ;;  %v3922_v37 = vadd.f32 %v2490_v25, %v594_v20  ;;  %v3923_v41 = vadd.f32 %v2494_v29, %v595_v21  ;;  %v3924_v42 = vadd.f32 %v2498_v30, %v596_v26  ;;  %v612_v18 = vld [vmem:[%s5064_s23 + $0xc48] sm:$0xff]  ;;  %v613_v19 = vld [vmem:[%s5064_s23 + $0xc50] sm:$0xff]  ;;  %v614_v20 = vld [vmem:[%s5064_s23 + $0xc58] sm:$0xff] }
 0x152   : > { %v3925_v43 = vadd.f32 %v2502_v31, %v597_v27  ;;  %v3926_v44 = vadd.f32 %v2506_v32, %v598_v28  ;;  %4431 = vst [vmem:[%s5111_s20 + $0xba0] sm:$0xff] %v3919_v34  ;;  %4432 = vst [vmem:[%s5111_s20 + $0xba8] sm:$0xff] %v3920_v35  ;;  %v2510_v48 = vrot.slane %v826_v33, %v5078_v2  ;;  %v830_v25 = vld [vmem:[%s5072_s3 + $0x18c] sm:$0xf]  ;;  %v615_v30 = vld [vmem:[%s5064_s23 + $0xc60] sm:$0xff] }
 0x153   : > { %4433 = vst [vmem:[%s5111_s20 + $0xbb0] sm:$0xff] %v3921_v36  ;;  %4434 = vst [vmem:[%s5111_s20 + $0xbb8] sm:$0xff] %v3922_v37  ;;  %v2514_v49 = vrot.slane %v826_v33, %v5080_v3  ;;  %v2518_v50 = vrot.slane %v826_v33, %v5082_v4  ;;  %v2522_v51 = vrot.slane %v826_v33, %v5084_v5  ;;  %v616_v31 = vld [vmem:[%s5064_s23 + $0xc68] sm:$0xff]  ;;  %v831_v32 = vld [vmem:[%s5072_s3 + $0x190] sm:$0xf] }
 0x154   : > { %4435 = vst [vmem:[%s5111_s20 + $0xbc0] sm:$0xff] %v3923_v41  ;;  %4436 = vst [vmem:[%s5111_s20 + $0xbc8] sm:$0xff] %v3924_v42  ;;  %v2526_v55 = vrot.slane %v827_v40, %v5078_v2  ;;  %v2530_v56 = vrot.slane %v827_v40, %v5080_v3  ;;  %v2534_v57 = vrot.slane %v827_v40, %v5082_v4  ;;  %v617_v37 = vld [vmem:[%s5064_s23 + $0xc70] sm:$0xff] }
 0x155   : > { %4437 = vst [vmem:[%s5111_s20 + $0xbd0] sm:$0xff] %v3925_v43  ;;  %4438 = vst [vmem:[%s5111_s20 + $0xbd8] sm:$0xff] %v3926_v44  ;;  %v2538_v58 = vrot.slane %v827_v40, %v5084_v5  ;;  %v3927_v60 = vadd.f32 %v2510_v48, %v599_v38  ;;  %v3928_v61 = vadd.f32 %v2514_v49, %v600_v39  ;;  %v618_v38 = vld [vmem:[%s5064_s23 + $0xc78] sm:$0xff]  ;;  %v619_v39 = vld [vmem:[%s5064_s23 + $0xc80] sm:$0xff] }
 0x156   : > { %v3929_v62 = vadd.f32 %v2518_v50, %v601_v45  ;;  %v3930_v63 = vadd.f32 %v2522_v51, %v602_v46  ;;  %v3931_v7 = vadd.f32 %v2526_v55, %v603_v47  ;;  %v3932_v8 = vadd.f32 %v2530_v56, %v604_v52  ;;  %v620_v44 = vld [vmem:[%s5064_s23 + $0xc88] sm:$0xff]  ;;  %v621_v45 = vld [vmem:[%s5064_s23 + $0xc90] sm:$0xff]  ;;  %v622_v46 = vld [vmem:[%s5064_s23 + $0xc98] sm:$0xff] }
 0x157   : > { %v3933_v9 = vadd.f32 %v2534_v57, %v605_v53  ;;  %v3934_v10 = vadd.f32 %v2538_v58, %v606_v54  ;;  %4439 = vst [vmem:[%s5111_s20 + $0xbe0] sm:$0xff] %v3927_v60  ;;  %4440 = vst [vmem:[%s5111_s20 + $0xbe8] sm:$0xff] %v3928_v61  ;;  %v2542_v14 = vrot.slane %v828_v59, %v5078_v2  ;;  %v832_v51 = vld [vmem:[%s5072_s3 + $0x194] sm:$0xf]  ;;  %v623_v56 = vld [vmem:[%s5064_s23 + $0xca0] sm:$0xff] }
 0x158   : > { %4441 = vst [vmem:[%s5111_s20 + $0xbf0] sm:$0xff] %v3929_v62  ;;  %4442 = vst [vmem:[%s5111_s20 + $0xbf8] sm:$0xff] %v3930_v63  ;;  %v2546_v15 = vrot.slane %v828_v59, %v5080_v3  ;;  %v2550_v16 = vrot.slane %v828_v59, %v5082_v4  ;;  %v2554_v17 = vrot.slane %v828_v59, %v5084_v5  ;;  %v624_v57 = vld [vmem:[%s5064_s23 + $0xca8] sm:$0xff]  ;;  %v833_v58 = vld [vmem:[%s5072_s3 + $0x198] sm:$0xf] }
 0x159   : > { %4443 = vst [vmem:[%s5111_s20 + $0xc00] sm:$0xff] %v3931_v7  ;;  %4444 = vst [vmem:[%s5111_s20 + $0xc08] sm:$0xff] %v3932_v8  ;;  %v2558_v21 = vrot.slane %v829_v6, %v5078_v2  ;;  %v2562_v22 = vrot.slane %v829_v6, %v5080_v3  ;;  %v2566_v23 = vrot.slane %v829_v6, %v5082_v4  ;;  %v625_v63 = vld [vmem:[%s5064_s23 + $0xcb0] sm:$0xff] }
 0x15a   : > { %4445 = vst [vmem:[%s5111_s20 + $0xc10] sm:$0xff] %v3933_v9  ;;  %4446 = vst [vmem:[%s5111_s20 + $0xc18] sm:$0xff] %v3934_v10  ;;  %v2570_v24 = vrot.slane %v829_v6, %v5084_v5  ;;  %v3935_v26 = vadd.f32 %v2542_v14, %v607_v0  ;;  %v3936_v27 = vadd.f32 %v2546_v15, %v608_v1  ;;  %v626_v0 = vld [vmem:[%s5064_s23 + $0xcb8] sm:$0xff]  ;;  %v627_v1 = vld [vmem:[%s5064_s23 + $0xcc0] sm:$0xff] }
 0x15b   : > { %v3937_v28 = vadd.f32 %v2550_v16, %v609_v11  ;;  %v3938_v29 = vadd.f32 %v2554_v17, %v610_v12  ;;  %v3939_v33 = vadd.f32 %v2558_v21, %v611_v13  ;;  %v3940_v34 = vadd.f32 %v2562_v22, %v612_v18  ;;  %v628_v10 = vld [vmem:[%s5064_s23 + $0xcc8] sm:$0xff]  ;;  %v629_v11 = vld [vmem:[%s5064_s23 + $0xcd0] sm:$0xff]  ;;  %v630_v12 = vld [vmem:[%s5064_s23 + $0xcd8] sm:$0xff] }
 0x15c   : > { %v3941_v35 = vadd.f32 %v2566_v23, %v613_v19  ;;  %v3942_v36 = vadd.f32 %v2570_v24, %v614_v20  ;;  %4447 = vst [vmem:[%s5111_s20 + $0xc20] sm:$0xff] %v3935_v26  ;;  %4448 = vst [vmem:[%s5111_s20 + $0xc28] sm:$0xff] %v3936_v27  ;;  %v2574_v40 = vrot.slane %v830_v25, %v5078_v2  ;;  %v834_v17 = vld [vmem:[%s5072_s3 + $0x19c] sm:$0xf]  ;;  %v631_v22 = vld [vmem:[%s5064_s23 + $0xce0] sm:$0xff] }
 0x15d   : > { %4449 = vst [vmem:[%s5111_s20 + $0xc30] sm:$0xff] %v3937_v28  ;;  %4450 = vst [vmem:[%s5111_s20 + $0xc38] sm:$0xff] %v3938_v29  ;;  %v2578_v41 = vrot.slane %v830_v25, %v5080_v3  ;;  %v2582_v42 = vrot.slane %v830_v25, %v5082_v4  ;;  %v2586_v43 = vrot.slane %v830_v25, %v5084_v5  ;;  %v632_v23 = vld [vmem:[%s5064_s23 + $0xce8] sm:$0xff]  ;;  %v835_v24 = vld [vmem:[%s5072_s3 + $0x1a0] sm:$0xf] }
 0x15e   : > { %4451 = vst [vmem:[%s5111_s20 + $0xc40] sm:$0xff] %v3939_v33  ;;  %4452 = vst [vmem:[%s5111_s20 + $0xc48] sm:$0xff] %v3940_v34  ;;  %v2590_v47 = vrot.slane %v831_v32, %v5078_v2  ;;  %v2594_v48 = vrot.slane %v831_v32, %v5080_v3  ;;  %v2598_v49 = vrot.slane %v831_v32, %v5082_v4  ;;  %v633_v29 = vld [vmem:[%s5064_s23 + $0xcf0] sm:$0xff] }
 0x15f   : > { %4453 = vst [vmem:[%s5111_s20 + $0xc50] sm:$0xff] %v3941_v35  ;;  %4454 = vst [vmem:[%s5111_s20 + $0xc58] sm:$0xff] %v3942_v36  ;;  %v2602_v50 = vrot.slane %v831_v32, %v5084_v5  ;;  %v3943_v52 = vadd.f32 %v2574_v40, %v615_v30  ;;  %v3944_v53 = vadd.f32 %v2578_v41, %v616_v31  ;;  %v634_v30 = vld [vmem:[%s5064_s23 + $0xcf8] sm:$0xff]  ;;  %v635_v31 = vld [vmem:[%s5064_s23 + $0xd00] sm:$0xff] }
 0x160   : > { %v3945_v54 = vadd.f32 %v2582_v42, %v617_v37  ;;  %v3946_v55 = vadd.f32 %v2586_v43, %v618_v38  ;;  %v3947_v59 = vadd.f32 %v2590_v47, %v619_v39  ;;  %v3948_v60 = vadd.f32 %v2594_v48, %v620_v44  ;;  %v636_v36 = vld [vmem:[%s5064_s23 + $0xd08] sm:$0xff]  ;;  %v637_v37 = vld [vmem:[%s5064_s23 + $0xd10] sm:$0xff]  ;;  %v638_v38 = vld [vmem:[%s5064_s23 + $0xd18] sm:$0xff] }
 0x161   : > { %v3949_v61 = vadd.f32 %v2598_v49, %v621_v45  ;;  %v3950_v62 = vadd.f32 %v2602_v50, %v622_v46  ;;  %4455 = vst [vmem:[%s5111_s20 + $0xc60] sm:$0xff] %v3943_v52  ;;  %4456 = vst [vmem:[%s5111_s20 + $0xc68] sm:$0xff] %v3944_v53  ;;  %v2606_v6 = vrot.slane %v832_v51, %v5078_v2  ;;  %v836_v43 = vld [vmem:[%s5072_s3 + $0x1a4] sm:$0xf]  ;;  %v640_v49 = vld [vmem:[%s5064_s23 + $0xd28] sm:$0xff] }
 0x162   : > { %4457 = vst [vmem:[%s5111_s20 + $0xc70] sm:$0xff] %v3945_v54  ;;  %4458 = vst [vmem:[%s5111_s20 + $0xc78] sm:$0xff] %v3946_v55  ;;  %v2610_v7 = vrot.slane %v832_v51, %v5080_v3  ;;  %v2614_v8 = vrot.slane %v832_v51, %v5082_v4  ;;  %v2618_v9 = vrot.slane %v832_v51, %v5084_v5  ;;  %v639_v48 = vld [vmem:[%s5064_s23 + $0xd20] sm:$0xff]  ;;  %v837_v50 = vld [vmem:[%s5072_s3 + $0x1a8] sm:$0xf] }
 0x163   : > { %4459 = vst [vmem:[%s5111_s20 + $0xc80] sm:$0xff] %v3947_v59  ;;  %4460 = vst [vmem:[%s5111_s20 + $0xc88] sm:$0xff] %v3948_v60  ;;  %v2622_v13 = vrot.slane %v833_v58, %v5078_v2  ;;  %v2626_v14 = vrot.slane %v833_v58, %v5080_v3  ;;  %v2630_v15 = vrot.slane %v833_v58, %v5082_v4  ;;  %v641_v55 = vld [vmem:[%s5064_s23 + $0xd30] sm:$0xff] }
 0x164   : > { %4461 = vst [vmem:[%s5111_s20 + $0xc90] sm:$0xff] %v3949_v61  ;;  %4462 = vst [vmem:[%s5111_s20 + $0xc98] sm:$0xff] %v3950_v62  ;;  %v2634_v16 = vrot.slane %v833_v58, %v5084_v5  ;;  %v3951_v18 = vadd.f32 %v2606_v6, %v623_v56  ;;  %v3952_v19 = vadd.f32 %v2610_v7, %v624_v57  ;;  %v642_v56 = vld [vmem:[%s5064_s23 + $0xd38] sm:$0xff]  ;;  %v643_v57 = vld [vmem:[%s5064_s23 + $0xd40] sm:$0xff] }
 0x165   : > { %v3953_v20 = vadd.f32 %v2614_v8, %v625_v63  ;;  %v3954_v21 = vadd.f32 %v2618_v9, %v626_v0  ;;  %v3955_v25 = vadd.f32 %v2622_v13, %v627_v1  ;;  %v3956_v26 = vadd.f32 %v2626_v14, %v628_v10  ;;  %v644_v62 = vld [vmem:[%s5064_s23 + $0xd48] sm:$0xff]  ;;  %v645_v63 = vld [vmem:[%s5064_s23 + $0xd50] sm:$0xff]  ;;  %v646_v0 = vld [vmem:[%s5064_s23 + $0xd58] sm:$0xff] }
 0x166   : > { %v3957_v27 = vadd.f32 %v2630_v15, %v629_v11  ;;  %v3958_v28 = vadd.f32 %v2634_v16, %v630_v12  ;;  %4463 = vst [vmem:[%s5111_s20 + $0xca0] sm:$0xff] %v3951_v18  ;;  %4464 = vst [vmem:[%s5111_s20 + $0xca8] sm:$0xff] %v3952_v19  ;;  %v2638_v32 = vrot.slane %v834_v17, %v5078_v2  ;;  %v838_v9 = vld [vmem:[%s5072_s3 + $0x1ac] sm:$0xf]  ;;  %v647_v14 = vld [vmem:[%s5064_s23 + $0xd60] sm:$0xff] }
 0x167   : > { %4465 = vst [vmem:[%s5111_s20 + $0xcb0] sm:$0xff] %v3953_v20  ;;  %4466 = vst [vmem:[%s5111_s20 + $0xcb8] sm:$0xff] %v3954_v21  ;;  %v2642_v33 = vrot.slane %v834_v17, %v5080_v3  ;;  %v2646_v34 = vrot.slane %v834_v17, %v5082_v4  ;;  %v2650_v35 = vrot.slane %v834_v17, %v5084_v5  ;;  %v648_v15 = vld [vmem:[%s5064_s23 + $0xd68] sm:$0xff]  ;;  %v839_v16 = vld [vmem:[%s5072_s3 + $0x1b0] sm:$0xf] }
 0x168   : > { %4467 = vst [vmem:[%s5111_s20 + $0xcc0] sm:$0xff] %v3955_v25  ;;  %4468 = vst [vmem:[%s5111_s20 + $0xcc8] sm:$0xff] %v3956_v26  ;;  %v2654_v39 = vrot.slane %v835_v24, %v5078_v2  ;;  %v2658_v40 = vrot.slane %v835_v24, %v5080_v3  ;;  %v2662_v41 = vrot.slane %v835_v24, %v5082_v4  ;;  %v649_v21 = vld [vmem:[%s5064_s23 + $0xd70] sm:$0xff] }
 0x169   : > { %4469 = vst [vmem:[%s5111_s20 + $0xcd0] sm:$0xff] %v3957_v27  ;;  %4470 = vst [vmem:[%s5111_s20 + $0xcd8] sm:$0xff] %v3958_v28  ;;  %v2666_v42 = vrot.slane %v835_v24, %v5084_v5  ;;  %v3959_v44 = vadd.f32 %v2638_v32, %v631_v22  ;;  %v3960_v45 = vadd.f32 %v2642_v33, %v632_v23  ;;  %v650_v22 = vld [vmem:[%s5064_s23 + $0xd78] sm:$0xff]  ;;  %v651_v23 = vld [vmem:[%s5064_s23 + $0xd80] sm:$0xff] }
 0x16a   : > { %v3961_v46 = vadd.f32 %v2646_v34, %v633_v29  ;;  %v3962_v47 = vadd.f32 %v2650_v35, %v634_v30  ;;  %v3963_v51 = vadd.f32 %v2654_v39, %v635_v31  ;;  %v3964_v52 = vadd.f32 %v2658_v40, %v636_v36  ;;  %v652_v28 = vld [vmem:[%s5064_s23 + $0xd88] sm:$0xff]  ;;  %v653_v29 = vld [vmem:[%s5064_s23 + $0xd90] sm:$0xff]  ;;  %v654_v30 = vld [vmem:[%s5064_s23 + $0xd98] sm:$0xff] }
 0x16b   : > { %v3965_v53 = vadd.f32 %v2662_v41, %v637_v37  ;;  %v3966_v54 = vadd.f32 %v2666_v42, %v638_v38  ;;  %4471 = vst [vmem:[%s5111_s20 + $0xce0] sm:$0xff] %v3959_v44  ;;  %4472 = vst [vmem:[%s5111_s20 + $0xce8] sm:$0xff] %v3960_v45  ;;  %v2670_v58 = vrot.slane %v836_v43, %v5078_v2  ;;  %v840_v35 = vld [vmem:[%s5072_s3 + $0x1b4] sm:$0xf]  ;;  %v655_v40 = vld [vmem:[%s5064_s23 + $0xda0] sm:$0xff] }
 0x16c   : > { %4473 = vst [vmem:[%s5111_s20 + $0xcf0] sm:$0xff] %v3961_v46  ;;  %4474 = vst [vmem:[%s5111_s20 + $0xcf8] sm:$0xff] %v3962_v47  ;;  %v2674_v59 = vrot.slane %v836_v43, %v5080_v3  ;;  %v2678_v60 = vrot.slane %v836_v43, %v5082_v4  ;;  %v2682_v61 = vrot.slane %v836_v43, %v5084_v5  ;;  %v656_v41 = vld [vmem:[%s5064_s23 + $0xda8] sm:$0xff]  ;;  %v841_v42 = vld [vmem:[%s5072_s3 + $0x1b8] sm:$0xf] }
 0x16d   : > { %4475 = vst [vmem:[%s5111_s20 + $0xd00] sm:$0xff] %v3963_v51  ;;  %4476 = vst [vmem:[%s5111_s20 + $0xd08] sm:$0xff] %v3964_v52  ;;  %v2686_v1 = vrot.slane %v837_v50, %v5078_v2  ;;  %v2690_v6 = vrot.slane %v837_v50, %v5080_v3  ;;  %v2694_v7 = vrot.slane %v837_v50, %v5082_v4  ;;  %v657_v47 = vld [vmem:[%s5064_s23 + $0xdb0] sm:$0xff] }
 0x16e   : > { %4477 = vst [vmem:[%s5111_s20 + $0xd10] sm:$0xff] %v3965_v53  ;;  %4478 = vst [vmem:[%s5111_s20 + $0xd18] sm:$0xff] %v3966_v54  ;;  %v2698_v8 = vrot.slane %v837_v50, %v5084_v5  ;;  %v3967_v10 = vadd.f32 %v2670_v58, %v639_v48  ;;  %v3968_v11 = vadd.f32 %v2674_v59, %v640_v49  ;;  %v658_v48 = vld [vmem:[%s5064_s23 + $0xdb8] sm:$0xff]  ;;  %v659_v49 = vld [vmem:[%s5064_s23 + $0xdc0] sm:$0xff] }
 0x16f   : > { %v3969_v12 = vadd.f32 %v2678_v60, %v641_v55  ;;  %v3970_v13 = vadd.f32 %v2682_v61, %v642_v56  ;;  %v3971_v17 = vadd.f32 %v2686_v1, %v643_v57  ;;  %v3972_v18 = vadd.f32 %v2690_v6, %v644_v62  ;;  %v660_v54 = vld [vmem:[%s5064_s23 + $0xdc8] sm:$0xff]  ;;  %v661_v55 = vld [vmem:[%s5064_s23 + $0xdd0] sm:$0xff]  ;;  %v662_v56 = vld [vmem:[%s5064_s23 + $0xdd8] sm:$0xff] }
 0x170   : > { %v3973_v19 = vadd.f32 %v2694_v7, %v645_v63  ;;  %v3974_v20 = vadd.f32 %v2698_v8, %v646_v0  ;;  %4479 = vst [vmem:[%s5111_s20 + $0xd20] sm:$0xff] %v3967_v10  ;;  %4480 = vst [vmem:[%s5111_s20 + $0xd28] sm:$0xff] %v3968_v11  ;;  %v2702_v24 = vrot.slane %v838_v9, %v5078_v2  ;;  %v842_v61 = vld [vmem:[%s5072_s3 + $0x1bc] sm:$0xf]  ;;  %v663_v6 = vld [vmem:[%s5064_s23 + $0xde0] sm:$0xff] }
 0x171   : > { %4481 = vst [vmem:[%s5111_s20 + $0xd30] sm:$0xff] %v3969_v12  ;;  %4482 = vst [vmem:[%s5111_s20 + $0xd38] sm:$0xff] %v3970_v13  ;;  %v2706_v25 = vrot.slane %v838_v9, %v5080_v3  ;;  %v2710_v26 = vrot.slane %v838_v9, %v5082_v4  ;;  %v2714_v27 = vrot.slane %v838_v9, %v5084_v5  ;;  %v664_v7 = vld [vmem:[%s5064_s23 + $0xde8] sm:$0xff]  ;;  %v843_v8 = vld [vmem:[%s5072_s3 + $0x1c0] sm:$0xf] }
 0x172   : > { %4483 = vst [vmem:[%s5111_s20 + $0xd40] sm:$0xff] %v3971_v17  ;;  %4484 = vst [vmem:[%s5111_s20 + $0xd48] sm:$0xff] %v3972_v18  ;;  %v2718_v31 = vrot.slane %v839_v16, %v5078_v2  ;;  %v2722_v32 = vrot.slane %v839_v16, %v5080_v3  ;;  %v2726_v33 = vrot.slane %v839_v16, %v5082_v4  ;;  %v665_v13 = vld [vmem:[%s5064_s23 + $0xdf0] sm:$0xff] }
 0x173   : > { %4485 = vst [vmem:[%s5111_s20 + $0xd50] sm:$0xff] %v3973_v19  ;;  %4486 = vst [vmem:[%s5111_s20 + $0xd58] sm:$0xff] %v3974_v20  ;;  %v2730_v34 = vrot.slane %v839_v16, %v5084_v5  ;;  %v3975_v36 = vadd.f32 %v2702_v24, %v647_v14  ;;  %v3976_v37 = vadd.f32 %v2706_v25, %v648_v15  ;;  %v666_v14 = vld [vmem:[%s5064_s23 + $0xdf8] sm:$0xff]  ;;  %v667_v15 = vld [vmem:[%s5064_s23 + $0xe00] sm:$0xff] }
 0x174   : > { %v3977_v38 = vadd.f32 %v2710_v26, %v649_v21  ;;  %v3978_v39 = vadd.f32 %v2714_v27, %v650_v22  ;;  %v3979_v43 = vadd.f32 %v2718_v31, %v651_v23  ;;  %v3980_v44 = vadd.f32 %v2722_v32, %v652_v28  ;;  %v668_v20 = vld [vmem:[%s5064_s23 + $0xe08] sm:$0xff]  ;;  %v669_v21 = vld [vmem:[%s5064_s23 + $0xe10] sm:$0xff]  ;;  %v670_v22 = vld [vmem:[%s5064_s23 + $0xe18] sm:$0xff] }
 0x175   : > { %v3981_v45 = vadd.f32 %v2726_v33, %v653_v29  ;;  %v3982_v46 = vadd.f32 %v2730_v34, %v654_v30  ;;  %4487 = vst [vmem:[%s5111_s20 + $0xd60] sm:$0xff] %v3975_v36  ;;  %4488 = vst [vmem:[%s5111_s20 + $0xd68] sm:$0xff] %v3976_v37  ;;  %v2734_v50 = vrot.slane %v840_v35, %v5078_v2  ;;  %v844_v27 = vld [vmem:[%s5072_s3 + $0x1c4] sm:$0xf]  ;;  %v672_v33 = vld [vmem:[%s5064_s23 + $0xe28] sm:$0xff] }
 0x176   : > { %4489 = vst [vmem:[%s5111_s20 + $0xd70] sm:$0xff] %v3977_v38  ;;  %4490 = vst [vmem:[%s5111_s20 + $0xd78] sm:$0xff] %v3978_v39  ;;  %v2738_v51 = vrot.slane %v840_v35, %v5080_v3  ;;  %v2742_v52 = vrot.slane %v840_v35, %v5082_v4  ;;  %v2746_v53 = vrot.slane %v840_v35, %v5084_v5  ;;  %v671_v32 = vld [vmem:[%s5064_s23 + $0xe20] sm:$0xff]  ;;  %v845_v34 = vld [vmem:[%s5072_s3 + $0x1c8] sm:$0xf] }
 0x177   : > { %4491 = vst [vmem:[%s5111_s20 + $0xd80] sm:$0xff] %v3979_v43  ;;  %4492 = vst [vmem:[%s5111_s20 + $0xd88] sm:$0xff] %v3980_v44  ;;  %v2750_v57 = vrot.slane %v841_v42, %v5078_v2  ;;  %v2754_v58 = vrot.slane %v841_v42, %v5080_v3  ;;  %v2758_v59 = vrot.slane %v841_v42, %v5082_v4  ;;  %v673_v39 = vld [vmem:[%s5064_s23 + $0xe30] sm:$0xff] }
 0x178   : > { %4493 = vst [vmem:[%s5111_s20 + $0xd90] sm:$0xff] %v3981_v45  ;;  %4494 = vst [vmem:[%s5111_s20 + $0xd98] sm:$0xff] %v3982_v46  ;;  %v2762_v60 = vrot.slane %v841_v42, %v5084_v5  ;;  %v3983_v62 = vadd.f32 %v2734_v50, %v655_v40  ;;  %v3984_v63 = vadd.f32 %v2738_v51, %v656_v41  ;;  %v674_v40 = vld [vmem:[%s5064_s23 + $0xe38] sm:$0xff]  ;;  %v675_v41 = vld [vmem:[%s5064_s23 + $0xe40] sm:$0xff] }
 0x179   : > { %v3985_v0 = vadd.f32 %v2742_v52, %v657_v47  ;;  %v3986_v1 = vadd.f32 %v2746_v53, %v658_v48  ;;  %v3987_v9 = vadd.f32 %v2750_v57, %v659_v49  ;;  %v3988_v10 = vadd.f32 %v2754_v58, %v660_v54  ;;  %v676_v46 = vld [vmem:[%s5064_s23 + $0xe48] sm:$0xff]  ;;  %v677_v47 = vld [vmem:[%s5064_s23 + $0xe50] sm:$0xff]  ;;  %v678_v48 = vld [vmem:[%s5064_s23 + $0xe58] sm:$0xff] }
 0x17a   : > { %v3989_v11 = vadd.f32 %v2758_v59, %v661_v55  ;;  %v3990_v12 = vadd.f32 %v2762_v60, %v662_v56  ;;  %4495 = vst [vmem:[%s5111_s20 + $0xda0] sm:$0xff] %v3983_v62  ;;  %4496 = vst [vmem:[%s5111_s20 + $0xda8] sm:$0xff] %v3984_v63  ;;  %v2766_v16 = vrot.slane %v842_v61, %v5078_v2  ;;  %v846_v53 = vld [vmem:[%s5072_s3 + $0x1cc] sm:$0xf]  ;;  %v679_v58 = vld [vmem:[%s5064_s23 + $0xe60] sm:$0xff] }
 0x17b   : > { %4497 = vst [vmem:[%s5111_s20 + $0xdb0] sm:$0xff] %v3985_v0  ;;  %4498 = vst [vmem:[%s5111_s20 + $0xdb8] sm:$0xff] %v3986_v1  ;;  %v2770_v17 = vrot.slane %v842_v61, %v5080_v3  ;;  %v2774_v18 = vrot.slane %v842_v61, %v5082_v4  ;;  %v2778_v19 = vrot.slane %v842_v61, %v5084_v5  ;;  %v680_v59 = vld [vmem:[%s5064_s23 + $0xe68] sm:$0xff]  ;;  %v847_v60 = vld [vmem:[%s5072_s3 + $0x1d0] sm:$0xf] }
 0x17c   : > { %4499 = vst [vmem:[%s5111_s20 + $0xdc0] sm:$0xff] %v3987_v9  ;;  %4500 = vst [vmem:[%s5111_s20 + $0xdc8] sm:$0xff] %v3988_v10  ;;  %v2782_v23 = vrot.slane %v843_v8, %v5078_v2  ;;  %v2786_v24 = vrot.slane %v843_v8, %v5080_v3  ;;  %v2790_v25 = vrot.slane %v843_v8, %v5082_v4  ;;  %v681_v1 = vld [vmem:[%s5064_s23 + $0xe70] sm:$0xff] }
 0x17d   : > { %4501 = vst [vmem:[%s5111_s20 + $0xdd0] sm:$0xff] %v3989_v11  ;;  %4502 = vst [vmem:[%s5111_s20 + $0xdd8] sm:$0xff] %v3990_v12  ;;  %v2794_v26 = vrot.slane %v843_v8, %v5084_v5  ;;  %v3991_v28 = vadd.f32 %v2766_v16, %v663_v6  ;;  %v3992_v29 = vadd.f32 %v2770_v17, %v664_v7  ;;  %v682_v6 = vld [vmem:[%s5064_s23 + $0xe78] sm:$0xff]  ;;  %v683_v7 = vld [vmem:[%s5064_s23 + $0xe80] sm:$0xff] }
 0x17e   : > { %v3993_v30 = vadd.f32 %v2774_v18, %v665_v13  ;;  %v3994_v31 = vadd.f32 %v2778_v19, %v666_v14  ;;  %v3995_v35 = vadd.f32 %v2782_v23, %v667_v15  ;;  %v3996_v36 = vadd.f32 %v2786_v24, %v668_v20  ;;  %v684_v12 = vld [vmem:[%s5064_s23 + $0xe88] sm:$0xff]  ;;  %v685_v13 = vld [vmem:[%s5064_s23 + $0xe90] sm:$0xff]  ;;  %v686_v14 = vld [vmem:[%s5064_s23 + $0xe98] sm:$0xff] }
 0x17f   : > { %v3997_v37 = vadd.f32 %v2790_v25, %v669_v21  ;;  %v3998_v38 = vadd.f32 %v2794_v26, %v670_v22  ;;  %4503 = vst [vmem:[%s5111_s20 + $0xde0] sm:$0xff] %v3991_v28  ;;  %4504 = vst [vmem:[%s5111_s20 + $0xde8] sm:$0xff] %v3992_v29  ;;  %v2798_v42 = vrot.slane %v844_v27, %v5078_v2  ;;  %v848_v19 = vld [vmem:[%s5072_s3 + $0x1d4] sm:$0xf]  ;;  %v687_v24 = vld [vmem:[%s5064_s23 + $0xea0] sm:$0xff] }
 0x180   : > { %4505 = vst [vmem:[%s5111_s20 + $0xdf0] sm:$0xff] %v3993_v30  ;;  %4506 = vst [vmem:[%s5111_s20 + $0xdf8] sm:$0xff] %v3994_v31  ;;  %v2802_v43 = vrot.slane %v844_v27, %v5080_v3  ;;  %v2806_v44 = vrot.slane %v844_v27, %v5082_v4  ;;  %v2810_v45 = vrot.slane %v844_v27, %v5084_v5  ;;  %v688_v25 = vld [vmem:[%s5064_s23 + $0xea8] sm:$0xff]  ;;  %v849_v26 = vld [vmem:[%s5072_s3 + $0x1d8] sm:$0xf] }
 0x181   : > { %4507 = vst [vmem:[%s5111_s20 + $0xe00] sm:$0xff] %v3995_v35  ;;  %4508 = vst [vmem:[%s5111_s20 + $0xe08] sm:$0xff] %v3996_v36  ;;  %v2814_v49 = vrot.slane %v845_v34, %v5078_v2  ;;  %v2818_v50 = vrot.slane %v845_v34, %v5080_v3  ;;  %v2822_v51 = vrot.slane %v845_v34, %v5082_v4  ;;  %v689_v31 = vld [vmem:[%s5064_s23 + $0xeb0] sm:$0xff] }
 0x182   : > { %4509 = vst [vmem:[%s5111_s20 + $0xe10] sm:$0xff] %v3997_v37  ;;  %4510 = vst [vmem:[%s5111_s20 + $0xe18] sm:$0xff] %v3998_v38  ;;  %v2826_v52 = vrot.slane %v845_v34, %v5084_v5  ;;  %v3999_v54 = vadd.f32 %v2798_v42, %v671_v32  ;;  %v4000_v55 = vadd.f32 %v2802_v43, %v672_v33  ;;  %v690_v32 = vld [vmem:[%s5064_s23 + $0xeb8] sm:$0xff]  ;;  %v691_v33 = vld [vmem:[%s5064_s23 + $0xec0] sm:$0xff] }
 0x183   : > { %v4001_v56 = vadd.f32 %v2806_v44, %v673_v39  ;;  %v4002_v57 = vadd.f32 %v2810_v45, %v674_v40  ;;  %v4003_v61 = vadd.f32 %v2814_v49, %v675_v41  ;;  %v4004_v62 = vadd.f32 %v2818_v50, %v676_v46  ;;  %v692_v38 = vld [vmem:[%s5064_s23 + $0xec8] sm:$0xff]  ;;  %v693_v39 = vld [vmem:[%s5064_s23 + $0xed0] sm:$0xff]  ;;  %v694_v40 = vld [vmem:[%s5064_s23 + $0xed8] sm:$0xff] }
 0x184   : > { %v4005_v63 = vadd.f32 %v2822_v51, %v677_v47  ;;  %v4006_v0 = vadd.f32 %v2826_v52, %v678_v48  ;;  %4511 = vst [vmem:[%s5111_s20 + $0xe20] sm:$0xff] %v3999_v54  ;;  %4512 = vst [vmem:[%s5111_s20 + $0xe28] sm:$0xff] %v4000_v55  ;;  %v2830_v8 = vrot.slane %v846_v53, %v5078_v2  ;;  %v850_v45 = vld [vmem:[%s5072_s3 + $0x1dc] sm:$0xf]  ;;  %v695_v50 = vld [vmem:[%s5064_s23 + $0xee0] sm:$0xff] }
 0x185   : > { %4513 = vst [vmem:[%s5111_s20 + $0xe30] sm:$0xff] %v4001_v56  ;;  %4514 = vst [vmem:[%s5111_s20 + $0xe38] sm:$0xff] %v4002_v57  ;;  %v2834_v9 = vrot.slane %v846_v53, %v5080_v3  ;;  %v2838_v10 = vrot.slane %v846_v53, %v5082_v4  ;;  %v2842_v11 = vrot.slane %v846_v53, %v5084_v5  ;;  %v696_v51 = vld [vmem:[%s5064_s23 + $0xee8] sm:$0xff]  ;;  %v851_v52 = vld [vmem:[%s5072_s3 + $0x1e0] sm:$0xf] }
 0x186   : > { %4515 = vst [vmem:[%s5111_s20 + $0xe40] sm:$0xff] %v4003_v61  ;;  %4516 = vst [vmem:[%s5111_s20 + $0xe48] sm:$0xff] %v4004_v62  ;;  %v2846_v15 = vrot.slane %v847_v60, %v5078_v2  ;;  %v2850_v16 = vrot.slane %v847_v60, %v5080_v3  ;;  %v2854_v17 = vrot.slane %v847_v60, %v5082_v4  ;;  %v697_v57 = vld [vmem:[%s5064_s23 + $0xef0] sm:$0xff] }
 0x187   : > { %4517 = vst [vmem:[%s5111_s20 + $0xe50] sm:$0xff] %v4005_v63  ;;  %4518 = vst [vmem:[%s5111_s20 + $0xe58] sm:$0xff] %v4006_v0  ;;  %v2858_v18 = vrot.slane %v847_v60, %v5084_v5  ;;  %v4007_v20 = vadd.f32 %v2830_v8, %v679_v58  ;;  %v4008_v21 = vadd.f32 %v2834_v9, %v680_v59  ;;  %v698_v58 = vld [vmem:[%s5064_s23 + $0xef8] sm:$0xff]  ;;  %v699_v59 = vld [vmem:[%s5064_s23 + $0xf00] sm:$0xff] }
 0x188   : > { %v4009_v22 = vadd.f32 %v2838_v10, %v681_v1  ;;  %v4010_v23 = vadd.f32 %v2842_v11, %v682_v6  ;;  %v4011_v27 = vadd.f32 %v2846_v15, %v683_v7  ;;  %v4012_v28 = vadd.f32 %v2850_v16, %v684_v12  ;;  %v700_v0 = vld [vmem:[%s5064_s23 + $0xf08] sm:$0xff]  ;;  %v701_v1 = vld [vmem:[%s5064_s23 + $0xf10] sm:$0xff]  ;;  %v702_v6 = vld [vmem:[%s5064_s23 + $0xf18] sm:$0xff] }
 0x189   : > { %v4013_v29 = vadd.f32 %v2854_v17, %v685_v13  ;;  %v4014_v30 = vadd.f32 %v2858_v18, %v686_v14  ;;  %4519 = vst [vmem:[%s5111_s20 + $0xe60] sm:$0xff] %v4007_v20  ;;  %4520 = vst [vmem:[%s5111_s20 + $0xe68] sm:$0xff] %v4008_v21  ;;  %v2862_v34 = vrot.slane %v848_v19, %v5078_v2  ;;  %v852_v11 = vld [vmem:[%s5072_s3 + $0x1e4] sm:$0xf]  ;;  %v704_v17 = vld [vmem:[%s5064_s23 + $0xf28] sm:$0xff] }
 0x18a   : > { %4521 = vst [vmem:[%s5111_s20 + $0xe70] sm:$0xff] %v4009_v22  ;;  %4522 = vst [vmem:[%s5111_s20 + $0xe78] sm:$0xff] %v4010_v23  ;;  %v2866_v35 = vrot.slane %v848_v19, %v5080_v3  ;;  %v2870_v36 = vrot.slane %v848_v19, %v5082_v4  ;;  %v2874_v37 = vrot.slane %v848_v19, %v5084_v5  ;;  %v703_v16 = vld [vmem:[%s5064_s23 + $0xf20] sm:$0xff]  ;;  %v853_v18 = vld [vmem:[%s5072_s3 + $0x1e8] sm:$0xf] }
 0x18b   : > { %4523 = vst [vmem:[%s5111_s20 + $0xe80] sm:$0xff] %v4011_v27  ;;  %4524 = vst [vmem:[%s5111_s20 + $0xe88] sm:$0xff] %v4012_v28  ;;  %v2878_v41 = vrot.slane %v849_v26, %v5078_v2  ;;  %v2882_v42 = vrot.slane %v849_v26, %v5080_v3  ;;  %v2886_v43 = vrot.slane %v849_v26, %v5082_v4  ;;  %v705_v23 = vld [vmem:[%s5064_s23 + $0xf30] sm:$0xff] }
 0x18c   : > { %4525 = vst [vmem:[%s5111_s20 + $0xe90] sm:$0xff] %v4013_v29  ;;  %4526 = vst [vmem:[%s5111_s20 + $0xe98] sm:$0xff] %v4014_v30  ;;  %v2890_v44 = vrot.slane %v849_v26, %v5084_v5  ;;  %v4015_v46 = vadd.f32 %v2862_v34, %v687_v24  ;;  %v4016_v47 = vadd.f32 %v2866_v35, %v688_v25  ;;  %v706_v24 = vld [vmem:[%s5064_s23 + $0xf38] sm:$0xff]  ;;  %v707_v25 = vld [vmem:[%s5064_s23 + $0xf40] sm:$0xff] }
 0x18d   : > { %v4017_v48 = vadd.f32 %v2870_v36, %v689_v31  ;;  %v4018_v49 = vadd.f32 %v2874_v37, %v690_v32  ;;  %v4019_v53 = vadd.f32 %v2878_v41, %v691_v33  ;;  %v4020_v54 = vadd.f32 %v2882_v42, %v692_v38  ;;  %v708_v30 = vld [vmem:[%s5064_s23 + $0xf48] sm:$0xff]  ;;  %v709_v31 = vld [vmem:[%s5064_s23 + $0xf50] sm:$0xff]  ;;  %v710_v32 = vld [vmem:[%s5064_s23 + $0xf58] sm:$0xff] }
 0x18e   : > { %v4021_v55 = vadd.f32 %v2886_v43, %v693_v39  ;;  %v4022_v56 = vadd.f32 %v2890_v44, %v694_v40  ;;  %4527 = vst [vmem:[%s5111_s20 + $0xea0] sm:$0xff] %v4015_v46  ;;  %4528 = vst [vmem:[%s5111_s20 + $0xea8] sm:$0xff] %v4016_v47  ;;  %v2894_v60 = vrot.slane %v850_v45, %v5078_v2  ;;  %v854_v37 = vld [vmem:[%s5072_s3 + $0x1ec] sm:$0xf]  ;;  %v711_v42 = vld [vmem:[%s5064_s23 + $0xf60] sm:$0xff] }
 0x18f   : > { %4529 = vst [vmem:[%s5111_s20 + $0xeb0] sm:$0xff] %v4017_v48  ;;  %4530 = vst [vmem:[%s5111_s20 + $0xeb8] sm:$0xff] %v4018_v49  ;;  %v2898_v61 = vrot.slane %v850_v45, %v5080_v3  ;;  %v2902_v62 = vrot.slane %v850_v45, %v5082_v4  ;;  %v2906_v63 = vrot.slane %v850_v45, %v5084_v5  ;;  %v712_v43 = vld [vmem:[%s5064_s23 + $0xf68] sm:$0xff]  ;;  %v855_v44 = vld [vmem:[%s5072_s3 + $0x1f0] sm:$0xf] }
 0x190   : > { %4531 = vst [vmem:[%s5111_s20 + $0xec0] sm:$0xff] %v4019_v53  ;;  %4532 = vst [vmem:[%s5111_s20 + $0xec8] sm:$0xff] %v4020_v54  ;;  %v2910_v7 = vrot.slane %v851_v52, %v5078_v2  ;;  %v2914_v8 = vrot.slane %v851_v52, %v5080_v3  ;;  %v2918_v9 = vrot.slane %v851_v52, %v5082_v4  ;;  %v713_v49 = vld [vmem:[%s5064_s23 + $0xf70] sm:$0xff] }
 0x191   : > { %4533 = vst [vmem:[%s5111_s20 + $0xed0] sm:$0xff] %v4021_v55  ;;  %4534 = vst [vmem:[%s5111_s20 + $0xed8] sm:$0xff] %v4022_v56  ;;  %v2922_v10 = vrot.slane %v851_v52, %v5084_v5  ;;  %v4023_v12 = vadd.f32 %v2894_v60, %v695_v50  ;;  %v4024_v13 = vadd.f32 %v2898_v61, %v696_v51  ;;  %v714_v50 = vld [vmem:[%s5064_s23 + $0xf78] sm:$0xff]  ;;  %v715_v51 = vld [vmem:[%s5064_s23 + $0xf80] sm:$0xff] }
 0x192   : > { %v4025_v14 = vadd.f32 %v2902_v62, %v697_v57  ;;  %v4026_v15 = vadd.f32 %v2906_v63, %v698_v58  ;;  %v4027_v19 = vadd.f32 %v2910_v7, %v699_v59  ;;  %v4028_v20 = vadd.f32 %v2914_v8, %v700_v0  ;;  %v716_v56 = vld [vmem:[%s5064_s23 + $0xf88] sm:$0xff]  ;;  %v717_v57 = vld [vmem:[%s5064_s23 + $0xf90] sm:$0xff]  ;;  %v718_v58 = vld [vmem:[%s5064_s23 + $0xf98] sm:$0xff] }
 0x193   : > { %v4029_v21 = vadd.f32 %v2918_v9, %v701_v1  ;;  %v4030_v22 = vadd.f32 %v2922_v10, %v702_v6  ;;  %4535 = vst [vmem:[%s5111_s20 + $0xee0] sm:$0xff] %v4023_v12  ;;  %4536 = vst [vmem:[%s5111_s20 + $0xee8] sm:$0xff] %v4024_v13  ;;  %v2926_v26 = vrot.slane %v852_v11, %v5078_v2  ;;  %v856_v63 = vld [vmem:[%s5072_s3 + $0x1f4] sm:$0xf]  ;;  %v719_v8 = vld [vmem:[%s5064_s23 + $0xfa0] sm:$0xff] }
 0x194   : > { %4537 = vst [vmem:[%s5111_s20 + $0xef0] sm:$0xff] %v4025_v14  ;;  %4538 = vst [vmem:[%s5111_s20 + $0xef8] sm:$0xff] %v4026_v15  ;;  %v2930_v27 = vrot.slane %v852_v11, %v5080_v3  ;;  %v2934_v28 = vrot.slane %v852_v11, %v5082_v4  ;;  %v2938_v29 = vrot.slane %v852_v11, %v5084_v5  ;;  %v720_v9 = vld [vmem:[%s5064_s23 + $0xfa8] sm:$0xff]  ;;  %v857_v10 = vld [vmem:[%s5072_s3 + $0x1f8] sm:$0xf] }
 0x195   : > { %4539 = vst [vmem:[%s5111_s20 + $0xf00] sm:$0xff] %v4027_v19  ;;  %4540 = vst [vmem:[%s5111_s20 + $0xf08] sm:$0xff] %v4028_v20  ;;  %v2942_v33 = vrot.slane %v853_v18, %v5078_v2  ;;  %v2946_v34 = vrot.slane %v853_v18, %v5080_v3  ;;  %v2950_v35 = vrot.slane %v853_v18, %v5082_v4  ;;  %v721_v15 = vld [vmem:[%s5064_s23 + $0xfb0] sm:$0xff] }
 0x196   : > { %4541 = vst [vmem:[%s5111_s20 + $0xf10] sm:$0xff] %v4029_v21  ;;  %4542 = vst [vmem:[%s5111_s20 + $0xf18] sm:$0xff] %v4030_v22  ;;  %v2954_v36 = vrot.slane %v853_v18, %v5084_v5  ;;  %v4031_v38 = vadd.f32 %v2926_v26, %v703_v16  ;;  %v4032_v39 = vadd.f32 %v2930_v27, %v704_v17  ;;  %v722_v16 = vld [vmem:[%s5064_s23 + $0xfb8] sm:$0xff]  ;;  %v723_v17 = vld [vmem:[%s5064_s23 + $0xfc0] sm:$0xff] }
 0x197   : > { %v4033_v40 = vadd.f32 %v2934_v28, %v705_v23  ;;  %v4034_v41 = vadd.f32 %v2938_v29, %v706_v24  ;;  %v4035_v45 = vadd.f32 %v2942_v33, %v707_v25  ;;  %v4036_v46 = vadd.f32 %v2946_v34, %v708_v30  ;;  %v724_v22 = vld [vmem:[%s5064_s23 + $0xfc8] sm:$0xff]  ;;  %v725_v23 = vld [vmem:[%s5064_s23 + $0xfd0] sm:$0xff]  ;;  %v726_v24 = vld [vmem:[%s5064_s23 + $0xfd8] sm:$0xff] }
 0x198   : > { %v4037_v47 = vadd.f32 %v2950_v35, %v709_v31  ;;  %v4038_v48 = vadd.f32 %v2954_v36, %v710_v32  ;;  %4543 = vst [vmem:[%s5111_s20 + $0xf20] sm:$0xff] %v4031_v38  ;;  %4544 = vst [vmem:[%s5111_s20 + $0xf28] sm:$0xff] %v4032_v39  ;;  %v2958_v52 = vrot.slane %v854_v37, %v5078_v2  ;;  %v858_v29 = vld [vmem:[%s5072_s3 + $0x1fc] sm:$0xf]  ;;  %v727_v34 = vld [vmem:[%s5064_s23 + $0xfe0] sm:$0xff] }
 0x199   : > { %4545 = vst [vmem:[%s5111_s20 + $0xf30] sm:$0xff] %v4033_v40  ;;  %4546 = vst [vmem:[%s5111_s20 + $0xf38] sm:$0xff] %v4034_v41  ;;  %v2962_v53 = vrot.slane %v854_v37, %v5080_v3  ;;  %v2966_v54 = vrot.slane %v854_v37, %v5082_v4  ;;  %v2970_v55 = vrot.slane %v854_v37, %v5084_v5  ;;  %v728_v39 = vld [vmem:[%s5064_s23 + $0xfe8] sm:$0xff]  ;;  %v729_v40 = vld [vmem:[%s5064_s23 + $0xff0] sm:$0xff] }
 0x19a   : > { %4547 = vst [vmem:[%s5111_s20 + $0xf40] sm:$0xff] %v4035_v45  ;;  %4548 = vst [vmem:[%s5111_s20 + $0xf48] sm:$0xff] %v4036_v46  ;;  %v2974_v59 = vrot.slane %v855_v44, %v5078_v2  ;;  %v2978_v60 = vrot.slane %v855_v44, %v5080_v3  ;;  %v2982_v61 = vrot.slane %v855_v44, %v5082_v4  ;;  %v730_v41 = vld [vmem:[%s5064_s23 + $0xff8] sm:$0xff] }
 0x19b   : > { %4549 = vst [vmem:[%s5111_s20 + $0xf50] sm:$0xff] %v4037_v47  ;;  %4550 = vst [vmem:[%s5111_s20 + $0xf58] sm:$0xff] %v4038_v48  ;;  %v2986_v62 = vrot.slane %v855_v44, %v5084_v5  ;;  %v4039_v0 = vadd.f32 %v2958_v52, %v711_v42  ;;  %v4040_v1 = vadd.f32 %v2962_v53, %v712_v43 }
 0x19c   : > { %v4041_v6 = vadd.f32 %v2966_v54, %v713_v49  ;;  %v4042_v7 = vadd.f32 %v2970_v55, %v714_v50  ;;  %v4043_v11 = vadd.f32 %v2974_v59, %v715_v51  ;;  %v4044_v12 = vadd.f32 %v2978_v60, %v716_v56 }
 0x19d   : > { %v4045_v13 = vadd.f32 %v2982_v61, %v717_v57  ;;  %v4046_v14 = vadd.f32 %v2986_v62, %v718_v58  ;;  %4551 = vst [vmem:[%s5111_s20 + $0xf60] sm:$0xff] %v4039_v0  ;;  %4552 = vst [vmem:[%s5111_s20 + $0xf68] sm:$0xff] %v4040_v1  ;;  %v2990_v18 = vrot.slane %v856_v63, %v5078_v2 }
 0x19e   : > { %4553 = vst [vmem:[%s5111_s20 + $0xf70] sm:$0xff] %v4041_v6  ;;  %4554 = vst [vmem:[%s5111_s20 + $0xf78] sm:$0xff] %v4042_v7  ;;  %v2994_v19 = vrot.slane %v856_v63, %v5080_v3  ;;  %v2998_v20 = vrot.slane %v856_v63, %v5082_v4  ;;  %v3002_v21 = vrot.slane %v856_v63, %v5084_v5 }
 0x19f   : > { %4555 = vst [vmem:[%s5111_s20 + $0xf80] sm:$0xff] %v4043_v11  ;;  %4556 = vst [vmem:[%s5111_s20 + $0xf88] sm:$0xff] %v4044_v12  ;;  %v3006_v25 = vrot.slane %v857_v10, %v5078_v2  ;;  %v3010_v26 = vrot.slane %v857_v10, %v5080_v3  ;;  %v3014_v27 = vrot.slane %v857_v10, %v5082_v4 }
 0x1a0   : > { %4557 = vst [vmem:[%s5111_s20 + $0xf90] sm:$0xff] %v4045_v13  ;;  %4558 = vst [vmem:[%s5111_s20 + $0xf98] sm:$0xff] %v4046_v14  ;;  %v3018_v28 = vrot.slane %v857_v10, %v5084_v5  ;;  %v4047_v30 = vadd.f32 %v2990_v18, %v719_v8  ;;  %v4048_v31 = vadd.f32 %v2994_v19, %v720_v9 }
 0x1a1   : > { %v4049_v32 = vadd.f32 %v2998_v20, %v721_v15  ;;  %v4050_v33 = vadd.f32 %v3002_v21, %v722_v16  ;;  %v4051_v35 = vadd.f32 %v3006_v25, %v723_v17  ;;  %v4052_v36 = vadd.f32 %v3010_v26, %v724_v22 }
 0x1a2   : > { %v4053_v37 = vadd.f32 %v3014_v27, %v725_v23  ;;  %v4054_v38 = vadd.f32 %v3018_v28, %v726_v24  ;;  %4559 = vst [vmem:[%s5111_s20 + $0xfa0] sm:$0xff] %v4047_v30  ;;  %4560 = vst [vmem:[%s5111_s20 + $0xfa8] sm:$0xff] %v4048_v31  ;;  %v3022_v42 = vrot.slane %v858_v29, %v5078_v2 }
 0x1a3   : > { %4561 = vst [vmem:[%s5111_s20 + $0xfb0] sm:$0xff] %v4049_v32  ;;  %4562 = vst [vmem:[%s5111_s20 + $0xfb8] sm:$0xff] %v4050_v33  ;;  %v3026_v43 = vrot.slane %v858_v29, %v5080_v3  ;;  %v3030_v44 = vrot.slane %v858_v29, %v5082_v4  ;;  %v3034_v45 = vrot.slane %v858_v29, %v5084_v5 }
 0x1a4   : > { %4563 = vst [vmem:[%s5111_s20 + $0xfc0] sm:$0xff] %v4051_v35  ;;  %4564 = vst [vmem:[%s5111_s20 + $0xfc8] sm:$0xff] %v4052_v36  ;;  %v4055_v2 = vadd.f32 %v3022_v42, %v727_v34 }
 0x1a5   : > { %4565 = vst [vmem:[%s5111_s20 + $0xfd0] sm:$0xff] %v4053_v37  ;;  %4566 = vst [vmem:[%s5111_s20 + $0xfd8] sm:$0xff] %v4054_v38  ;;  %v4056_v3 = vadd.f32 %v3026_v43, %v728_v39  ;;  %v4057_v4 = vadd.f32 %v3030_v44, %v729_v40  ;;  %v4058_v46 = vadd.f32 %v3034_v45, %v730_v41 }
 0x1a6   : > { %4567 = vst [vmem:[%s5111_s20 + $0xfe0] sm:$0xff] %v4055_v2 }
 0x1a7   : > { %4568 = vst [vmem:[%s5111_s20 + $0xfe8] sm:$0xff] %v4056_v3  ;;  %4569 = vst [vmem:[%s5111_s20 + $0xff0] sm:$0xff] %v4057_v4 }
 0x1a8   : > { %4570 = vst [vmem:[%s5111_s20 + $0xff8] sm:$0xff] %v4058_v46 }
 0x1a9   : > { %4832 = shalt.err (!%p4829_p10)
}
 0x1aa   : > { %s4833_s19 = scalar_lea.hbm %s6755_s27, 65536  ;;  %s4837_s24 = scalar_lea.hbm %s6807_s2, 131072 }
 0x1ab   : > { %p4834_p11 = scmp.ne.s32.totalorder %s6755_s27, %s4833_s19  ;;  %p4838_p0 = scmp.lt.u32.totalorder %s6755_s27, %s6807_s2 }
 0x1ac   : > { %p4839_p7 = scmp.lt.u32.totalorder %s4837_s24, %s4833_s19  ;;  %p4841_p6 = scmp.lt.u32.totalorder %s4833_s19, %s6755_s27 }
 0x1ad   : > { %p4835_p3 = pnand %p4834_p11, %p6814_p5 }
 0x1ae   : > { %p4840_p8 = por %p4839_p7, %p4838_p0 }
 0x1af   : > { %p4836_p4 = pneg %p4835_p3 }
 0x1b0   : > { %p4842_p12 = por %p4841_p6, %p4840_p8 }
 0x1b2   : > { %p4843_p13 = pnand %p4842_p12, %p4836_p4 }
 0x1b4   : > { %4846 = shalt.err (!%p4843_p13)
}
 0x1b5   : > { %s4898_s8 = smov 512   ;;  %s4899_s3 = smov 32  }
 0x1b6   : > { %4718 = dma.vmem_to_hbm [thread:$0]  (%p6814_p5), %s6757_s25, 65536, %s6755_s27, %s4572_s29, %s4898_s8, %s4898_s8, %s4899_s3  }
 0x1b7 PF: > { %s4601_s20 = sand.u32 1, %s4877_s9   ;;  %p6815_p1 = scmp.ne.s32.totalorder %s6813_s22, 0 }
 0x1b8   : > { %p6816_p2 = scmp.ge.s32.totalorder %s4889_s12, 2  ;;  %s4602_s16 = scalar_lea.sflag [#allocation4], %s4601_s20 }
 0x1ba   : > { %p4721_p9 = pnand %p6816_p2, %p6815_p1 }
 0x1bc   : > { %4872 = dma.done.wait (!%p4721_p9), %s4602_s16, 65536  }
 0x1bd   : > { %4874 = vsyncadd (!%p4721_p9), %s4602_s16, 4294901760  ;;  %p18_p10 = scmp.ge.s32.totalorder %s4940_s15, 4   ;;  %s6817_s9 = smov %s4881_s10 }
 0x1be   : > { %s6818_s10 = smov %s4885_s11  ;;  %s6819_s11 = smov %s4952_s18 }
 0x1bf   : > { %s6820_s12 = smov %s4940_s15  ;;  %20 = sbr.rel (!%p18_p10) target bundleno = 7 (0x7), region = 86 }
 0x1c6   :  { %4607 = vsyncpa [#allocation3], 1 }
 0x1c7   :  { %4609 = vsyncpa [#allocation3 + $0x1], 1 }
 0x1c8   :  { %4610 = vsyncpa [#allocation6], 1 }
 0x1c9   :  { %4612 = vsyncpa [#allocation6 + $0x1], 1 }
 0x1ca   :  { %4613 = vsyncpa [#allocation4], 1 }
 0x1cb   :  { %4615 = vsyncpa [#allocation4 + $0x1], 1 }

</bundles_post_ra>
